<compile_context>
chip_gen: v7x
topology: tpu7x:2x2x1
jax: 0.10.0
libtpu: 0.0.40
codegen_flags: <defaults>
</compile_context>

<pallas_src>
import functools

import jax
import jax.numpy as jnp
from jax.experimental import pallas as pl
from jax.experimental.pallas import tpu as pltpu


_OUT_PAD = 128          # lane-dense width for the final (C -> 3) layer
_TAP_PAD = 128          # lane-dense/MXU-aligned tap count for the first conv (27 -> 128)


def _round_up(x, m):
    return (x + m - 1) // m * m


def _compiler_params():
    return pltpu.CompilerParams(
        dimension_semantics=("parallel",),
        vmem_limit_bytes=64 * 1024 * 1024,
    )


def choose_tiling(n, tn_target=512):
    """Row-tile size TN and padded point count N_pad (multiple of TN)."""
    if n <= tn_target:
        tn = max(16, _round_up(n, 16))
        return tn, tn
    return tn_target, _round_up(n, tn_target)


# ----------------------------------------------------------------------------
# Pallas kernel bodies
# ----------------------------------------------------------------------------
def _linear_kernel(x_ref, w_ref, b_ref, o_ref, *, relu):
    acc = jnp.dot(x_ref[...], w_ref[...], preferred_element_type=jnp.float32)
    acc = acc + b_ref[...]
    if relu:
        acc = jnp.maximum(acc, 0.0)
    o_ref[...] = acc.astype(o_ref.dtype)


def _linear_residual_kernel(x_ref, w_ref, b_ref, r_ref, o_ref, *, relu):
    acc = jnp.dot(x_ref[...], w_ref[...], preferred_element_type=jnp.float32)
    acc = acc + b_ref[...] + r_ref[...].astype(jnp.float32)
    if relu:
        acc = jnp.maximum(acc, 0.0)
    o_ref[...] = acc.astype(o_ref.dtype)


def _first_conv_kernel(nbr_ref, w_ref, b_ref, o_ref, *, sentinel):
    # Cin == 1 and features are all ones -> the im2col row is just the
    # neighbor-presence mask; compute it on the fly from the neighbor indices.
    mask = jnp.where(nbr_ref[...] != sentinel, 1.0, 0.0).astype(jnp.bfloat16)
    acc = jnp.dot(mask, w_ref[...], preferred_element_type=jnp.float32)
    acc = jnp.maximum(acc + b_ref[...], 0.0)          # conv3 -> ReLU (fused)
    o_ref[...] = acc.astype(o_ref.dtype)


def _fused_fc_kernel(x_ref, w1_ref, b1_ref, w2_ref, b2_ref, w3_ref, b3_ref, o_ref):
    h = jnp.dot(x_ref[...], w1_ref[...], preferred_element_type=jnp.float32)
    h = jnp.maximum(h + b1_ref[...], 0.0).astype(jnp.bfloat16)
    h = jnp.dot(h, w2_ref[...], preferred_element_type=jnp.float32)
    h = jnp.maximum(h + b2_ref[...], 0.0).astype(jnp.bfloat16)
    out = jnp.dot(h, w3_ref[...], preferred_element_type=jnp.float32) + b3_ref[...]
    o_ref[...] = out.astype(o_ref.dtype)


# ----------------------------------------------------------------------------
# Pallas wrappers (row-tiled, weights VMEM-resident, activations streamed)
# ----------------------------------------------------------------------------
def pallas_linear(x, w, b, *, tn, residual=None, relu=False, out_dtype=jnp.bfloat16):
    """out = [relu]( x @ w + b [+ residual] ), tiled & pipelined over rows."""
    n_pad, k = x.shape
    cout = w.shape[1]
    assert n_pad % tn == 0
    b2 = b.reshape(1, cout).astype(jnp.float32)

    in_specs = [
        pl.BlockSpec((tn, k), lambda i: (i, 0)),       # activations: streamed
        pl.BlockSpec((k, cout), lambda i: (0, 0)),     # weights: VMEM-resident
        pl.BlockSpec((1, cout), lambda i: (0, 0)),     # bias:    VMEM-resident
    ]
    args = [x.astype(jnp.bfloat16), w.astype(jnp.bfloat16), b2]
    if residual is not None:
        in_specs.append(pl.BlockSpec((tn, cout), lambda i: (i, 0)))
        args.append(residual.astype(jnp.bfloat16))
        kernel = functools.partial(_linear_residual_kernel, relu=relu)
    else:
        kernel = functools.partial(_linear_kernel, relu=relu)

    return pl.pallas_call(
        kernel,
        out_shape=jax.ShapeDtypeStruct((n_pad, cout), out_dtype),
        grid=(n_pad // tn,),
        in_specs=in_specs,
        out_specs=pl.BlockSpec((tn, cout), lambda i: (i, 0)),
        compiler_params=_compiler_params(),
    )(*args)


def first_conv3_relu(nbr_idx_p, w, b, *, tn):
    """conv3(1->C)+ReLU on all-ones features: mask(TN,128) @ W(128,C)."""
    n_pad = nbr_idx_p.shape[0]
    cout = w.shape[-1]
    # Pad taps 27 -> 128 (zero weight rows, sentinel neighbor columns) so the
    # matmul contraction dim and the int32 neighbor block are lane-aligned.
    nbr_pad = jnp.full((n_pad, _TAP_PAD), n_pad, dtype=jnp.int32)
    nbr_pad = nbr_pad.at[:, :27].set(nbr_idx_p)
    wcol = jnp.zeros((_TAP_PAD, cout), jnp.float32).at[:27].set(w.reshape(27, cout))
    wcol = wcol.astype(jnp.bfloat16)
    b2 = b.reshape(1, cout).astype(jnp.float32)

    kernel = functools.partial(_first_conv_kernel, sentinel=n_pad)
    return pl.pallas_call(
        kernel,
        out_shape=jax.ShapeDtypeStruct((n_pad, cout), jnp.bfloat16),
        grid=(n_pad // tn,),
        in_specs=[
            pl.BlockSpec((tn, _TAP_PAD), lambda i: (i, 0)),
            pl.BlockSpec((_TAP_PAD, cout), lambda i: (0, 0)),
            pl.BlockSpec((1, cout), lambda i: (0, 0)),
        ],
        out_specs=pl.BlockSpec((tn, cout), lambda i: (i, 0)),
        compiler_params=_compiler_params(),
    )(nbr_pad, wcol, b2)


def fused_fc(x, w1, b1, w2, b2, w3, b3, *, tn):
    """conv1(C->C)->ReLU->conv1(C->C)->ReLU->conv1(C->3) in one N-sweep.

    Final layer padded to 128 output lanes (lane-dense stores); caller slices."""
    n_pad, c = x.shape
    w3p = jnp.zeros((c, _OUT_PAD), jnp.float32).at[:, : w3.shape[1]].set(w3)
    b3p = jnp.zeros((1, _OUT_PAD), jnp.float32).at[0, : b3.shape[0]].set(b3)

    streamed = lambda i: (i, 0)
    resident = lambda i: (0, 0)
    return pl.pallas_call(
        _fused_fc_kernel,
        out_shape=jax.ShapeDtypeStruct((n_pad, _OUT_PAD), jnp.float32),
        grid=(n_pad // tn,),
        in_specs=[
            pl.BlockSpec((tn, c), streamed),
            pl.BlockSpec((c, c), resident),
            pl.BlockSpec((1, c), resident),
            pl.BlockSpec((c, c), resident),
            pl.BlockSpec((1, c), resident),
            pl.BlockSpec((c, _OUT_PAD), resident),
            pl.BlockSpec((1, _OUT_PAD), resident),
        ],
        out_specs=pl.BlockSpec((tn, _OUT_PAD), streamed),
        compiler_params=_compiler_params(),
    )(
        x.astype(jnp.bfloat16),
        w1.astype(jnp.bfloat16), b1.reshape(1, c).astype(jnp.float32),
        w2.astype(jnp.bfloat16), b2.reshape(1, c).astype(jnp.float32),
        w3p.astype(jnp.bfloat16), b3p,
    )


# ----------------------------------------------------------------------------
# Sparse-conv glue (im2col gather in bf16; compute in Pallas)
# ----------------------------------------------------------------------------
def gather_im2col(feats, nbr_idx_p):
    """feats (N_pad, Cin) bf16; nbr_idx_p (N_pad, 27) with sentinel == N_pad."""
    n_pad, cin = feats.shape
    feats_p = jnp.concatenate([feats, jnp.zeros((1, cin), feats.dtype)], axis=0)
    g = jnp.take(feats_p, nbr_idx_p, axis=0)            # (N_pad, 27, Cin)
    return g.reshape(n_pad, 27 * cin)


def sparse_conv3(feats, nbr_idx_p, w, b, *, tn, relu=False, residual=None):
    """Minkowski 3x3x3 conv, stride 1, out coords == in coords."""
    n_pad, cin = feats.shape
    cout = w.shape[-1]
    # TODO(synk): the (N, 27*Cin) bf16 im2col buffer still round-trips HBM once
    # per layer; moving the 27-tap gather inside the Pallas pipeline (scalar-
    # prefetched nbr_idx + in-kernel row gather) would halve per-layer HBM bytes
    # but depends on Mosaic dynamic-gather support, so it stays as JAX glue.
    xcol = gather_im2col(feats.astype(jnp.bfloat16), nbr_idx_p)
    wcol = w.reshape(27 * cin, cout)
    return pallas_linear(xcol, wcol, b, tn=tn, residual=residual, relu=relu)


# ----------------------------------------------------------------------------
# Neighbor map construction (glue; shared by all k=3 convs since coords fixed)
# ----------------------------------------------------------------------------
def build_neighbor_map(coords, num_batches, grid):
    N = coords.shape[0]
    lut = jnp.full((num_batches, grid, grid, grid), N, dtype=jnp.int32)
    lut = lut.at[coords[:, 0], coords[:, 1], coords[:, 2], coords[:, 3]].set(
        jnp.arange(N, dtype=jnp.int32))
    offs = jnp.array([(dx, dy, dz)
                      for dx in (-1, 0, 1)
                      for dy in (-1, 0, 1)
                      for dz in (-1, 0, 1)], dtype=jnp.int32)      # (27,3)
    nb = coords[:, None, 1:] + offs[None]                          # (N,27,3)
    inb = jnp.all((nb >= 0) & (nb < grid), axis=-1)                # (N,27)
    nbc = jnp.clip(nb, 0, grid - 1)
    bidx = jnp.broadcast_to(coords[:, None, 0], (N, 27))
    found = lut[bidx, nbc[..., 0], nbc[..., 1], nbc[..., 2]]
    return jnp.where(inb, found, N).astype(jnp.int32)              # sentinel == N


def pad_neighbor_map(nbr_idx, n, n_pad):
    """Remap sentinel n -> n_pad and pad rows to n_pad (all-sentinel rows)."""
    nbr = jnp.where(nbr_idx == n, n_pad, nbr_idx).astype(jnp.int32)
    if n_pad > n:
        pad = jnp.full((n_pad - n, 27), n_pad, dtype=jnp.int32)
        nbr = jnp.concatenate([nbr, pad], axis=0)
    return nbr


# ----------------------------------------------------------------------------
# Parameter init (deterministic, shapes follow OffsetDecoder.__init__)
# ----------------------------------------------------------------------------
def _init_conv3(key, cin, cout):
    kw, kb = jax.random.split(key)
    scale = float(27 * cin) ** -0.5
    w = jax.random.normal(kw, (27, cin, cout), jnp.float32) * scale
    b = jax.random.normal(kb, (cout,), jnp.float32) * 0.01
    return w, b


def _init_conv1(key, cin, cout):
    kw, kb = jax.random.split(key)
    scale = float(cin) ** -0.5
    w = jax.random.normal(kw, (cin, cout), jnp.float32) * scale
    b = jax.random.normal(kb, (cout,), jnp.float32) * 0.01
    return w, b


def init_params(key, channels, block_layers):
    keys = jax.random.split(key, 2 + 2 * block_layers + 3)
    p = {}
    p["w_in"], p["b_in"] = _init_conv3(keys[0], 1, channels)        # block[0]
    res = []
    for i in range(block_layers):                                   # ResNetBlock
        wa, ba = _init_conv3(keys[1 + 2 * i], channels, channels)
        wb, bb = _init_conv3(keys[2 + 2 * i], channels, channels)
        res.append((wa, ba, wb, bb))
    p["res"] = res
    p["w_blk_out"], p["b_blk_out"] = _init_conv3(keys[1 + 2 * block_layers],
                                                 channels, channels)  # block[-1]
    p["w_fc1"], p["b_fc1"] = _init_conv1(keys[2 + 2 * block_layers], channels, channels)
    p["w_fc2"], p["b_fc2"] = _init_conv1(keys[3 + 2 * block_layers], channels, channels)
    p["w_fc3"], p["b_fc3"] = _init_conv1(keys[4 + 2 * block_layers], channels, 3)
    return p


# ----------------------------------------------------------------------------
# Forward passes (mirror OffsetDecoder / OffsetModelVCN)
# ----------------------------------------------------------------------------
@functools.partial(jax.jit, static_argnames=("tn", "n_valid"))
def offset_decoder_forward(nbr_idx_p, params, *, tn, n_valid):
    # self.block = conv3(1->C) -> ReLU -> ResNetBlock -> conv3(C->C)
    h = first_conv3_relu(nbr_idx_p, params["w_in"], params["b_in"], tn=tn)
    for (wa, ba, wb, bb) in params["res"]:
        r = sparse_conv3(h, nbr_idx_p, wa, ba, tn=tn, relu=True)
        h = sparse_conv3(r, nbr_idx_p, wb, bb, tn=tn, relu=False, residual=h)
    h = sparse_conv3(h, nbr_idx_p, params["w_blk_out"], params["b_blk_out"],
                     tn=tn, relu=False)
    # self.fc = conv1(C->C) -> ReLU -> conv1(C->C) -> ReLU -> conv1(C->3), fused
    out = fused_fc(h, params["w_fc1"], params["b_fc1"],
                   params["w_fc2"], params["b_fc2"],
                   params["w_fc3"], params["b_fc3"], tn=tn)
    return out[:n_valid, :3]                     # drop lane padding + row padding


def offset_model_vcn_forward(coords, x_feats, nbr_idx, params):
    n = coords.shape[0]
    tn, n_pad = choose_tiling(n)
    nbr_idx_p = pad_neighbor_map(nbr_idx, n, n_pad)
    # x_one: ones([N,1]) on the same coordinate map as x (handled analytically
    # by the first-conv presence-mask kernel).
    out_feats = offset_decoder_forward(nbr_idx_p, params, tn=tn, n_valid=n)
    out_set_list = [{
        "ground_truth": {"coords": coords, "feats": x_feats},
        "out": {"coords": coords, "feats": out_feats},
    }]
    return out_set_list


# ----------------------------------------------------------------------------
# Example / smoke test
# ----------------------------------------------------------------------------
def make_coords(key, num_batches, grid, n_per_batch):
    coords_list = []
    for b in range(num_batches):
        key, sub = jax.random.split(key)
        flat = jax.random.permutation(sub, grid * grid * grid)[:n_per_batch]
        z = flat % grid
        y = (flat // grid) % grid
        x = flat // (grid * grid)
        coords_list.append(
            jnp.stack([jnp.full_like(flat, b), x, y, z], axis=1).astype(jnp.int32))
    return jnp.concatenate(coords_list, axis=0)                    # (B*n_per, 4)


if __name__ == "__main__":
    B, GRID, N_PER = 2, 8, 32          # 64 occupied voxels total
    CHANNELS, BLOCK_LAYERS = 32, 3     # small version of default (channels=128)

    key = jax.random.PRNGKey(0)
    key, kc, kf, kp = jax.random.split(key, 4)

    coords = make_coords(kc, B, GRID, N_PER)                       # (64, 4)
    N = coords.shape[0]
    x_feats = jax.random.normal(kf, (N, 3), jnp.float32)           # ground-truth feats (unused by compute)
    params = init_params(kp, CHANNELS, BLOCK_LAYERS)
    nbr_idx = build_neighbor_map(coords, B, GRID)                  # (64, 27)

    out_set_list = offset_model_vcn_forward(coords, x_feats, nbr_idx, params)
    out_feats = out_set_list[0]["out"]["feats"]
    jax.block_until_ready(out_feats)

    assert out_feats.shape == (N, 3)
    assert jnp.all(jnp.isfinite(out_feats))
    print("KERNEL_OK")
</pallas_src>

<mosaic_0001>
module attributes {stable_mosaic.version = 11 : i64} {
  func.func @_first_conv_kernel(%arg0: i32, %arg1: memref<64x128xi32, #tpu.memory_space<vmem>>, %arg2: memref<128x32xbf16, #tpu.memory_space<vmem>>, %arg3: memref<1x32xf32, #tpu.memory_space<vmem>>, %arg4: memref<64x32xbf16, #tpu.memory_space<vmem>>) attributes {dimension_semantics = [#tpu.dimension_semantics<parallel>], iteration_bounds = array<i64: 1>, scalar_prefetch = 0 : i64, scratch_operands = 0 : i64, tpu.core_type = #tpu.core_type<tc>, window_params = [{transform_indices = @transform_0, window_bounds = array<i64: 64, 128>}, {pipeline_mode = #tpu.pipeline_mode<synchronous>, transform_indices = @transform_1, window_bounds = array<i64: 128, 32>}, {pipeline_mode = #tpu.pipeline_mode<synchronous>, transform_indices = @transform_2, window_bounds = array<i64: 1, 32>}, {transform_indices = @transform_3, window_bounds = array<i64: 64, 32>}]} {
    %c0 = arith.constant 0 : index
    %c0_0 = arith.constant 0 : index
    %0 = vector.load %arg1[%c0, %c0_0] : memref<64x128xi32, #tpu.memory_space<vmem>>, vector<64x128xi32>
    %c64_i32 = arith.constant 64 : i32
    %1 = vector.broadcast %c64_i32 : i32 to vector<64x128xi32>
    %2 = arith.cmpi ne, %0, %1 : vector<64x128xi32>
    %cst = arith.constant 1.000000e+00 : f32
    %cst_1 = arith.constant 0.000000e+00 : f32
    %3 = vector.broadcast %cst : f32 to vector<64x128xf32>
    %4 = vector.broadcast %cst_1 : f32 to vector<64x128xf32>
    %5 = arith.select %2, %3, %4 : vector<64x128xi1>, vector<64x128xf32>
    %6 = arith.truncf %5 : vector<64x128xf32> to vector<64x128xbf16>
    %c0_2 = arith.constant 0 : index
    %c0_3 = arith.constant 0 : index
    %7 = vector.load %arg2[%c0_2, %c0_3] : memref<128x32xbf16, #tpu.memory_space<vmem>>, vector<128x32xbf16>
    %cst_4 = arith.constant dense<0.000000e+00> : vector<64x32xf32>
    %8 = tpu.matmul %6, %7, %cst_4 {dimension_numbers = #tpu.dot_dimension_numbers<[1], [0], [0], [1], [0, 0, 1, 1], [], []>} : vector<64x128xbf16>, vector<128x32xbf16>, vector<64x32xf32> -> vector<64x32xf32>
    %c0_5 = arith.constant 0 : index
    %c0_6 = arith.constant 0 : index
    %9 = vector.load %arg3[%c0_5, %c0_6] : memref<1x32xf32, #tpu.memory_space<vmem>>, vector<1x32xf32>
    %10 = vector.broadcast %9 : vector<1x32xf32> to vector<64x32xf32>
    %11 = arith.addf %8, %10 : vector<64x32xf32>
    %cst_7 = arith.constant 0.000000e+00 : f32
    %12 = vector.broadcast %cst_7 : f32 to vector<64x32xf32>
    %13 = arith.maximumf %11, %12 : vector<64x32xf32>
    %14 = arith.truncf %13 : vector<64x32xf32> to vector<64x32xbf16>
    %c0_8 = arith.constant 0 : index
    %c0_9 = arith.constant 0 : index
    %15 = vector.load %arg4[%c0_8, %c0_9] : memref<64x32xbf16, #tpu.memory_space<vmem>>, vector<64x32xbf16>
    tpu.vector_store %arg4[%c0_8, %c0_9], %14 {strides = array<i32>} : memref<64x32xbf16, #tpu.memory_space<vmem>>, vector<64x32xbf16>,
    return
  }
  func.func @transform_0(%arg0: i32) -> (i32, i32) {
    %c0_i32 = arith.constant 0 : i32
    %c0_i32_0 = arith.constant 0 : i32
    return %arg0, %c0_i32 : i32, i32
  }
  func.func @transform_1(%arg0: i32) -> (i32, i32) {
    %c0_i32 = arith.constant 0 : i32
    %c0_i32_0 = arith.constant 0 : i32
    %c0_i32_1 = arith.constant 0 : i32
    return %c0_i32, %c0_i32_0 : i32, i32
  }
  func.func @transform_2(%arg0: i32) -> (i32, i32) {
    %c0_i32 = arith.constant 0 : i32
    %c0_i32_0 = arith.constant 0 : i32
    %c0_i32_1 = arith.constant 0 : i32
    return %c0_i32, %c0_i32_0 : i32, i32
  }
  func.func @transform_3(%arg0: i32) -> (i32, i32) {
    %c0_i32 = arith.constant 0 : i32
    %c0_i32_0 = arith.constant 0 : i32
    return %arg0, %c0_i32 : i32, i32
  }
}

module attributes {stable_mosaic.version = 11 : i64} {
  func.func @_linear_kernel(%arg0: i32, %arg1: memref<64x864xbf16, #tpu.memory_space<vmem>>, %arg2: memref<864x32xbf16, #tpu.memory_space<vmem>>, %arg3: memref<1x32xf32, #tpu.memory_space<vmem>>, %arg4: memref<64x32xbf16, #tpu.memory_space<vmem>>) attributes {dimension_semantics = [#tpu.dimension_semantics<parallel>], iteration_bounds = array<i64: 1>, scalar_prefetch = 0 : i64, scratch_operands = 0 : i64, tpu.core_type = #tpu.core_type<tc>, window_params = [{transform_indices = @transform_0, window_bounds = array<i64: 64, 864>}, {pipeline_mode = #tpu.pipeline_mode<synchronous>, transform_indices = @transform_1, window_bounds = array<i64: 864, 32>}, {pipeline_mode = #tpu.pipeline_mode<synchronous>, transform_indices = @transform_2, window_bounds = array<i64: 1, 32>}, {transform_indices = @transform_3, window_bounds = array<i64: 64, 32>}]} {
    %c0 = arith.constant 0 : index
    %c0_0 = arith.constant 0 : index
    %0 = vector.load %arg1[%c0, %c0_0] : memref<64x864xbf16, #tpu.memory_space<vmem>>, vector<64x864xbf16>
    %c0_1 = arith.constant 0 : index
    %c0_2 = arith.constant 0 : index
    %1 = vector.load %arg2[%c0_1, %c0_2] : memref<864x32xbf16, #tpu.memory_space<vmem>>, vector<864x32xbf16>
    %cst = arith.constant dense<0.000000e+00> : vector<64x32xf32>
    %2 = tpu.matmul %0, %1, %cst {dimension_numbers = #tpu.dot_dimension_numbers<[1], [0], [0], [1], [0, 0, 1, 1], [], []>} : vector<64x864xbf16>, vector<864x32xbf16>, vector<64x32xf32> -> vector<64x32xf32>
    %c0_3 = arith.constant 0 : index
    %c0_4 = arith.constant 0 : index
    %3 = vector.load %arg3[%c0_3, %c0_4] : memref<1x32xf32, #tpu.memory_space<vmem>>, vector<1x32xf32>
    %4 = vector.broadcast %3 : vector<1x32xf32> to vector<64x32xf32>
    %5 = arith.addf %2, %4 : vector<64x32xf32>
    %cst_5 = arith.constant 0.000000e+00 : f32
    %6 = vector.broadcast %cst_5 : f32 to vector<64x32xf32>
    %7 = arith.maximumf %5, %6 : vector<64x32xf32>
    %8 = arith.truncf %7 : vector<64x32xf32> to vector<64x32xbf16>
    %c0_6 = arith.constant 0 : index
    %c0_7 = arith.constant 0 : index
    %9 = vector.load %arg4[%c0_6, %c0_7] : memref<64x32xbf16, #tpu.memory_space<vmem>>, vector<64x32xbf16>
    tpu.vector_store %arg4[%c0_6, %c0_7], %8 {strides = array<i32>} : memref<64x32xbf16, #tpu.memory_space<vmem>>, vector<64x32xbf16>,
    return
  }
  func.func @transform_0(%arg0: i32) -> (i32, i32) {
    %c0_i32 = arith.constant 0 : i32
    %c0_i32_0 = arith.constant 0 : i32
    return %arg0, %c0_i32 : i32, i32
  }
  func.func @transform_1(%arg0: i32) -> (i32, i32) {
    %c0_i32 = arith.constant 0 : i32
    %c0_i32_0 = arith.constant 0 : i32
    %c0_i32_1 = arith.constant 0 : i32
    return %c0_i32, %c0_i32_0 : i32, i32
  }
  func.func @transform_2(%arg0: i32) -> (i32, i32) {
    %c0_i32 = arith.constant 0 : i32
    %c0_i32_0 = arith.constant 0 : i32
    %c0_i32_1 = arith.constant 0 : i32
    return %c0_i32, %c0_i32_0 : i32, i32
  }
  func.func @transform_3(%arg0: i32) -> (i32, i32) {
    %c0_i32 = arith.constant 0 : i32
    %c0_i32_0 = arith.constant 0 : i32
    return %arg0, %c0_i32 : i32, i32
  }
}

module attributes {stable_mosaic.version = 11 : i64} {
  func.func @_linear_residual_kernel(%arg0: i32, %arg1: memref<64x864xbf16, #tpu.memory_space<vmem>>, %arg2: memref<864x32xbf16, #tpu.memory_space<vmem>>, %arg3: memref<1x32xf32, #tpu.memory_space<vmem>>, %arg4: memref<64x32xbf16, #tpu.memory_space<vmem>>, %arg5: memref<64x32xbf16, #tpu.memory_space<vmem>>) attributes {dimension_semantics = [#tpu.dimension_semantics<parallel>], iteration_bounds = array<i64: 1>, scalar_prefetch = 0 : i64, scratch_operands = 0 : i64, tpu.core_type = #tpu.core_type<tc>, window_params = [{transform_indices = @transform_0, window_bounds = array<i64: 64, 864>}, {pipeline_mode = #tpu.pipeline_mode<synchronous>, transform_indices = @transform_1, window_bounds = array<i64: 864, 32>}, {pipeline_mode = #tpu.pipeline_mode<synchronous>, transform_indices = @transform_2, window_bounds = array<i64: 1, 32>}, {transform_indices = @transform_3, window_bounds = array<i64: 64, 32>}, {transform_indices = @transform_4, window_bounds = array<i64: 64, 32>}]} {
    %c0 = arith.constant 0 : index
    %c0_0 = arith.constant 0 : index
    %0 = vector.load %arg1[%c0, %c0_0] : memref<64x864xbf16, #tpu.memory_space<vmem>>, vector<64x864xbf16>
    %c0_1 = arith.constant 0 : index
    %c0_2 = arith.constant 0 : index
    %1 = vector.load %arg2[%c0_1, %c0_2] : memref<864x32xbf16, #tpu.memory_space<vmem>>, vector<864x32xbf16>
    %cst = arith.constant dense<0.000000e+00> : vector<64x32xf32>
    %2 = tpu.matmul %0, %1, %cst {dimension_numbers = #tpu.dot_dimension_numbers<[1], [0], [0], [1], [0, 0, 1, 1], [], []>} : vector<64x864xbf16>, vector<864x32xbf16>, vector<64x32xf32> -> vector<64x32xf32>
    %c0_3 = arith.constant 0 : index
    %c0_4 = arith.constant 0 : index
    %3 = vector.load %arg3[%c0_3, %c0_4] : memref<1x32xf32, #tpu.memory_space<vmem>>, vector<1x32xf32>
    %4 = vector.broadcast %3 : vector<1x32xf32> to vector<64x32xf32>
    %5 = arith.addf %2, %4 : vector<64x32xf32>
    %c0_5 = arith.constant 0 : index
    %c0_6 = arith.constant 0 : index
    %6 = vector.load %arg4[%c0_5, %c0_6] : memref<64x32xbf16, #tpu.memory_space<vmem>>, vector<64x32xbf16>
    %7 = arith.extf %6 : vector<64x32xbf16> to vector<64x32xf32>
    %8 = arith.addf %5, %7 : vector<64x32xf32>
    %9 = arith.truncf %8 : vector<64x32xf32> to vector<64x32xbf16>
    %c0_7 = arith.constant 0 : index
    %c0_8 = arith.constant 0 : index
    %10 = vector.load %arg5[%c0_7, %c0_8] : memref<64x32xbf16, #tpu.memory_space<vmem>>, vector<64x32xbf16>
    tpu.vector_store %arg5[%c0_7, %c0_8], %9 {strides = array<i32>} : memref<64x32xbf16, #tpu.memory_space<vmem>>, vector<64x32xbf16>,
    return
  }
  func.func @transform_0(%arg0: i32) -> (i32, i32) {
    %c0_i32 = arith.constant 0 : i32
    %c0_i32_0 = arith.constant 0 : i32
    return %arg0, %c0_i32 : i32, i32
  }
  func.func @transform_1(%arg0: i32) -> (i32, i32) {
    %c0_i32 = arith.constant 0 : i32
    %c0_i32_0 = arith.constant 0 : i32
    %c0_i32_1 = arith.constant 0 : i32
    return %c0_i32, %c0_i32_0 : i32, i32
  }
  func.func @transform_2(%arg0: i32) -> (i32, i32) {
    %c0_i32 = arith.constant 0 : i32
    %c0_i32_0 = arith.constant 0 : i32
    %c0_i32_1 = arith.constant 0 : i32
    return %c0_i32, %c0_i32_0 : i32, i32
  }
  func.func @transform_3(%arg0: i32) -> (i32, i32) {
    %c0_i32 = arith.constant 0 : i32
    %c0_i32_0 = arith.constant 0 : i32
    return %arg0, %c0_i32 : i32, i32
  }
  func.func @transform_4(%arg0: i32) -> (i32, i32) {
    %c0_i32 = arith.constant 0 : i32
    %c0_i32_0 = arith.constant 0 : i32
    return %arg0, %c0_i32 : i32, i32
  }
}

module attributes {stable_mosaic.version = 11 : i64} {
  func.func @_linear_kernel(%arg0: i32, %arg1: memref<64x864xbf16, #tpu.memory_space<vmem>>, %arg2: memref<864x32xbf16, #tpu.memory_space<vmem>>, %arg3: memref<1x32xf32, #tpu.memory_space<vmem>>, %arg4: memref<64x32xbf16, #tpu.memory_space<vmem>>) attributes {dimension_semantics = [#tpu.dimension_semantics<parallel>], iteration_bounds = array<i64: 1>, scalar_prefetch = 0 : i64, scratch_operands = 0 : i64, tpu.core_type = #tpu.core_type<tc>, window_params = [{transform_indices = @transform_0, window_bounds = array<i64: 64, 864>}, {pipeline_mode = #tpu.pipeline_mode<synchronous>, transform_indices = @transform_1, window_bounds = array<i64: 864, 32>}, {pipeline_mode = #tpu.pipeline_mode<synchronous>, transform_indices = @transform_2, window_bounds = array<i64: 1, 32>}, {transform_indices = @transform_3, window_bounds = array<i64: 64, 32>}]} {
    %c0 = arith.constant 0 : index
    %c0_0 = arith.constant 0 : index
    %0 = vector.load %arg1[%c0, %c0_0] : memref<64x864xbf16, #tpu.memory_space<vmem>>, vector<64x864xbf16>
    %c0_1 = arith.constant 0 : index
    %c0_2 = arith.constant 0 : index
    %1 = vector.load %arg2[%c0_1, %c0_2] : memref<864x32xbf16, #tpu.memory_space<vmem>>, vector<864x32xbf16>
    %cst = arith.constant dense<0.000000e+00> : vector<64x32xf32>
    %2 = tpu.matmul %0, %1, %cst {dimension_numbers = #tpu.dot_dimension_numbers<[1], [0], [0], [1], [0, 0, 1, 1], [], []>} : vector<64x864xbf16>, vector<864x32xbf16>, vector<64x32xf32> -> vector<64x32xf32>
    %c0_3 = arith.constant 0 : index
    %c0_4 = arith.constant 0 : index
    %3 = vector.load %arg3[%c0_3, %c0_4] : memref<1x32xf32, #tpu.memory_space<vmem>>, vector<1x32xf32>
    %4 = vector.broadcast %3 : vector<1x32xf32> to vector<64x32xf32>
    %5 = arith.addf %2, %4 : vector<64x32xf32>
    %6 = arith.truncf %5 : vector<64x32xf32> to vector<64x32xbf16>
    %c0_5 = arith.constant 0 : index
    %c0_6 = arith.constant 0 : index
    %7 = vector.load %arg4[%c0_5, %c0_6] : memref<64x32xbf16, #tpu.memory_space<vmem>>, vector<64x32xbf16>
    tpu.vector_store %arg4[%c0_5, %c0_6], %6 {strides = array<i32>} : memref<64x32xbf16, #tpu.memory_space<vmem>>, vector<64x32xbf16>,
    return
  }
  func.func @transform_0(%arg0: i32) -> (i32, i32) {
    %c0_i32 = arith.constant 0 : i32
    %c0_i32_0 = arith.constant 0 : i32
    return %arg0, %c0_i32 : i32, i32
  }
  func.func @transform_1(%arg0: i32) -> (i32, i32) {
    %c0_i32 = arith.constant 0 : i32
    %c0_i32_0 = arith.constant 0 : i32
    %c0_i32_1 = arith.constant 0 : i32
    return %c0_i32, %c0_i32_0 : i32, i32
  }
  func.func @transform_2(%arg0: i32) -> (i32, i32) {
    %c0_i32 = arith.constant 0 : i32
    %c0_i32_0 = arith.constant 0 : i32
    %c0_i32_1 = arith.constant 0 : i32
    return %c0_i32, %c0_i32_0 : i32, i32
  }
  func.func @transform_3(%arg0: i32) -> (i32, i32) {
    %c0_i32 = arith.constant 0 : i32
    %c0_i32_0 = arith.constant 0 : i32
    return %arg0, %c0_i32 : i32, i32
  }
}

module attributes {stable_mosaic.version = 11 : i64} {
  func.func @_fused_fc_kernel(%arg0: i32, %arg1: memref<64x32xbf16, #tpu.memory_space<vmem>>, %arg2: memref<32x32xbf16, #tpu.memory_space<vmem>>, %arg3: memref<1x32xf32, #tpu.memory_space<vmem>>, %arg4: memref<32x32xbf16, #tpu.memory_space<vmem>>, %arg5: memref<1x32xf32, #tpu.memory_space<vmem>>, %arg6: memref<32x128xbf16, #tpu.memory_space<vmem>>, %arg7: memref<1x128xf32, #tpu.memory_space<vmem>>, %arg8: memref<64x128xf32, #tpu.memory_space<vmem>>) attributes {dimension_semantics = [#tpu.dimension_semantics<parallel>], iteration_bounds = array<i64: 1>, scalar_prefetch = 0 : i64, scratch_operands = 0 : i64, tpu.core_type = #tpu.core_type<tc>, window_params = [{transform_indices = @transform_0, window_bounds = array<i64: 64, 32>}, {pipeline_mode = #tpu.pipeline_mode<synchronous>, transform_indices = @transform_1, window_bounds = array<i64: 32, 32>}, {pipeline_mode = #tpu.pipeline_mode<synchronous>, transform_indices = @transform_2, window_bounds = array<i64: 1, 32>}, {pipeline_mode = #tpu.pipeline_mode<synchronous>, transform_indices = @transform_3, window_bounds = array<i64: 32, 32>}, {pipeline_mode = #tpu.pipeline_mode<synchronous>, transform_indices = @transform_4, window_bounds = array<i64: 1, 32>}, {pipeline_mode = #tpu.pipeline_mode<synchronous>, transform_indices = @transform_5, window_bounds = array<i64: 32, 128>}, {pipeline_mode = #tpu.pipeline_mode<synchronous>, transform_indices = @transform_6, window_bounds = array<i64: 1, 128>}, {transform_indices = @transform_7, window_bounds = array<i64: 64, 128>}]} {
    %c0 = arith.constant 0 : index
    %c0_0 = arith.constant 0 : index
    %0 = vector.load %arg1[%c0, %c0_0] : memref<64x32xbf16, #tpu.memory_space<vmem>>, vector<64x32xbf16>
    %c0_1 = arith.constant 0 : index
    %c0_2 = arith.constant 0 : index
    %1 = vector.load %arg2[%c0_1, %c0_2] : memref<32x32xbf16, #tpu.memory_space<vmem>>, vector<32x32xbf16>
    %cst = arith.constant dense<0.000000e+00> : vector<64x32xf32>
    %2 = tpu.matmul %0, %1, %cst {dimension_numbers = #tpu.dot_dimension_numbers<[1], [0], [0], [1], [0, 0, 1, 1], [], []>} : vector<64x32xbf16>, vector<32x32xbf16>, vector<64x32xf32> -> vector<64x32xf32>
    %c0_3 = arith.constant 0 : index
    %c0_4 = arith.constant 0 : index
    %3 = vector.load %arg3[%c0_3, %c0_4] : memref<1x32xf32, #tpu.memory_space<vmem>>, vector<1x32xf32>
    %4 = vector.broadcast %3 : vector<1x32xf32> to vector<64x32xf32>
    %5 = arith.addf %2, %4 : vector<64x32xf32>
    %cst_5 = arith.constant 0.000000e+00 : f32
    %6 = vector.broadcast %cst_5 : f32 to vector<64x32xf32>
    %7 = arith.maximumf %5, %6 : vector<64x32xf32>
    %8 = arith.truncf %7 : vector<64x32xf32> to vector<64x32xbf16>
    %c0_6 = arith.constant 0 : index
    %c0_7 = arith.constant 0 : index
    %9 = vector.load %arg4[%c0_6, %c0_7] : memref<32x32xbf16, #tpu.memory_space<vmem>>, vector<32x32xbf16>
    %cst_8 = arith.constant dense<0.000000e+00> : vector<64x32xf32>
    %10 = tpu.matmul %8, %9, %cst_8 {dimension_numbers = #tpu.dot_dimension_numbers<[1], [0], [0], [1], [0, 0, 1, 1], [], []>} : vector<64x32xbf16>, vector<32x32xbf16>, vector<64x32xf32> -> vector<64x32xf32>
    %c0_9 = arith.constant 0 : index
    %c0_10 = arith.constant 0 : index
    %11 = vector.load %arg5[%c0_9, %c0_10] : memref<1x32xf32, #tpu.memory_space<vmem>>, vector<1x32xf32>
    %12 = vector.broadcast %11 : vector<1x32xf32> to vector<64x32xf32>
    %13 = arith.addf %10, %12 : vector<64x32xf32>
    %cst_11 = arith.constant 0.000000e+00 : f32
    %14 = vector.broadcast %cst_11 : f32 to vector<64x32xf32>
    %15 = arith.maximumf %13, %14 : vector<64x32xf32>
    %16 = arith.truncf %15 : vector<64x32xf32> to vector<64x32xbf16>
    %c0_12 = arith.constant 0 : index
    %c0_13 = arith.constant 0 : index
    %17 = vector.load %arg6[%c0_12, %c0_13] : memref<32x128xbf16, #tpu.memory_space<vmem>>, vector<32x128xbf16>
    %cst_14 = arith.constant dense<0.000000e+00> : vector<64x128xf32>
    %18 = tpu.matmul %16, %17, %cst_14 {dimension_numbers = #tpu.dot_dimension_numbers<[1], [0], [0], [1], [0, 0, 1, 1], [], []>} : vector<64x32xbf16>, vector<32x128xbf16>, vector<64x128xf32> -> vector<64x128xf32>
    %c0_15 = arith.constant 0 : index
    %c0_16 = arith.constant 0 : index
    %19 = vector.load %arg7[%c0_15, %c0_16] : memref<1x128xf32, #tpu.memory_space<vmem>>, vector<1x128xf32>
    %20 = vector.broadcast %19 : vector<1x128xf32> to vector<64x128xf32>
    %21 = arith.addf %18, %20 : vector<64x128xf32>
    %c0_17 = arith.constant 0 : index
    %c0_18 = arith.constant 0 : index
    %22 = vector.load %arg8[%c0_17, %c0_18] : memref<64x128xf32, #tpu.memory_space<vmem>>, vector<64x128xf32>
    tpu.vector_store %arg8[%c0_17, %c0_18], %21 {strides = array<i32>} : memref<64x128xf32, #tpu.memory_space<vmem>>, vector<64x128xf32>,
    return
  }
  func.func @transform_0(%arg0: i32) -> (i32, i32) {
    %c0_i32 = arith.constant 0 : i32
    %c0_i32_0 = arith.constant 0 : i32
    return %arg0, %c0_i32 : i32, i32
  }
  func.func @transform_1(%arg0: i32) -> (i32, i32) {
    %c0_i32 = arith.constant 0 : i32
    %c0_i32_0 = arith.constant 0 : i32
    %c0_i32_1 = arith.constant 0 : i32
    return %c0_i32, %c0_i32_0 : i32, i32
  }
  func.func @transform_2(%arg0: i32) -> (i32, i32) {
    %c0_i32 = arith.constant 0 : i32
    %c0_i32_0 = arith.constant 0 : i32
    %c0_i32_1 = arith.constant 0 : i32
    return %c0_i32, %c0_i32_0 : i32, i32
  }
  func.func @transform_3(%arg0: i32) -> (i32, i32) {
    %c0_i32 = arith.constant 0 : i32
    %c0_i32_0 = arith.constant 0 : i32
    %c0_i32_1 = arith.constant 0 : i32
    return %c0_i32, %c0_i32_0 : i32, i32
  }
  func.func @transform_4(%arg0: i32) -> (i32, i32) {
    %c0_i32 = arith.constant 0 : i32
    %c0_i32_0 = arith.constant 0 : i32
    %c0_i32_1 = arith.constant 0 : i32
    return %c0_i32, %c0_i32_0 : i32, i32
  }
  func.func @transform_5(%arg0: i32) -> (i32, i32) {
    %c0_i32 = arith.constant 0 : i32
    %c0_i32_0 = arith.constant 0 : i32
    %c0_i32_1 = arith.constant 0 : i32
    return %c0_i32, %c0_i32_0 : i32, i32
  }
  func.func @transform_6(%arg0: i32) -> (i32, i32) {
    %c0_i32 = arith.constant 0 : i32
    %c0_i32_0 = arith.constant 0 : i32
    %c0_i32_1 = arith.constant 0 : i32
    return %c0_i32, %c0_i32_0 : i32, i32
  }
  func.func @transform_7(%arg0: i32) -> (i32, i32) {
    %c0_i32 = arith.constant 0 : i32
    %c0_i32_0 = arith.constant 0 : i32
    return %arg0, %c0_i32 : i32, i32
  }
}

</mosaic_0001>

<bundles_post_ra>
// kernel: offset_decoder_forward.9
= control target key start
LH: loop header
LB: loop body
LE: loop exit
PB: predicated region body
PF: predicated region fallthrough
CT: control target
= control target key end

     0   :  { %8 = vsyncpa [#allocation3], 0  ;;  %s573_s0 = inlined_call_operand.hbm [shape: s32[64,128], index: 0, kind: input, shape index: {}]   ;;  %s574_s1 = inlined_call_operand.hbm [shape: bf16[128,32], index: 1, kind: input, shape index: {}]   ;;  %s575_s2 = inlined_call_operand.hbm [shape: f32[1,32], index: 2, kind: input, shape index: {}]   ;;  %s576_s3 = inlined_call_operand.hbm [shape: bf16[64,32], index: 3, kind: output, shape index: {}]  }
   0x1   :  { %9 = vsyncpa [#allocation6], 0 }
   0x2   :  { %10 = vsyncpa [#allocation4], 0  ;;  %s482_s12 = smov [#allocation5]   ;;  %s388_s16 = scalar_lea.hbm %s574_s1, 1024 }
   0x3   :  { %s28_s13 = sshll.u32 %s482_s12, 4  ;;  %p389_p0 = scmp.ne.s32.totalorder %s574_s1, %s388_s16  ;;  %s29_s13 = int_to_ptr.vmem [resolvable:$true] %s28_s13 }
   0x4   :  { %p392_p1 = scmp.lt.u32.totalorder %s388_s16, %s574_s1 }
   0x6   :  { %p394_p2 = pnand %p392_p1, %p389_p0 }
   0x8   :  { %397 = shalt.err (!%p394_p2)
}
   0x9   :  { %s398_s21 = scalar_lea.vmem %s29_s13, 1024  ;;  %p403_p4 = scmp.lt.s32.totalorder %s29_s13, %s29_s13 }
   0xa   :  { %p399_p3 = scmp.ne.s32.totalorder %s29_s13, %s398_s21  ;;  %p404_p5 = scmp.lt.s32.totalorder %s398_s21, %s398_s21 }
   0xc   :  { %p405_p6 = por %p404_p5, %p403_p4 }
   0xe   :  { %p406_p7 = pnand %p405_p6, %p399_p3 }
  0x10   :  { %409 = shalt.err (!%p406_p7)
}
  0x11   :  { %s483_s22 = smov 64   ;;  %s484_s23 = smov 4  }
  0x12   :  { %34 = dma.hbm_to_vmem [thread:$0]  %s574_s1, 1024, %s29_s13, [#allocation6], %s483_s22, %s483_s22, %s484_s23  }
  0x13   :  { %s485_s26 = smov [#allocation2]   ;;  %s410_s30 = scalar_lea.hbm %s573_s0, 1024 }
  0x14   :  { %s16_s27 = sshll.u32 %s485_s26, 4  ;;  %p411_p8 = scmp.ne.s32.totalorder %s573_s0, %s410_s30  ;;  %s17_s27 = int_to_ptr.vmem [resolvable:$true] %s16_s27 }
  0x15   :  { %p414_p9 = scmp.lt.u32.totalorder %s410_s30, %s573_s0 }
  0x17   :  { %p416_p10 = pnand %p414_p9, %p411_p8 }
  0x19   :  { %419 = shalt.err (!%p416_p10)
}
  0x1a   :  { %s420_s8 = scalar_lea.vmem %s17_s27, 1024  ;;  %p425_p12 = scmp.lt.s32.totalorder %s17_s27, %s17_s27 }
  0x1b   :  { %p421_p11 = scmp.ne.s32.totalorder %s17_s27, %s420_s8  ;;  %p426_p13 = scmp.lt.s32.totalorder %s420_s8, %s420_s8 }
  0x1d   :  { %p427_p0 = por %p426_p13, %p425_p12 }
  0x1f   :  { %p428_p1 = pnand %p427_p0, %p421_p11 }
  0x21   :  { %431 = shalt.err (!%p428_p1)
}
  0x22   :  { %s486_s1 = smov 128   ;;  %s487_s9 = smov 8  }
  0x23   :  { %22 = dma.hbm_to_vmem [thread:$0]  %s573_s0, 1024, %s17_s27, [#allocation3], %s486_s1, %s486_s1, %s487_s9  }
  0x24   :  { %s488_s12 = smov [#allocation7]   ;;  %s432_s16 = scalar_lea.hbm %s575_s2, 16 }
  0x25   :  { %s41_s13 = sshll.u32 %s488_s12, 4  ;;  %p433_p2 = scmp.ne.s32.totalorder %s575_s2, %s432_s16  ;;  %s42_s13 = int_to_ptr.vmem [resolvable:$true] %s41_s13 }
  0x26   :  { %p436_p3 = scmp.lt.u32.totalorder %s432_s16, %s575_s2 }
  0x28   :  { %p438_p4 = pnand %p436_p3, %p433_p2 }
  0x2a   :  { %441 = shalt.err (!%p438_p4)
}
  0x2b   :  { %s442_s21 = scalar_lea.vmem %s42_s13, 16  ;;  %s446_s0 = scalar_lea.vmem %s42_s13, 32 }
  0x2c   :  { %p443_p5 = scmp.ne.s32.totalorder %s42_s13, %s442_s21  ;;  %p447_p6 = scmp.lt.s32.totalorder %s42_s13, %s42_s13 }
  0x2d   :  { %p448_p7 = scmp.lt.s32.totalorder %s446_s0, %s442_s21 }
  0x2f   :  { %p449_p8 = por %p448_p7, %p447_p6 }
  0x31   :  { %p450_p9 = pnand %p449_p8, %p443_p5 }
  0x33   :  { %453 = shalt.err (!%p450_p9)
}
  0x34   :  { %44 = dma.hbm_to_vmem [thread:$0]  %s575_s2, 16, %s42_s13, [#allocation6]  }
  0x35   :  { %476 = dma.done.wait [#allocation3], 1024  }
  0x36   :  { %477 = vsyncadd [#allocation3], 4294966272 }
  0x37   :  { %478 = dma.done.wait [#allocation6], 1040  }
  0x38   :  { %479 = vsyncadd [#allocation6], 4294966256  ;;  %v380_v0 = vld [vmem:[#allocation5] sm:$0xff]   ;;  %v381_v1 = vld [vmem:[#allocation5 + $0x8] sm:$0xff]   ;;  %v489_v9 = vmov 1.0|1.0  }
  0x39   :  { %331 = vmatprep.subr.bf16.mxu0 %v380_v0  ;;  %355 = vmatprep.subr.bf16.mxu1 %v380_v0  ;;  %v382_v2 = vld [vmem:[#allocation5 + $0x10] sm:$0xff]   ;;  %v383_v3 = vld [vmem:[#allocation5 + $0x18] sm:$0xff]   ;;  %v55_v4 = vld [vmem:[#allocation2] sm:$0xff]  ;;  %vm259_vm12 = vcmask 257024   ;;  %s490_s2 = smov [#allocation8]  }
  0x3a   :  { %332 = vmatpush3.bf16.msra.mxu0 %v380_v0  ;;  %363 = vmatpush3.bf16.msra.mxu1 %v380_v0  ;;  %v56_v5 = vld [vmem:[#allocation2 + $0x8] sm:$0xff]  ;;  %v59_v6 = vld [vmem:[#allocation2 + $0x20] sm:$0xff]  ;;  %vm63_vm0 = vcmp.ne.s32.totalorder %v55_v4, 64  ;;  %v386_v11 = vld [vmem:[#allocation5 + $0x30] sm:$0xff]   ;;  %s273_s26 = sshll.u32 %s490_s2, 4  ;;  %s274_s26 = int_to_ptr.vmem [resolvable:$true] %s273_s26 }
  0x3b   :  { %333 = vmatprep.subr.bf16.mxu0 %v381_v1  ;;  %356 = vmatprep.subr.bf16.mxu1 %v381_v1  ;;  %vm64_vm1 = vcmp.ne.s32.totalorder %v56_v5, 64  ;;  %v60_v7 = vld [vmem:[#allocation2 + $0x28] sm:$0xff]  ;;  %vm67_vm2 = vcmp.ne.s32.totalorder %v59_v6, 64  ;;  %v384_v8 = vld [vmem:[#allocation5 + $0x20] sm:$0xff]   ;;  %v387_v12 = vld [vmem:[#allocation5 + $0x38] sm:$0xff]   ;;  %s454_s27 = scalar_lea.vmem %s274_s26, 512  ;;  %p459_p11 = scmp.lt.s32.totalorder %s274_s26, %s274_s26 }
  0x3c   :  { %vm295_vm3 = vmpackc.low %vm64_vm1, %vm63_vm0  ;;  %vm68_vm4 = vcmp.ne.s32.totalorder %v60_v7, 64  ;;  %v385_v10 = vld [vmem:[#allocation5 + $0x28] sm:$0xff]   ;;  %v57_v13 = vld [vmem:[#allocation2 + $0x10] sm:$0xff]  ;;  %p455_p10 = scmp.ne.s32.totalorder %s274_s26, %s454_s27  ;;  %p460_p12 = scmp.lt.s32.totalorder %s454_s27, %s454_s27 }
  0x3d   :  { %vm299_vm5 = vmpackc.low %vm68_vm4, %vm67_vm2  ;;  %347 = vmatprep.mubr.msk.bf16.mxu0 %vm295_vm3, %v489_v9  ;;  %v58_v14 = vld [vmem:[#allocation2 + $0x18] sm:$0xff]  ;;  %v61_v15 = vld [vmem:[#allocation2 + $0x30] sm:$0xff]  ;;  %vm65_vm6 = vcmp.ne.s32.totalorder %v57_v13, 64 }
  0x3e   :  { %334 = vmatpush3.bf16.msra.mxu0 %v381_v1  ;;  %364 = vmatpush3.bf16.msra.mxu1 %v381_v1  ;;  %v62_v16 = vld [vmem:[#allocation2 + $0x38] sm:$0xff]  ;;  %vm66_vm7 = vcmp.ne.s32.totalorder %v58_v14, 64  ;;  %vm69_vm8 = vcmp.ne.s32.totalorder %v61_v15, 64  ;;  %v286_v17 = vld [vmem:[#allocation7] ss:$0 sm:$0xff]  ;;  %p461_p13 = por %p460_p12, %p459_p11 }
  0x3f   :  { %335 = vmatprep.subr.bf16.mxu0 %v382_v2  ;;  %357 = vmatprep.subr.bf16.mxu1 %v382_v2  ;;  %vm70_vm9 = vcmp.ne.s32.totalorder %v62_v16, 64  ;;  %vm297_vm10 = vmpackc.low %vm66_vm7, %vm65_vm6 }
  0x40   :  { %351 = vmatprep.mubr.msk.bf16.mxu1 %vm299_vm5, %v489_v9  ;;  %vm301_vm11 = vmpackc.low %vm70_vm9, %vm69_vm8  ;;  %p462_p0 = pnand %p461_p13, %p455_p10 }
  0x42   :  { %336 = vmatpush3.bf16.msra.mxu0 %v382_v2  ;;  %365 = vmatpush3.bf16.msra.mxu1 %v382_v2 }
  0x43   :  { %337 = vmatprep.subr.bf16.mxu0 %v383_v3  ;;  %358 = vmatprep.subr.bf16.mxu1 %v383_v3 }
  0x46   :  { %338 = vmatpush3.bf16.msra.mxu0 %v383_v3  ;;  %366 = vmatpush3.bf16.msra.mxu1 %v383_v3 }
  0x47   :  { %339 = vmatprep.subr.bf16.mxu0 %v384_v8  ;;  %359 = vmatprep.subr.bf16.mxu1 %v384_v8 }
  0x4a   :  { %340 = vmatpush3.bf16.msra.mxu0 %v384_v8  ;;  %367 = vmatpush3.bf16.msra.mxu1 %v384_v8 }
  0x4b   :  { %341 = vmatprep.subr.bf16.mxu0 %v385_v10  ;;  %360 = vmatprep.subr.bf16.mxu1 %v385_v10 }
  0x4e   :  { %342 = vmatpush3.bf16.msra.mxu0 %v385_v10  ;;  %368 = vmatpush3.bf16.msra.mxu1 %v385_v10 }
  0x4f   :  { %343 = vmatprep.subr.bf16.mxu0 %v386_v11  ;;  %361 = vmatprep.subr.bf16.mxu1 %v386_v11 }
  0x52   :  { %344 = vmatpush3.bf16.msra.mxu0 %v386_v11  ;;  %369 = vmatpush3.bf16.msra.mxu1 %v386_v11 }
  0x53   :  { %345 = vmatprep.subr.bf16.mxu0 %v387_v12  ;;  %362 = vmatprep.subr.bf16.mxu1 %v387_v12 }
  0x56   :  { %346 = vmatpush3.bf16.msra.mxu0 %v387_v12  ;;  %370 = vmatpush3.bf16.msra.mxu1 %v387_v12 }
  0x59   :  { %348 = vmatmul.mubr.msk.bf16.vlgmr.msra.gmra.mrb[0].mxu0 %vm297_vm10, %v489_v9  ;;  %352 = vmatmul.mubr.msk.bf16.vlgmr.msra.gmra.mrb[0].mxu1 %vm301_vm11, %v489_v9 }
 0x12c   :  { %v349_v18 = vpop.f32.mrb[0].mxu0  ;;  %v353_v19 = vpop.f32.mrb[0].mxu1 }
 0x12d   :  { %v197_v20 = vadd.f32 %v349_v18, %v286_v17  ;;  %v213_v21 = vadd.f32 %v353_v19, %v286_v17  ;;  %v188_v22 = vpop.f32.mrb[1].mxu0  ;;  %v204_v23 = vpop.f32.mrb[1].mxu1 }
 0x12e   :  { %v189_v24 = vadd.f32 %v286_v17, %v188_v22  ;;  %v205_v25 = vadd.f32 %v286_v17, %v204_v23  ;;  %v350_v26 = vpop.f32.mrb[2].mxu0  ;;  %v354_v27 = vpop.f32.mrb[2].mxu1 }
 0x12f   :  { %v221_v28 = vmax.f32 %v197_v20, 0.0  ;;  %v225_v29 = vmax.f32 %v213_v21, 0.0  ;;  %v200_v30 = vadd.f32 %v350_v26, %v286_v17  ;;  %v216_v31 = vadd.f32 %v354_v27, %v286_v17  ;;  %v191_v32 = vpop.f32.mrb[3].mxu0  ;;  %v207_v33 = vpop.f32.mrb[3].mxu1 }
 0x130   :  { %v219_v34 = vmax.f32 %v189_v24, 0.0  ;;  %v223_v35 = vmax.f32 %v205_v25, 0.0  ;;  %v192_v36 = vadd.f32 %v286_v17, %v191_v32  ;;  %v208_v37 = vadd.f32 %v286_v17, %v207_v33 }
 0x131   :  { %v313_v38 = vpack.c.bf16 %v221_v28, %v221_v28  ;;  %v317_v39 = vpack.c.bf16 %v225_v29, %v225_v29  ;;  %v222_v40 = vmax.f32 %v200_v30, 0.0  ;;  %v226_v41 = vmax.f32 %v216_v31, 0.0 }
 0x132   :  { %v311_v42 = vpack.c.bf16 %v219_v34, %v219_v34  ;;  %v315_v43 = vpack.c.bf16 %v223_v35, %v223_v35  ;;  %v220_v44 = vmax.f32 %v192_v36, 0.0  ;;  %v224_v45 = vmax.f32 %v208_v37, 0.0 }
 0x133   :  { %262 = vst.msk [vmem:[#allocation8 + $0x8] sm:$0xf] %vm259_vm12, %v313_v38  ;;  %266 = vst.msk [vmem:[#allocation8 + $0x18] sm:$0xf] %vm259_vm12, %v317_v39  ;;  %v314_v46 = vpack.c.bf16 %v222_v40, %v222_v40  ;;  %v318_v47 = vpack.c.bf16 %v226_v41, %v226_v41 }
 0x134   :  { %260 = vst.msk [vmem:[#allocation8] sm:$0xf] %vm259_vm12, %v311_v42  ;;  %264 = vst.msk [vmem:[#allocation8 + $0x10] sm:$0xf] %vm259_vm12, %v315_v43  ;;  %v312_v48 = vpack.c.bf16 %v220_v44, %v220_v44  ;;  %v316_v49 = vpack.c.bf16 %v224_v45, %v224_v45 }
 0x135   :  { %263 = vst.msk [vmem:[#allocation8 + $0xc] sm:$0xf] %vm259_vm12, %v314_v46  ;;  %267 = vst.msk [vmem:[#allocation8 + $0x1c] sm:$0xf] %vm259_vm12, %v318_v47 }
 0x136   :  { %261 = vst.msk [vmem:[#allocation8 + $0x4] sm:$0xf] %vm259_vm12, %v312_v48  ;;  %265 = vst.msk [vmem:[#allocation8 + $0x14] sm:$0xf] %vm259_vm12, %v316_v49 }
 0x137   :  { %465 = shalt.err (!%p462_p0)
}
 0x138   :  { %s466_s30 = scalar_lea.hbm %s576_s3, 512 }
 0x139   :  { %p467_p1 = scmp.ne.s32.totalorder %s576_s3, %s466_s30  ;;  %p470_p2 = scmp.lt.u32.totalorder %s466_s30, %s576_s3 }
 0x13b   :  { %p472_p3 = pnand %p470_p2, %p467_p1 }
 0x13d   :  { %475 = shalt.err (!%p472_p3)
}
 0x13e   :  { %279 = dma.vmem_to_hbm [thread:$0]  %s274_s26, 512, %s576_s3, [#allocation4], %s483_s22, %s483_s22, %s484_s23  }
 0x13f   :  { %480 = dma.done.wait [#allocation4], 512  }
 0x140   :  { %481 = vsyncadd [#allocation4], 4294966784 }
 0x141   :  { %283 = vsyncpa [#allocation3], 1 }
 0x142   :  { %284 = vsyncpa [#allocation6], 1 }
 0x143   :  { %285 = vsyncpa [#allocation4], 1 }

// kernel: offset_decoder_forward.10
= control target key start
LH: loop header
LB: loop body
LE: loop exit
PB: predicated region body
PF: predicated region fallthrough
CT: control target
= control target key end

     0   :  { %8 = vsyncpa [#allocation3], 0  ;;  %s1564_s0 = inlined_call_operand.hbm [shape: bf16[64,864], index: 0, kind: input, shape index: {}]   ;;  %s1565_s1 = inlined_call_operand.hbm [shape: bf16[864,32], index: 1, kind: input, shape index: {}]   ;;  %s1566_s2 = inlined_call_operand.hbm [shape: f32[1,32], index: 2, kind: input, shape index: {}]   ;;  %s1567_s3 = inlined_call_operand.hbm [shape: bf16[64,32], index: 3, kind: output, shape index: {}]  }
   0x1   :  { %9 = vsyncpa [#allocation6], 0 }
   0x2   :  { %10 = vsyncpa [#allocation4], 0  ;;  %s1455_s12 = smov [#allocation5]   ;;  %s1361_s16 = scalar_lea.hbm %s1565_s1, 6912 }
   0x3   :  { %s28_s13 = sshll.u32 %s1455_s12, 4  ;;  %p1362_p0 = scmp.ne.s32.totalorder %s1565_s1, %s1361_s16  ;;  %s29_s13 = int_to_ptr.vmem [resolvable:$true] %s28_s13 }
   0x4   :  { %p1365_p1 = scmp.lt.u32.totalorder %s1361_s16, %s1565_s1 }
   0x6   :  { %p1367_p2 = pnand %p1365_p1, %p1362_p0 }
   0x8   :  { %1370 = shalt.err (!%p1367_p2)
}
   0x9   :  { %s1371_s21 = scalar_lea.vmem %s29_s13, 6912  ;;  %p1376_p4 = scmp.lt.s32.totalorder %s29_s13, %s29_s13 }
   0xa   :  { %p1372_p3 = scmp.ne.s32.totalorder %s29_s13, %s1371_s21  ;;  %p1377_p5 = scmp.lt.s32.totalorder %s1371_s21, %s1371_s21 }
   0xc   :  { %p1378_p6 = por %p1377_p5, %p1376_p4 }
   0xe   :  { %p1379_p7 = pnand %p1378_p6, %p1372_p3 }
  0x10   :  { %1382 = shalt.err (!%p1379_p7)
}
  0x11   :  { %s1456_s22 = smov 64   ;;  %s1457_s23 = smov 4  }
  0x12   :  { %34 = dma.hbm_to_vmem [thread:$0]  %s1565_s1, 6912, %s29_s13, [#allocation6], %s1456_s22, %s1456_s22, %s1457_s23  }
  0x13   :  { %s1458_s26 = smov [#allocation2]   ;;  %s1383_s30 = scalar_lea.hbm %s1564_s0, 3584 }
  0x14   :  { %s16_s27 = sshll.u32 %s1458_s26, 4  ;;  %p1384_p8 = scmp.ne.s32.totalorder %s1564_s0, %s1383_s30  ;;  %s17_s27 = int_to_ptr.vmem [resolvable:$true] %s16_s27 }
  0x15   :  { %p1387_p9 = scmp.lt.u32.totalorder %s1383_s30, %s1564_s0 }
  0x17   :  { %p1389_p10 = pnand %p1387_p9, %p1384_p8 }
  0x19   :  { %1392 = shalt.err (!%p1389_p10)
}
  0x1a   :  { %s1393_s8 = scalar_lea.vmem %s17_s27, 3584  ;;  %p1398_p12 = scmp.lt.s32.totalorder %s17_s27, %s17_s27 }
  0x1b   :  { %p1394_p11 = scmp.ne.s32.totalorder %s17_s27, %s1393_s8  ;;  %p1399_p13 = scmp.lt.s32.totalorder %s1393_s8, %s1393_s8 }
  0x1d   :  { %p1400_p0 = por %p1399_p13, %p1398_p12 }
  0x1f   :  { %p1401_p1 = pnand %p1400_p0, %p1394_p11 }
  0x21   :  { %1404 = shalt.err (!%p1401_p1)
}
  0x22   :  { %s1459_s1 = smov 448   ;;  %s1460_s9 = smov 28  }
  0x23   :  { %22 = dma.hbm_to_vmem [thread:$0]  %s1564_s0, 3584, %s17_s27, [#allocation3], %s1459_s1, %s1459_s1, %s1460_s9  }
  0x24   :  { %s1461_s12 = smov [#allocation7]   ;;  %s1405_s16 = scalar_lea.hbm %s1566_s2, 16 }
  0x25   :  { %s41_s13 = sshll.u32 %s1461_s12, 4  ;;  %p1406_p2 = scmp.ne.s32.totalorder %s1566_s2, %s1405_s16  ;;  %s42_s13 = int_to_ptr.vmem [resolvable:$true] %s41_s13 }
  0x26   :  { %p1409_p3 = scmp.lt.u32.totalorder %s1405_s16, %s1566_s2 }
  0x28   :  { %p1411_p4 = pnand %p1409_p3, %p1406_p2 }
  0x2a   :  { %1414 = shalt.err (!%p1411_p4)
}
  0x2b   :  { %s1415_s21 = scalar_lea.vmem %s42_s13, 16  ;;  %s1419_s0 = scalar_lea.vmem %s42_s13, 32 }
  0x2c   :  { %p1416_p5 = scmp.ne.s32.totalorder %s42_s13, %s1415_s21  ;;  %p1420_p6 = scmp.lt.s32.totalorder %s42_s13, %s42_s13 }
  0x2d   :  { %p1421_p7 = scmp.lt.s32.totalorder %s1419_s0, %s1415_s21 }
  0x2f   :  { %p1422_p8 = por %p1421_p7, %p1420_p6 }
  0x31   :  { %p1423_p9 = pnand %p1422_p8, %p1416_p5 }
  0x33   :  { %1426 = shalt.err (!%p1423_p9)
}
  0x34   :  { %44 = dma.hbm_to_vmem [thread:$0]  %s1566_s2, 16, %s42_s13, [#allocation6]  }
  0x35   :  { %1449 = dma.done.wait [#allocation3], 3584  }
  0x36   :  { %1450 = vsyncadd [#allocation3], 4294963712 }
  0x37   :  { %1451 = dma.done.wait [#allocation6], 6928  }
  0x38   :  { %1452 = vsyncadd [#allocation6], 4294960368  ;;  %v1267_v0 = vld [vmem:[#allocation5 + $0x40] sm:$0xff]   ;;  %v1271_v4 = vld [vmem:[#allocation5 + $0x48] sm:$0xff]   ;;  %vm666_vm0 = vcmask 785408   ;;  %vm979_vm1 = vcmask 257024  }
  0x39   :  { %v1268_v1 = vld [vmem:[#allocation5] sm:$0xff]   ;;  %1109 = vmatprep.subr.bf16.mxu0 %v1267_v0  ;;  %v1272_v5 = vld [vmem:[#allocation5 + $0x8] sm:$0xff]   ;;  %v1275_v8 = vld [vmem:[#allocation5 + $0x50] sm:$0xff]   ;;  %s1462_s2 = smov [#allocation8]  }
  0x3a   :  { %v1269_v2 = vld [vmem:[#allocation5 + $0xc0] sm:$0xff]   ;;  %1110 = vmatpush3.bf16.msra.mxu0 %v1268_v1  ;;  %v1273_v6 = vld [vmem:[#allocation5 + $0xc8] sm:$0xff]   ;;  %v1276_v9 = vld [vmem:[#allocation5 + $0x10] sm:$0xff]   ;;  %s993_s26 = sshll.u32 %s1462_s2, 4  ;;  %s994_s26 = int_to_ptr.vmem [resolvable:$true] %s993_s26 }
  0x3b   :  { %v1270_v3 = vld [vmem:[#allocation5 + $0x80] sm:$0xff]   ;;  %1149 = vmatprep.subr.bf16.mxu1 %v1269_v2  ;;  %1111 = vmatprep.subr.bf16.mxu0 %v1271_v4  ;;  %v1274_v7 = vld [vmem:[#allocation5 + $0x88] sm:$0xff]   ;;  %v1277_v10 = vld [vmem:[#allocation5 + $0xd0] sm:$0xff]   ;;  %s1427_s27 = scalar_lea.vmem %s994_s26, 512  ;;  %p1432_p11 = scmp.lt.s32.totalorder %s994_s26, %s994_s26 }
  0x3c   :  { %1150 = vmatpush3.bf16.msra.mxu1 %v1270_v3  ;;  %v1278_v11 = vld [vmem:[#allocation5 + $0x90] sm:$0xff]   ;;  %v1279_v12 = vld [vmem:[#allocation5 + $0x58] sm:$0xff]   ;;  %v1283_v16 = vld [vmem:[#allocation5 + $0x60] sm:$0xff]   ;;  %p1428_p10 = scmp.ne.s32.totalorder %s994_s26, %s1427_s27  ;;  %p1433_p12 = scmp.lt.s32.totalorder %s1427_s27, %s1427_s27 }
  0x3d   :  { %1151 = vmatprep.subr.bf16.mxu1 %v1273_v6  ;;  %v1280_v13 = vld [vmem:[#allocation5 + $0x18] sm:$0xff]   ;;  %v1284_v17 = vld [vmem:[#allocation5 + $0x20] sm:$0xff]   ;;  %v1287_v20 = vld [vmem:[#allocation5 + $0x68] sm:$0xff]  }
  0x3e   :  { %1112 = vmatpush3.bf16.msra.mxu0 %v1272_v5  ;;  %v1281_v14 = vld [vmem:[#allocation5 + $0xd8] sm:$0xff]   ;;  %v1285_v18 = vld [vmem:[#allocation5 + $0xe0] sm:$0xff]   ;;  %v1288_v21 = vld [vmem:[#allocation5 + $0x28] sm:$0xff]   ;;  %p1434_p13 = por %p1433_p12, %p1432_p11 }
  0x3f   :  { %1113 = vmatprep.subr.bf16.mxu0 %v1275_v8  ;;  %v1282_v15 = vld [vmem:[#allocation5 + $0x98] sm:$0xff]   ;;  %v1286_v19 = vld [vmem:[#allocation5 + $0xa0] sm:$0xff]   ;;  %v1289_v22 = vld [vmem:[#allocation5 + $0xe8] sm:$0xff]  }
  0x40   :  { %1152 = vmatpush3.bf16.msra.mxu1 %v1274_v7  ;;  %v1290_v23 = vld [vmem:[#allocation5 + $0xa8] sm:$0xff]   ;;  %v1291_v24 = vld [vmem:[#allocation5 + $0x70] sm:$0xff]   ;;  %v1295_v28 = vld [vmem:[#allocation5 + $0x78] sm:$0xff]   ;;  %p1435_p0 = pnand %p1434_p13, %p1428_p10 }
  0x41   :  { %1153 = vmatprep.subr.bf16.mxu1 %v1277_v10  ;;  %v1292_v25 = vld [vmem:[#allocation5 + $0x30] sm:$0xff]   ;;  %v1296_v29 = vld [vmem:[#allocation5 + $0x38] sm:$0xff]   ;;  %v1300_v32 = vld [vmem:[#allocation2 + $0x4] ss:$28 sps:$4 sm:$0xff]  }
  0x42   :  { %1114 = vmatpush3.bf16.msra.mxu0 %v1276_v9  ;;  %v1293_v26 = vld [vmem:[#allocation5 + $0xf0] sm:$0xff]   ;;  %v1297_v30 = vld [vmem:[#allocation5 + $0xf8] sm:$0xff]   ;;  %711 = vmatprep.mubr.bf16.mxu0 %v1300_v32  ;;  %v1302_v34 = vld [vmem:[#allocation5 + $0x140] sm:$0xff]  }
  0x43   :  { %1115 = vmatprep.subr.bf16.mxu0 %v1279_v12  ;;  %v1294_v27 = vld [vmem:[#allocation5 + $0xb0] sm:$0xff]   ;;  %v1298_v31 = vld [vmem:[#allocation2] ss:$28 sps:$4 sm:$0xff]   ;;  %v1303_v35 = vld [vmem:[#allocation2 + $0x8] ss:$28 sps:$4 sm:$0xff]  }
  0x44   :  { %1154 = vmatpush3.bf16.msra.mxu1 %v1278_v11  ;;  %v1301_v33 = vld [vmem:[#allocation5 + $0xb8] sm:$0xff]   ;;  %v1305_v36 = vld [vmem:[#allocation2 + $0xc] ss:$28 sps:$4 sm:$0xff]   ;;  %v1306_v37 = vld [vmem:[#allocation5 + $0x100] sm:$0xff]  }
  0x45   :  { %1155 = vmatprep.subr.bf16.mxu1 %v1281_v14  ;;  %776 = vmatprep.mubr.bf16.mxu1 %v1305_v36  ;;  %v1307_v38 = vld [vmem:[#allocation5 + $0x148] sm:$0xff]   ;;  %v1309_v40 = vld [vmem:[#allocation2 + $0x3c] ss:$28 sps:$4 sm:$0xff]   ;;  %v1312_v42 = vld [vmem:[#allocation5 + $0x150] sm:$0xff]  }
  0x46   :  { %1116 = vmatpush3.bf16.msra.mxu0 %v1280_v13  ;;  %v1308_v39 = vld [vmem:[#allocation5 + $0x108] sm:$0xff]   ;;  %v1311_v41 = vld [vmem:[#allocation2 + $0x38] ss:$28 sps:$4 sm:$0xff]   ;;  %v1313_v43 = vld [vmem:[#allocation2 + $0x44] ss:$28 sps:$4 sm:$0xff]  }
  0x47   :  { %1117 = vmatprep.subr.bf16.mxu0 %v1283_v16  ;;  %v1315_v44 = vld [vmem:[#allocation5 + $0x110] sm:$0xff]   ;;  %v1316_v45 = vld [vmem:[#allocation2 + $0x40] ss:$28 sps:$4 sm:$0xff]   ;;  %v1324_v52 = vld [vmem:[#allocation5 + $0x188] sm:$0xff]  }
  0x48   :  { %1156 = vmatpush3.bf16.msra.mxu1 %v1282_v15  ;;  %v1317_v46 = vld [vmem:[#allocation5 + $0x158] sm:$0xff]   ;;  %v1318_v47 = vld [vmem:[#allocation5 + $0x180] sm:$0xff]   ;;  %v1320_v49 = vld [vmem:[#allocation2 + $0x74] ss:$28 sps:$4 sm:$0xff]  }
  0x49   :  { %1157 = vmatprep.subr.bf16.mxu1 %v1285_v18  ;;  %v1319_v48 = vld [vmem:[#allocation5 + $0x118] sm:$0xff]   ;;  %v1322_v50 = vld [vmem:[#allocation2 + $0x70] ss:$28 sps:$4 sm:$0xff]   ;;  %v1323_v51 = vld [vmem:[#allocation5 + $0x160] sm:$0xff]  }
  0x4a   :  { %1118 = vmatpush3.bf16.msra.mxu0 %v1284_v17  ;;  %v1325_v53 = vld [vmem:[#allocation2 + $0x7c] ss:$28 sps:$4 sm:$0xff]   ;;  %v1327_v54 = vld [vmem:[#allocation5 + $0x120] sm:$0xff]   ;;  %v1329_v56 = vld [vmem:[#allocation5 + $0x168] sm:$0xff]  }
  0x4b   :  { %1119 = vmatprep.subr.bf16.mxu0 %v1287_v20  ;;  %v1328_v55 = vld [vmem:[#allocation2 + $0x78] ss:$28 sps:$4 sm:$0xff]   ;;  %v1331_v58 = vld [vmem:[#allocation5 + $0x128] sm:$0xff]   ;;  %v1342_v3 = vld [vmem:[#allocation5 + $0x1a0] sm:$0xff]  }
  0x4c   :  { %1158 = vmatpush3.bf16.msra.mxu1 %v1286_v19  ;;  %v1330_v57 = vld [vmem:[#allocation5 + $0x190] sm:$0xff]   ;;  %v1332_v59 = vld [vmem:[#allocation2 + $0xac] ss:$28 sps:$4 sm:$0xff]   ;;  %v1336_v62 = vld [vmem:[#allocation5 + $0x198] sm:$0xff]  }
  0x4d   :  { %1159 = vmatprep.subr.bf16.mxu1 %v1289_v22  ;;  %v1334_v60 = vld [vmem:[#allocation2 + $0xa8] ss:$28 sps:$4 sm:$0xff]   ;;  %v1335_v61 = vld [vmem:[#allocation5 + $0x170] sm:$0xff]   ;;  %v1341_v2 = vld [vmem:[#allocation5 + $0x178] sm:$0xff]  }
  0x4e   :  { %1120 = vmatpush3.bf16.msra.mxu0 %v1288_v21  ;;  %v1337_v63 = vld [vmem:[#allocation2 + $0xb4] ss:$28 sps:$4 sm:$0xff]   ;;  %v1343_v4 = vld [vmem:[#allocation5 + $0x138] sm:$0xff]   ;;  %v1347_v7 = vld [vmem:[#allocation5 + $0x1a8] sm:$0xff]  }
  0x4f   :  { %1121 = vmatprep.subr.bf16.mxu0 %v1291_v24  ;;  %v1339_v0 = vld [vmem:[#allocation5 + $0x130] sm:$0xff]   ;;  %v1350_v10 = vld [vmem:[#allocation2 + $0x4c] ss:$28 sps:$4 sm:$0xff]   ;;  %v1353_v13 = vld [vmem:[#allocation2 + $0x84] ss:$28 sps:$4 sm:$0xff]  }
  0x50   :  { %1160 = vmatpush3.bf16.msra.mxu1 %v1290_v23  ;;  %v1340_v1 = vld [vmem:[#allocation2 + $0xb0] ss:$28 sps:$4 sm:$0xff]   ;;  %v1348_v8 = vld [vmem:[#allocation2 + $0x18] ss:$28 sps:$4 sm:$0xff]   ;;  %v1356_v11 = vld [vmem:[#allocation2 + $0x88] ss:$28 sps:$4 sm:$0xff]  }
  0x51   :  { %1161 = vmatprep.subr.bf16.mxu1 %v1293_v26  ;;  %v1344_v5 = vld [vmem:[#allocation2 + $0x10] ss:$28 sps:$4 sm:$0xff]   ;;  %v1352_v12 = vld [vmem:[#allocation2 + $0x48] ss:$28 sps:$4 sm:$0xff]   ;;  %v1357_v14 = vld [vmem:[#allocation2 + $0xc0] ss:$28 sps:$4 sm:$0xff]  }
  0x52   :  { %1122 = vmatpush3.bf16.msra.mxu0 %v1292_v25  ;;  %v1346_v6 = vld [vmem:[#allocation2 + $0x14] ss:$28 sps:$4 sm:$0xff]   ;;  %v1355_v15 = vld [vmem:[#allocation2 + $0x80] ss:$28 sps:$4 sm:$0xff]  }
  0x53   :  { %1123 = vmatprep.subr.bf16.mxu0 %v1295_v28  ;;  %v1349_v9 = vld [vmem:[#allocation2 + $0x50] ss:$28 sps:$4 sm:$0xff]   ;;  %v1358_v16 = vld [vmem:[#allocation2 + $0xbc] ss:$28 sps:$4 sm:$0xff]  }
  0x54   :  { %1162 = vmatpush3.bf16.msra.mxu1 %v1294_v27  ;;  %v1360_v17 = vld [vmem:[#allocation2 + $0xb8] ss:$28 sps:$4 sm:$0xff]   ;;  %v1006_v19 = vld [vmem:[#allocation7] ss:$0 sm:$0xff] }
  0x55   :  { %1163 = vmatprep.subr.bf16.mxu1 %v1297_v30 }
  0x56   :  { %1124 = vmatpush3.bf16.msra.mxu0 %v1296_v29 }
  0x57   :  { %1189 = vmatprep.subr.bf16.mxu0 %v1302_v34 }
  0x58   :  { %1164 = vmatpush3.bf16.msra.mxu1 %v1301_v33 }
  0x59   :  { %712 = vmatmul.mubr.bf16.vlgmr.msra.gmra.mrb[0].mxu0 %v1298_v31  ;;  %1239 = vmatprep.subr.bf16.mxu1 %v1318_v47 }
  0x5a   :  { %1190 = vmatpush3.bf16.msra.mxu0 %v1306_v37  ;;  %719 = vmatprep.mubr.bf16.mxu0 %v1309_v40 }
  0x5b   :  { %777 = vmatmul.mubr.bf16.vlgmr.msra.gmra.mrb[0].mxu1 %v1303_v35  ;;  %1191 = vmatprep.subr.bf16.mxu0 %v1307_v38 }
  0x5c   :  { %784 = vmatprep.mubr.bf16.mxu1 %v1313_v43  ;;  %1240 = vmatpush3.bf16.msra.mxu1 %v1318_v47 }
  0x5d   :  { %1241 = vmatprep.subr.bf16.mxu1 %v1324_v52 }
  0x5e   :  { %1192 = vmatpush3.bf16.msra.mxu0 %v1308_v39 }
  0x5f   :  { %1193 = vmatprep.subr.bf16.mxu0 %v1312_v42 }
  0x60   :  { %1242 = vmatpush3.bf16.msra.mxu1 %v1324_v52 }
  0x61   :  { %720 = vmatmul.mubr.bf16.gmra.mrb[4].mxu0 %v1311_v41  ;;  %1243 = vmatprep.subr.bf16.mxu1 %v1330_v57 }
  0x62   :  { %1194 = vmatpush3.bf16.msra.mxu0 %v1315_v44  ;;  %727 = vmatprep.mubr.bf16.mxu0 %v1320_v49 }
  0x63   :  { %785 = vmatmul.mubr.bf16.gmra.mrb[4].mxu1 %v1316_v45  ;;  %1195 = vmatprep.subr.bf16.mxu0 %v1317_v46 }
  0x64   :  { %792 = vmatprep.mubr.bf16.mxu1 %v1325_v53  ;;  %1244 = vmatpush3.bf16.msra.mxu1 %v1330_v57 }
  0x65   :  { %1245 = vmatprep.subr.bf16.mxu1 %v1336_v62 }
  0x66   :  { %1196 = vmatpush3.bf16.msra.mxu0 %v1319_v48 }
  0x67   :  { %1197 = vmatprep.subr.bf16.mxu0 %v1323_v51 }
  0x68   :  { %1246 = vmatpush3.bf16.msra.mxu1 %v1336_v62 }
  0x69   :  { %728 = vmatmul.mubr.bf16.gmra.mrb[8].mxu0 %v1322_v50  ;;  %1247 = vmatprep.subr.bf16.mxu1 %v1342_v3 }
  0x6a   :  { %1198 = vmatpush3.bf16.msra.mxu0 %v1327_v54  ;;  %735 = vmatprep.mubr.bf16.mxu0 %v1332_v59 }
  0x6b   :  { %793 = vmatmul.mubr.bf16.gmra.mrb[8].mxu1 %v1328_v55  ;;  %1199 = vmatprep.subr.bf16.mxu0 %v1329_v56 }
  0x6c   :  { %800 = vmatprep.mubr.bf16.mxu1 %v1337_v63  ;;  %1248 = vmatpush3.bf16.msra.mxu1 %v1342_v3 }
  0x6d   :  { %1249 = vmatprep.subr.bf16.mxu1 %v1347_v7 }
  0x6e   :  { %1200 = vmatpush3.bf16.msra.mxu0 %v1331_v58 }
  0x6f   :  { %1201 = vmatprep.subr.bf16.mxu0 %v1335_v61 }
  0x70   :  { %1250 = vmatpush3.bf16.msra.mxu1 %v1347_v7 }
  0x71   :  { %736 = vmatmul.mubr.bf16.gmra.mrb[12].mxu0 %v1334_v60 }
  0x72   :  { %1202 = vmatpush3.bf16.msra.mxu0 %v1339_v0  ;;  %841 = vmatprep.mubr.bf16.mxu0 %v1346_v6 }
  0x73   :  { %801 = vmatmul.mubr.bf16.gmra.mrb[12].mxu1 %v1340_v1  ;;  %1203 = vmatprep.subr.bf16.mxu0 %v1341_v2 }
  0x74   :  { %1251 = vmatprep.mubr.msk.bf16.mxu1 %vm666_vm0, %v1348_v8 }
  0x76   :  { %1204 = vmatpush3.bf16.msra.mxu0 %v1343_v4 }
  0x79   :  { %842 = vmatmul.mubr.bf16.vlgmr.msra.gmra.mrb[16].mxu0 %v1344_v5 }
  0x7a   :  { %849 = vmatprep.mubr.bf16.mxu0 %v1350_v10 }
  0x7b   :  { %1252 = vmatmul.mubr.msk.bf16.vlgmr.msra.gmra.mrb[16].mxu1 %vm666_vm0, %v1349_v9 }
  0x7c   :  { %1255 = vmatprep.mubr.msk.bf16.mxu1 %vm666_vm0, %v1356_v11 }
  0x81   :  { %850 = vmatmul.mubr.bf16.gmra.mrb[20].mxu0 %v1352_v12 }
  0x82   :  { %857 = vmatprep.mubr.bf16.mxu0 %v1353_v13 }
  0x83   :  { %1256 = vmatmul.mubr.msk.bf16.gmra.mrb[20].mxu1 %vm666_vm0, %v1357_v14 }
  0x89   :  { %858 = vmatmul.mubr.bf16.gmra.mrb[24].mxu0 %v1355_v15 }
  0x8a   :  { %865 = vmatprep.mubr.bf16.mxu0 %v1358_v16 }
  0x91   :  { %866 = vmatmul.mubr.bf16.gmra.mrb[28].mxu0 %v1360_v17 }
 0x12c   :  { %v1125_v18 = vpop.f32.mrb[0].mxu0 }
 0x12d   :  { %v1126_v20 = vpop.f32.mrb[1].mxu0 }
 0x12e   :  { %v1127_v21 = vadd.f32 %v1126_v20, %v1125_v18  ;;  %v1128_v22 = vpop.f32.mrb[2].mxu0  ;;  %v1165_v23 = vpop.f32.mrb[0].mxu1 }
 0x12f   :  { %v1129_v24 = vpop.f32.mrb[3].mxu0  ;;  %v1166_v27 = vpop.f32.mrb[1].mxu1 }
 0x130   :  { %v714_v25 = vadd.f32 %v1127_v21, %v1006_v19  ;;  %v1130_v26 = vadd.f32 %v1129_v24, %v1128_v22  ;;  %v1167_v28 = vadd.f32 %v1166_v27, %v1165_v23  ;;  %v1168_v29 = vpop.f32.mrb[2].mxu1 }
 0x131   :  { %v1169_v31 = vpop.f32.mrb[3].mxu1 }
 0x132   :  { %v717_v30 = vadd.f32 %v1130_v26, %v1006_v19  ;;  %v779_v32 = vadd.f32 %v1167_v28, %v714_v25  ;;  %v1170_v33 = vadd.f32 %v1169_v31, %v1168_v29 }
 0x134   :  { %v1131_v34 = vpop.f32.mrb[4].mxu0  ;;  %v782_v35 = vadd.f32 %v1170_v33, %v717_v30 }
 0x135   :  { %v1132_v36 = vpop.f32.mrb[5].mxu0 }
 0x136   :  { %v1133_v37 = vadd.f32 %v1132_v36, %v1131_v34  ;;  %v1134_v38 = vpop.f32.mrb[6].mxu0  ;;  %v1171_v39 = vpop.f32.mrb[4].mxu1 }
 0x137   :  { %v1135_v40 = vpop.f32.mrb[7].mxu0  ;;  %v1172_v43 = vpop.f32.mrb[5].mxu1 }
 0x138   :  { %v722_v41 = vadd.f32 %v1133_v37, %v1006_v19  ;;  %v1136_v42 = vadd.f32 %v1135_v40, %v1134_v38  ;;  %v1173_v44 = vadd.f32 %v1172_v43, %v1171_v39  ;;  %v1174_v45 = vpop.f32.mrb[6].mxu1 }
 0x139   :  { %v1175_v47 = vpop.f32.mrb[7].mxu1 }
 0x13a   :  { %v725_v46 = vadd.f32 %v1136_v42, %v1006_v19  ;;  %v787_v48 = vadd.f32 %v1173_v44, %v722_v41  ;;  %v1176_v49 = vadd.f32 %v1175_v47, %v1174_v45 }
 0x13c   :  { %v1137_v50 = vpop.f32.mrb[8].mxu0  ;;  %v1526_v51 = vadd.f32 %v1176_v49, %v725_v46 }
 0x13d   :  { %v1138_v52 = vpop.f32.mrb[9].mxu0 }
 0x13e   :  { %v1139_v53 = vadd.f32 %v1138_v52, %v1137_v50  ;;  %v1140_v54 = vpop.f32.mrb[10].mxu0  ;;  %v1177_v55 = vpop.f32.mrb[8].mxu1 }
 0x13f   :  { %v1141_v56 = vpop.f32.mrb[11].mxu0  ;;  %v1178_v59 = vpop.f32.mrb[9].mxu1 }
 0x140   :  { %v730_v57 = vadd.f32 %v1139_v53, %v1006_v19  ;;  %v1142_v58 = vadd.f32 %v1141_v56, %v1140_v54  ;;  %v1179_v60 = vadd.f32 %v1178_v59, %v1177_v55  ;;  %v1180_v61 = vpop.f32.mrb[10].mxu1 }
 0x141   :  { %v1181_v63 = vpop.f32.mrb[11].mxu1 }
 0x142   :  { %v733_v62 = vadd.f32 %v1142_v58, %v1006_v19  ;;  %v1528_v0 = vadd.f32 %v1179_v60, %v730_v57  ;;  %v1182_v1 = vadd.f32 %v1181_v63, %v1180_v61 }
 0x144   :  { %v1143_v2 = vpop.f32.mrb[12].mxu0  ;;  %v1530_v3 = vadd.f32 %v1182_v1, %v733_v62 }
 0x145   :  { %v1144_v4 = vpop.f32.mrb[13].mxu0 }
 0x146   :  { %v1145_v5 = vadd.f32 %v1144_v4, %v1143_v2  ;;  %v1146_v6 = vpop.f32.mrb[14].mxu0  ;;  %v1183_v7 = vpop.f32.mrb[12].mxu1 }
 0x147   :  { %v1147_v8 = vpop.f32.mrb[15].mxu0  ;;  %v1184_v11 = vpop.f32.mrb[13].mxu1 }
 0x148   :  { %v738_v9 = vadd.f32 %v1145_v5, %v1006_v19  ;;  %v1148_v10 = vadd.f32 %v1147_v8, %v1146_v6  ;;  %v1185_v12 = vadd.f32 %v1184_v11, %v1183_v7  ;;  %v1186_v13 = vpop.f32.mrb[14].mxu1 }
 0x149   :  { %v1187_v15 = vpop.f32.mrb[15].mxu1 }
 0x14a   :  { %v741_v14 = vadd.f32 %v1148_v10, %v1006_v19  ;;  %v1532_v16 = vadd.f32 %v1185_v12, %v738_v9  ;;  %v1188_v17 = vadd.f32 %v1187_v15, %v1186_v13 }
 0x14c   :  { %v1534_v18 = vadd.f32 %v1188_v17, %v741_v14  ;;  %v1205_v20 = vpop.f32.mrb[16].mxu0 }
 0x14d   :  { %v1206_v21 = vpop.f32.mrb[17].mxu0 }
 0x14e   :  { %v1207_v22 = vadd.f32 %v1206_v21, %v1205_v20  ;;  %v1208_v23 = vpop.f32.mrb[18].mxu0  ;;  %v1253_v25 = vpop.f32.mrb[16].mxu1 }
 0x14f   :  { %v1209_v24 = vpop.f32.mrb[19].mxu0  ;;  %v908_v28 = vpop.f32.mrb[17].mxu1 }
 0x150   :  { %v1210_v26 = vadd.f32 %v1209_v24, %v1208_v23  ;;  %v844_v27 = vadd.f32 %v1207_v22, %v779_v32  ;;  %v1254_v29 = vpop.f32.mrb[18].mxu1 }
 0x151   :  { %v911_v33 = vpop.f32.mrb[19].mxu1 }
 0x152   :  { %v909_v30 = vadd.f32 %v908_v28, %v844_v27  ;;  %v847_v31 = vadd.f32 %v1210_v26, %v782_v35 }
 0x154   :  { %v939_v19 = vmax.f32 %v909_v30, 0.0  ;;  %v912_v34 = vadd.f32 %v911_v33, %v847_v31  ;;  %v1211_v36 = vpop.f32.mrb[20].mxu0 }
 0x155   :  { %v1212_v37 = vpop.f32.mrb[21].mxu0 }
 0x156   :  { %v1101_v38 = vpack.c.bf16 %v939_v19, %v939_v19  ;;  %v940_v39 = vmax.f32 %v912_v34, 0.0  ;;  %v1213_v40 = vadd.f32 %v1212_v37, %v1211_v36  ;;  %v1214_v41 = vpop.f32.mrb[22].mxu0  ;;  %v1257_v43 = vpop.f32.mrb[20].mxu1 }
 0x157   :  { %v1215_v42 = vpop.f32.mrb[23].mxu0  ;;  %v924_v46 = vpop.f32.mrb[21].mxu1 }
 0x158   :  { %980 = vst.msk [vmem:[#allocation8] sm:$0xf] %vm979_vm1, %v1101_v38  ;;  %v1102_v44 = vpack.c.bf16 %v940_v39, %v940_v39  ;;  %v852_v32 = vadd.f32 %v1213_v40, %v787_v48  ;;  %v1216_v45 = vadd.f32 %v1215_v42, %v1214_v41  ;;  %v1258_v47 = vpop.f32.mrb[22].mxu1 }
 0x159   :  { %v927_v50 = vpop.f32.mrb[23].mxu1 }
 0x15a   :  { %981 = vst.msk [vmem:[#allocation8 + $0x4] sm:$0xf] %vm979_vm1, %v1102_v44  ;;  %v917_v35 = vadd.f32 %v1253_v25, %v852_v32  ;;  %v855_v49 = vadd.f32 %v1216_v45, %v1526_v51 }
 0x15c   :  { %v941_v52 = vmax.f32 %v917_v35, 0.0  ;;  %v920_v53 = vadd.f32 %v1254_v29, %v855_v49  ;;  %v1217_v54 = vpop.f32.mrb[24].mxu0 }
 0x15d   :  { %v1218_v55 = vpop.f32.mrb[25].mxu0 }
 0x15e   :  { %v1103_v56 = vpack.c.bf16 %v941_v52, %v941_v52  ;;  %v942_v57 = vmax.f32 %v920_v53, 0.0  ;;  %v1219_v58 = vadd.f32 %v1218_v55, %v1217_v54  ;;  %v1220_v59 = vpop.f32.mrb[26].mxu0 }
 0x15f   :  { %v1221_v60 = vpop.f32.mrb[27].mxu0 }
 0x160   :  { %982 = vst.msk [vmem:[#allocation8 + $0x8] sm:$0xf] %vm979_vm1, %v1103_v56  ;;  %v1104_v48 = vpack.c.bf16 %v942_v57, %v942_v57  ;;  %v1222_v61 = vadd.f32 %v1221_v60, %v1220_v59  ;;  %v860_v62 = vadd.f32 %v1219_v58, %v1528_v0 }
 0x162   :  { %983 = vst.msk [vmem:[#allocation8 + $0xc] sm:$0xf] %vm979_vm1, %v1104_v48  ;;  %v925_v63 = vadd.f32 %v924_v46, %v860_v62  ;;  %v863_v51 = vadd.f32 %v1222_v61, %v1530_v3 }
 0x164   :  { %v943_v1 = vmax.f32 %v925_v63, 0.0  ;;  %v928_v2 = vadd.f32 %v927_v50, %v863_v51  ;;  %v1223_v4 = vpop.f32.mrb[28].mxu0 }
 0x165   :  { %v1224_v5 = vpop.f32.mrb[29].mxu0 }
 0x166   :  { %v1105_v6 = vpack.c.bf16 %v943_v1, %v943_v1  ;;  %v944_v7 = vmax.f32 %v928_v2, 0.0  ;;  %v1225_v8 = vadd.f32 %v1224_v5, %v1223_v4  ;;  %v1226_v9 = vpop.f32.mrb[30].mxu0 }
 0x167   :  { %v1227_v10 = vpop.f32.mrb[31].mxu0 }
 0x168   :  { %984 = vst.msk [vmem:[#allocation8 + $0x10] sm:$0xf] %vm979_vm1, %v1105_v6  ;;  %v1106_v11 = vpack.c.bf16 %v944_v7, %v944_v7  ;;  %v868_v12 = vadd.f32 %v1225_v8, %v1532_v16  ;;  %v1228_v0 = vadd.f32 %v1227_v10, %v1226_v9 }
 0x16a   :  { %985 = vst.msk [vmem:[#allocation8 + $0x14] sm:$0xf] %vm979_vm1, %v1106_v11  ;;  %v933_v13 = vadd.f32 %v1257_v43, %v868_v12  ;;  %v871_v3 = vadd.f32 %v1228_v0, %v1534_v18 }
 0x16c   :  { %v945_v14 = vmax.f32 %v933_v13, 0.0  ;;  %v936_v15 = vadd.f32 %v1258_v47, %v871_v3 }
 0x16e   :  { %v1107_v17 = vpack.c.bf16 %v945_v14, %v945_v14  ;;  %v946_v20 = vmax.f32 %v936_v15, 0.0 }
 0x170   :  { %986 = vst.msk [vmem:[#allocation8 + $0x18] sm:$0xf] %vm979_vm1, %v1107_v17  ;;  %v1108_v21 = vpack.c.bf16 %v946_v20, %v946_v20 }
 0x172   :  { %987 = vst.msk [vmem:[#allocation8 + $0x1c] sm:$0xf] %vm979_vm1, %v1108_v21 }
 0x173   :  { %1438 = shalt.err (!%p1435_p0)
}
 0x174   :  { %s1439_s30 = scalar_lea.hbm %s1567_s3, 512 }
 0x175   :  { %p1440_p1 = scmp.ne.s32.totalorder %s1567_s3, %s1439_s30  ;;  %p1443_p2 = scmp.lt.u32.totalorder %s1439_s30, %s1567_s3 }
 0x177   :  { %p1445_p3 = pnand %p1443_p2, %p1440_p1 }
 0x179   :  { %1448 = shalt.err (!%p1445_p3)
}
 0x17a   :  { %999 = dma.vmem_to_hbm [thread:$0]  %s994_s26, 512, %s1567_s3, [#allocation4], %s1456_s22, %s1456_s22, %s1457_s23  }
 0x17b   :  { %1453 = dma.done.wait [#allocation4], 512  }
 0x17c   :  { %1454 = vsyncadd [#allocation4], 4294966784 }
 0x17d   :  { %1003 = vsyncpa [#allocation3], 1 }
 0x17e   :  { %1004 = vsyncpa [#allocation6], 1 }
 0x17f   :  { %1005 = vsyncpa [#allocation4], 1 }

// kernel: offset_decoder_forward.11
= control target key start
LH: loop header
LB: loop body
LE: loop exit
PB: predicated region body
PF: predicated region fallthrough
CT: control target
= control target key end

     0   :  { %9 = vsyncpa [#allocation3], 0  ;;  %s1673_s0 = inlined_call_operand.hbm [shape: bf16[64,864], index: 0, kind: input, shape index: {}]   ;;  %s1674_s1 = inlined_call_operand.hbm [shape: bf16[864,32], index: 1, kind: input, shape index: {}]   ;;  %s1675_s2 = inlined_call_operand.hbm [shape: f32[1,32], index: 2, kind: input, shape index: {}]   ;;  %s1676_s3 = inlined_call_operand.hbm [shape: bf16[64,32], index: 3, kind: input, shape index: {}]   ;;  %s1677_s4 = inlined_call_operand.hbm [shape: bf16[64,32], index: 4, kind: output, shape index: {}]  }
   0x1   :  { %10 = vsyncpa [#allocation6], 0 }
   0x2   :  { %11 = vsyncpa [#allocation9], 0 }
   0x3   :  { %12 = vsyncpa [#allocation4], 0  ;;  %s1533_s15 = smov [#allocation5]   ;;  %s1415_s19 = scalar_lea.hbm %s1674_s1, 6912 }
   0x4   :  { %s30_s16 = sshll.u32 %s1533_s15, 4  ;;  %p1416_p0 = scmp.ne.s32.totalorder %s1674_s1, %s1415_s19  ;;  %s31_s16 = int_to_ptr.vmem [resolvable:$true] %s30_s16 }
   0x5   :  { %p1419_p1 = scmp.lt.u32.totalorder %s1415_s19, %s1674_s1 }
   0x7   :  { %p1421_p2 = pnand %p1419_p1, %p1416_p0 }
   0x9   :  { %1424 = shalt.err (!%p1421_p2)
}
   0xa   :  { %s1425_s24 = scalar_lea.vmem %s31_s16, 6912  ;;  %p1430_p4 = scmp.lt.s32.totalorder %s31_s16, %s31_s16 }
   0xb   :  { %p1426_p3 = scmp.ne.s32.totalorder %s31_s16, %s1425_s24  ;;  %p1431_p5 = scmp.lt.s32.totalorder %s1425_s24, %s1425_s24 }
   0xd   :  { %p1432_p6 = por %p1431_p5, %p1430_p4 }
   0xf   :  { %p1433_p7 = pnand %p1432_p6, %p1426_p3 }
  0x11   :  { %1436 = shalt.err (!%p1433_p7)
}
  0x12   :  { %s1534_s25 = smov 64   ;;  %s1535_s26 = smov 4  }
  0x13   :  { %36 = dma.hbm_to_vmem [thread:$0]  %s1674_s1, 6912, %s31_s16, [#allocation6], %s1534_s25, %s1534_s25, %s1535_s26  }
  0x14   :  { %s1536_s29 = smov [#allocation2]   ;;  %s1437_s7 = scalar_lea.hbm %s1673_s0, 3584 }
  0x15   :  { %s18_s30 = sshll.u32 %s1536_s29, 4  ;;  %p1438_p8 = scmp.ne.s32.totalorder %s1673_s0, %s1437_s7  ;;  %s19_s30 = int_to_ptr.vmem [resolvable:$true] %s18_s30 }
  0x16   :  { %p1441_p9 = scmp.lt.u32.totalorder %s1437_s7, %s1673_s0 }
  0x18   :  { %p1443_p10 = pnand %p1441_p9, %p1438_p8 }
  0x1a   :  { %1446 = shalt.err (!%p1443_p10)
}
  0x1b   :  { %s1447_s12 = scalar_lea.vmem %s19_s30, 3584  ;;  %p1452_p12 = scmp.lt.s32.totalorder %s19_s30, %s19_s30 }
  0x1c   :  { %p1448_p11 = scmp.ne.s32.totalorder %s19_s30, %s1447_s12  ;;  %p1453_p13 = scmp.lt.s32.totalorder %s1447_s12, %s1447_s12 }
  0x1e   :  { %p1454_p0 = por %p1453_p13, %p1452_p12 }
  0x20   :  { %p1455_p1 = pnand %p1454_p0, %p1448_p11 }
  0x22   :  { %1458 = shalt.err (!%p1455_p1)
}
  0x23   :  { %s1537_s1 = smov 448   ;;  %s1538_s13 = smov 28  }
  0x24   :  { %24 = dma.hbm_to_vmem [thread:$0]  %s1673_s0, 3584, %s19_s30, [#allocation3], %s1537_s1, %s1537_s1, %s1538_s13  }
  0x25   :  { %s1539_s16 = smov [#allocation7]   ;;  %s1540_s18 = smov [#allocation8]  }
  0x26   :  { %s43_s17 = sshll.u32 %s1539_s16, 4  ;;  %s52_s19 = sshll.u32 %s1540_s18, 4  ;;  %s44_s17 = int_to_ptr.vmem [resolvable:$true] %s43_s17  ;;  %s1594_s19 = int_to_ptr.vmem [resolvable:$true] %s52_s19 }
  0x27   :  { %s1459_s22 = scalar_lea.hbm %s1675_s2, 16 }
  0x28   :  { %p1460_p2 = scmp.ne.s32.totalorder %s1675_s2, %s1459_s22  ;;  %p1463_p3 = scmp.lt.u32.totalorder %s1459_s22, %s1675_s2 }
  0x2a   :  { %p1465_p4 = pnand %p1463_p3, %p1460_p2 }
  0x2c   :  { %1468 = shalt.err (!%p1465_p4)
}
  0x2d   :  { %s1469_s0 = scalar_lea.vmem %s44_s17, 16  ;;  %s1473_s29 = scalar_lea.vmem %s44_s17, 32 }
  0x2e   :  { %p1470_p5 = scmp.ne.s32.totalorder %s44_s17, %s1469_s0  ;;  %p1474_p6 = scmp.lt.s32.totalorder %s44_s17, %s44_s17 }
  0x2f   :  { %p1475_p7 = scmp.lt.s32.totalorder %s1473_s29, %s1469_s0 }
  0x31   :  { %p1476_p8 = por %p1475_p7, %p1474_p6 }
  0x33   :  { %p1477_p9 = pnand %p1476_p8, %p1470_p5 }
  0x35   :  { %1480 = shalt.err (!%p1477_p9)
}
  0x36   :  { %46 = dma.hbm_to_vmem [thread:$0]  %s1675_s2, 16, %s44_s17, [#allocation6]  }
  0x37   :  { %s1481_s8 = scalar_lea.hbm %s1676_s3, 512 }
  0x38   :  { %p1482_p10 = scmp.ne.s32.totalorder %s1676_s3, %s1481_s8  ;;  %p1485_p11 = scmp.lt.u32.totalorder %s1481_s8, %s1676_s3 }
  0x3a   :  { %p1487_p12 = pnand %p1485_p11, %p1482_p10 }
  0x3c   :  { %1490 = shalt.err (!%p1487_p12)
}
  0x3d   :  { %s1491_s1 = scalar_lea.vmem %s1594_s19, 512  ;;  %p1496_p0 = scmp.lt.s32.totalorder %s1594_s19, %s1594_s19 }
  0x3e   :  { %p1492_p13 = scmp.ne.s32.totalorder %s1594_s19, %s1491_s1  ;;  %p1497_p1 = scmp.lt.s32.totalorder %s1491_s1, %s1491_s1 }
  0x40   :  { %p1498_p2 = por %p1497_p1, %p1496_p0 }
  0x42   :  { %p1499_p3 = pnand %p1498_p2, %p1492_p13 }
  0x44   :  { %1502 = shalt.err (!%p1499_p3)
}
  0x45   :  { %58 = dma.hbm_to_vmem [thread:$0]  %s1676_s3, 512, %s1594_s19, [#allocation9], %s1534_s25, %s1534_s25, %s1535_s26  }
  0x46   :  { %1525 = dma.done.wait [#allocation3], 3584  }
  0x47   :  { %1526 = vsyncadd [#allocation3], 4294963712 }
  0x48   :  { %1527 = dma.done.wait [#allocation6], 6928  }
  0x49   :  { %1528 = vsyncadd [#allocation6], 4294960368 }
  0x4a   :  { %1529 = dma.done.wait [#allocation9], 512  }
  0x4b   :  { %1530 = vsyncadd [#allocation9], 4294966784  ;;  %v1321_v0 = vld [vmem:[#allocation5 + $0x40] sm:$0xff]   ;;  %v1325_v4 = vld [vmem:[#allocation5 + $0x48] sm:$0xff]   ;;  %vm683_vm0 = vcmask 785408   ;;  %vm1012_vm1 = vcmask 257024  }
  0x4c   :  { %v1322_v1 = vld [vmem:[#allocation5] sm:$0xff]   ;;  %1162 = vmatprep.subr.bf16.mxu0 %v1321_v0  ;;  %v1326_v5 = vld [vmem:[#allocation5 + $0x8] sm:$0xff]   ;;  %v1329_v8 = vld [vmem:[#allocation5 + $0x50] sm:$0xff]   ;;  %s1541_s3 = smov [#allocation10]  }
  0x4d   :  { %v1323_v2 = vld [vmem:[#allocation5 + $0xc0] sm:$0xff]   ;;  %1163 = vmatpush3.bf16.msra.mxu0 %v1322_v1  ;;  %v1327_v6 = vld [vmem:[#allocation5 + $0xc8] sm:$0xff]   ;;  %v1330_v9 = vld [vmem:[#allocation5 + $0x10] sm:$0xff]   ;;  %s1026_s14 = sshll.u32 %s1541_s3, 4  ;;  %s1027_s14 = int_to_ptr.vmem [resolvable:$true] %s1026_s14 }
  0x4e   :  { %v1324_v3 = vld [vmem:[#allocation5 + $0x80] sm:$0xff]   ;;  %1202 = vmatprep.subr.bf16.mxu1 %v1323_v2  ;;  %1164 = vmatprep.subr.bf16.mxu0 %v1325_v4  ;;  %v1328_v7 = vld [vmem:[#allocation5 + $0x88] sm:$0xff]   ;;  %v1331_v10 = vld [vmem:[#allocation5 + $0xd0] sm:$0xff]   ;;  %s1503_s15 = scalar_lea.vmem %s1027_s14, 512  ;;  %p1508_p5 = scmp.lt.s32.totalorder %s1027_s14, %s1027_s14 }
  0x4f   :  { %1203 = vmatpush3.bf16.msra.mxu1 %v1324_v3  ;;  %v1332_v11 = vld [vmem:[#allocation5 + $0x90] sm:$0xff]   ;;  %v1333_v12 = vld [vmem:[#allocation5 + $0x58] sm:$0xff]   ;;  %v1337_v16 = vld [vmem:[#allocation5 + $0x60] sm:$0xff]   ;;  %p1504_p4 = scmp.ne.s32.totalorder %s1027_s14, %s1503_s15  ;;  %p1509_p6 = scmp.lt.s32.totalorder %s1503_s15, %s1503_s15 }
  0x50   :  { %1204 = vmatprep.subr.bf16.mxu1 %v1327_v6  ;;  %v1334_v13 = vld [vmem:[#allocation5 + $0x18] sm:$0xff]   ;;  %v1338_v17 = vld [vmem:[#allocation5 + $0x20] sm:$0xff]   ;;  %v1341_v20 = vld [vmem:[#allocation5 + $0x68] sm:$0xff]  }
  0x51   :  { %1165 = vmatpush3.bf16.msra.mxu0 %v1326_v5  ;;  %v1335_v14 = vld [vmem:[#allocation5 + $0xd8] sm:$0xff]   ;;  %v1339_v18 = vld [vmem:[#allocation5 + $0xe0] sm:$0xff]   ;;  %v1342_v21 = vld [vmem:[#allocation5 + $0x28] sm:$0xff]   ;;  %p1510_p7 = por %p1509_p6, %p1508_p5 }
  0x52   :  { %1166 = vmatprep.subr.bf16.mxu0 %v1329_v8  ;;  %v1336_v15 = vld [vmem:[#allocation5 + $0x98] sm:$0xff]   ;;  %v1340_v19 = vld [vmem:[#allocation5 + $0xa0] sm:$0xff]   ;;  %v1343_v22 = vld [vmem:[#allocation5 + $0xe8] sm:$0xff]  }
  0x53   :  { %1205 = vmatpush3.bf16.msra.mxu1 %v1328_v7  ;;  %v1344_v23 = vld [vmem:[#allocation5 + $0xa8] sm:$0xff]   ;;  %v1345_v24 = vld [vmem:[#allocation5 + $0x70] sm:$0xff]   ;;  %v1349_v28 = vld [vmem:[#allocation5 + $0x78] sm:$0xff]   ;;  %p1511_p8 = pnand %p1510_p7, %p1504_p4 }
  0x54   :  { %1206 = vmatprep.subr.bf16.mxu1 %v1331_v10  ;;  %v1346_v25 = vld [vmem:[#allocation5 + $0x30] sm:$0xff]   ;;  %v1350_v29 = vld [vmem:[#allocation5 + $0x38] sm:$0xff]   ;;  %v1354_v32 = vld [vmem:[#allocation2 + $0x4] ss:$28 sps:$4 sm:$0xff]  }
  0x55   :  { %1167 = vmatpush3.bf16.msra.mxu0 %v1330_v9  ;;  %v1347_v26 = vld [vmem:[#allocation5 + $0xf0] sm:$0xff]   ;;  %v1351_v30 = vld [vmem:[#allocation5 + $0xf8] sm:$0xff]   ;;  %728 = vmatprep.mubr.bf16.mxu0 %v1354_v32  ;;  %v1356_v34 = vld [vmem:[#allocation5 + $0x140] sm:$0xff]  }
  0x56   :  { %1168 = vmatprep.subr.bf16.mxu0 %v1333_v12  ;;  %v1348_v27 = vld [vmem:[#allocation5 + $0xb0] sm:$0xff]   ;;  %v1352_v31 = vld [vmem:[#allocation2] ss:$28 sps:$4 sm:$0xff]   ;;  %v1357_v35 = vld [vmem:[#allocation2 + $0x8] ss:$28 sps:$4 sm:$0xff]  }
  0x57   :  { %1207 = vmatpush3.bf16.msra.mxu1 %v1332_v11  ;;  %v1355_v33 = vld [vmem:[#allocation5 + $0xb8] sm:$0xff]   ;;  %v1359_v36 = vld [vmem:[#allocation2 + $0xc] ss:$28 sps:$4 sm:$0xff]   ;;  %v1360_v37 = vld [vmem:[#allocation5 + $0x100] sm:$0xff]  }
  0x58   :  { %1208 = vmatprep.subr.bf16.mxu1 %v1335_v14  ;;  %793 = vmatprep.mubr.bf16.mxu1 %v1359_v36  ;;  %v1361_v38 = vld [vmem:[#allocation5 + $0x148] sm:$0xff]   ;;  %v1363_v40 = vld [vmem:[#allocation2 + $0x3c] ss:$28 sps:$4 sm:$0xff]   ;;  %v1366_v42 = vld [vmem:[#allocation5 + $0x150] sm:$0xff]  }
  0x59   :  { %1169 = vmatpush3.bf16.msra.mxu0 %v1334_v13  ;;  %v1362_v39 = vld [vmem:[#allocation5 + $0x108] sm:$0xff]   ;;  %v1365_v41 = vld [vmem:[#allocation2 + $0x38] ss:$28 sps:$4 sm:$0xff]   ;;  %v1367_v43 = vld [vmem:[#allocation2 + $0x44] ss:$28 sps:$4 sm:$0xff]  }
  0x5a   :  { %1170 = vmatprep.subr.bf16.mxu0 %v1337_v16  ;;  %v1369_v44 = vld [vmem:[#allocation5 + $0x110] sm:$0xff]   ;;  %v1370_v45 = vld [vmem:[#allocation2 + $0x40] ss:$28 sps:$4 sm:$0xff]   ;;  %v1378_v52 = vld [vmem:[#allocation5 + $0x188] sm:$0xff]  }
  0x5b   :  { %1209 = vmatpush3.bf16.msra.mxu1 %v1336_v15  ;;  %v1371_v46 = vld [vmem:[#allocation5 + $0x158] sm:$0xff]   ;;  %v1372_v47 = vld [vmem:[#allocation5 + $0x180] sm:$0xff]   ;;  %v1374_v49 = vld [vmem:[#allocation2 + $0x74] ss:$28 sps:$4 sm:$0xff]  }
  0x5c   :  { %1210 = vmatprep.subr.bf16.mxu1 %v1339_v18  ;;  %v1373_v48 = vld [vmem:[#allocation5 + $0x118] sm:$0xff]   ;;  %v1376_v50 = vld [vmem:[#allocation2 + $0x70] ss:$28 sps:$4 sm:$0xff]   ;;  %v1377_v51 = vld [vmem:[#allocation5 + $0x160] sm:$0xff]  }
  0x5d   :  { %1171 = vmatpush3.bf16.msra.mxu0 %v1338_v17  ;;  %v1379_v53 = vld [vmem:[#allocation2 + $0x7c] ss:$28 sps:$4 sm:$0xff]   ;;  %v1381_v54 = vld [vmem:[#allocation5 + $0x120] sm:$0xff]   ;;  %v1383_v56 = vld [vmem:[#allocation5 + $0x168] sm:$0xff]  }
  0x5e   :  { %1172 = vmatprep.subr.bf16.mxu0 %v1341_v20  ;;  %v1382_v55 = vld [vmem:[#allocation2 + $0x78] ss:$28 sps:$4 sm:$0xff]   ;;  %v1385_v58 = vld [vmem:[#allocation5 + $0x128] sm:$0xff]   ;;  %v1396_v3 = vld [vmem:[#allocation5 + $0x1a0] sm:$0xff]  }
  0x5f   :  { %1211 = vmatpush3.bf16.msra.mxu1 %v1340_v19  ;;  %v1384_v57 = vld [vmem:[#allocation5 + $0x190] sm:$0xff]   ;;  %v1386_v59 = vld [vmem:[#allocation2 + $0xac] ss:$28 sps:$4 sm:$0xff]   ;;  %v1390_v62 = vld [vmem:[#allocation5 + $0x198] sm:$0xff]  }
  0x60   :  { %1212 = vmatprep.subr.bf16.mxu1 %v1343_v22  ;;  %v1388_v60 = vld [vmem:[#allocation2 + $0xa8] ss:$28 sps:$4 sm:$0xff]   ;;  %v1389_v61 = vld [vmem:[#allocation5 + $0x170] sm:$0xff]   ;;  %v1395_v2 = vld [vmem:[#allocation5 + $0x178] sm:$0xff]  }
  0x61   :  { %1173 = vmatpush3.bf16.msra.mxu0 %v1342_v21  ;;  %v1391_v63 = vld [vmem:[#allocation2 + $0xb4] ss:$28 sps:$4 sm:$0xff]   ;;  %v1397_v4 = vld [vmem:[#allocation5 + $0x138] sm:$0xff]   ;;  %v1401_v7 = vld [vmem:[#allocation5 + $0x1a8] sm:$0xff]  }
  0x62   :  { %1174 = vmatprep.subr.bf16.mxu0 %v1345_v24  ;;  %v1393_v0 = vld [vmem:[#allocation5 + $0x130] sm:$0xff]   ;;  %v1404_v10 = vld [vmem:[#allocation2 + $0x4c] ss:$28 sps:$4 sm:$0xff]   ;;  %v1407_v13 = vld [vmem:[#allocation2 + $0x84] ss:$28 sps:$4 sm:$0xff]  }
  0x63   :  { %1213 = vmatpush3.bf16.msra.mxu1 %v1344_v23  ;;  %v1394_v1 = vld [vmem:[#allocation2 + $0xb0] ss:$28 sps:$4 sm:$0xff]   ;;  %v1402_v8 = vld [vmem:[#allocation2 + $0x18] ss:$28 sps:$4 sm:$0xff]   ;;  %v1410_v11 = vld [vmem:[#allocation2 + $0x88] ss:$28 sps:$4 sm:$0xff]  }
  0x64   :  { %1214 = vmatprep.subr.bf16.mxu1 %v1347_v26  ;;  %v1398_v5 = vld [vmem:[#allocation2 + $0x10] ss:$28 sps:$4 sm:$0xff]   ;;  %v1406_v12 = vld [vmem:[#allocation2 + $0x48] ss:$28 sps:$4 sm:$0xff]   ;;  %v1411_v14 = vld [vmem:[#allocation2 + $0xc0] ss:$28 sps:$4 sm:$0xff]  }
  0x65   :  { %1175 = vmatpush3.bf16.msra.mxu0 %v1346_v25  ;;  %v1400_v6 = vld [vmem:[#allocation2 + $0x14] ss:$28 sps:$4 sm:$0xff]   ;;  %v1409_v15 = vld [vmem:[#allocation2 + $0x80] ss:$28 sps:$4 sm:$0xff]  }
  0x66   :  { %1176 = vmatprep.subr.bf16.mxu0 %v1349_v28  ;;  %v1403_v9 = vld [vmem:[#allocation2 + $0x50] ss:$28 sps:$4 sm:$0xff]   ;;  %v1412_v16 = vld [vmem:[#allocation2 + $0xbc] ss:$28 sps:$4 sm:$0xff]  }
  0x67   :  { %1215 = vmatpush3.bf16.msra.mxu1 %v1348_v27  ;;  %v1414_v17 = vld [vmem:[#allocation2 + $0xb8] ss:$28 sps:$4 sm:$0xff]   ;;  %v1040_v19 = vld [vmem:[#allocation7] ss:$0 sm:$0xff] }
  0x68   :  { %1216 = vmatprep.subr.bf16.mxu1 %v1351_v30 }
  0x69   :  { %1177 = vmatpush3.bf16.msra.mxu0 %v1350_v29 }
  0x6a   :  { %1242 = vmatprep.subr.bf16.mxu0 %v1356_v34 }
  0x6b   :  { %1217 = vmatpush3.bf16.msra.mxu1 %v1355_v33 }
  0x6c   :  { %729 = vmatmul.mubr.bf16.vlgmr.msra.gmra.mrb[0].mxu0 %v1352_v31  ;;  %1292 = vmatprep.subr.bf16.mxu1 %v1372_v47 }
  0x6d   :  { %1243 = vmatpush3.bf16.msra.mxu0 %v1360_v37  ;;  %736 = vmatprep.mubr.bf16.mxu0 %v1363_v40 }
  0x6e   :  { %794 = vmatmul.mubr.bf16.vlgmr.msra.gmra.mrb[0].mxu1 %v1357_v35  ;;  %1244 = vmatprep.subr.bf16.mxu0 %v1361_v38 }
  0x6f   :  { %801 = vmatprep.mubr.bf16.mxu1 %v1367_v43  ;;  %1293 = vmatpush3.bf16.msra.mxu1 %v1372_v47 }
  0x70   :  { %1294 = vmatprep.subr.bf16.mxu1 %v1378_v52 }
  0x71   :  { %1245 = vmatpush3.bf16.msra.mxu0 %v1362_v39 }
  0x72   :  { %1246 = vmatprep.subr.bf16.mxu0 %v1366_v42 }
  0x73   :  { %1295 = vmatpush3.bf16.msra.mxu1 %v1378_v52 }
  0x74   :  { %737 = vmatmul.mubr.bf16.gmra.mrb[4].mxu0 %v1365_v41  ;;  %1296 = vmatprep.subr.bf16.mxu1 %v1384_v57 }
  0x75   :  { %1247 = vmatpush3.bf16.msra.mxu0 %v1369_v44  ;;  %744 = vmatprep.mubr.bf16.mxu0 %v1374_v49 }
  0x76   :  { %802 = vmatmul.mubr.bf16.gmra.mrb[4].mxu1 %v1370_v45  ;;  %1248 = vmatprep.subr.bf16.mxu0 %v1371_v46 }
  0x77   :  { %809 = vmatprep.mubr.bf16.mxu1 %v1379_v53  ;;  %1297 = vmatpush3.bf16.msra.mxu1 %v1384_v57 }
  0x78   :  { %1298 = vmatprep.subr.bf16.mxu1 %v1390_v62 }
  0x79   :  { %1249 = vmatpush3.bf16.msra.mxu0 %v1373_v48 }
  0x7a   :  { %1250 = vmatprep.subr.bf16.mxu0 %v1377_v51 }
  0x7b   :  { %1299 = vmatpush3.bf16.msra.mxu1 %v1390_v62 }
  0x7c   :  { %745 = vmatmul.mubr.bf16.gmra.mrb[8].mxu0 %v1376_v50  ;;  %1300 = vmatprep.subr.bf16.mxu1 %v1396_v3 }
  0x7d   :  { %1251 = vmatpush3.bf16.msra.mxu0 %v1381_v54  ;;  %752 = vmatprep.mubr.bf16.mxu0 %v1386_v59 }
  0x7e   :  { %810 = vmatmul.mubr.bf16.gmra.mrb[8].mxu1 %v1382_v55  ;;  %1252 = vmatprep.subr.bf16.mxu0 %v1383_v56 }
  0x7f   :  { %817 = vmatprep.mubr.bf16.mxu1 %v1391_v63  ;;  %1301 = vmatpush3.bf16.msra.mxu1 %v1396_v3 }
  0x80   :  { %1302 = vmatprep.subr.bf16.mxu1 %v1401_v7 }
  0x81   :  { %1253 = vmatpush3.bf16.msra.mxu0 %v1385_v58 }
  0x82   :  { %1254 = vmatprep.subr.bf16.mxu0 %v1389_v61 }
  0x83   :  { %1303 = vmatpush3.bf16.msra.mxu1 %v1401_v7 }
  0x84   :  { %753 = vmatmul.mubr.bf16.gmra.mrb[12].mxu0 %v1388_v60 }
  0x85   :  { %1255 = vmatpush3.bf16.msra.mxu0 %v1393_v0  ;;  %858 = vmatprep.mubr.bf16.mxu0 %v1400_v6 }
  0x86   :  { %818 = vmatmul.mubr.bf16.gmra.mrb[12].mxu1 %v1394_v1  ;;  %1256 = vmatprep.subr.bf16.mxu0 %v1395_v2 }
  0x87   :  { %1304 = vmatprep.mubr.msk.bf16.mxu1 %vm683_vm0, %v1402_v8 }
  0x89   :  { %1257 = vmatpush3.bf16.msra.mxu0 %v1397_v4 }
  0x8c   :  { %859 = vmatmul.mubr.bf16.vlgmr.msra.gmra.mrb[16].mxu0 %v1398_v5 }
  0x8d   :  { %866 = vmatprep.mubr.bf16.mxu0 %v1404_v10 }
  0x8e   :  { %1305 = vmatmul.mubr.msk.bf16.vlgmr.msra.gmra.mrb[16].mxu1 %vm683_vm0, %v1403_v9 }
  0x8f   :  { %1308 = vmatprep.mubr.msk.bf16.mxu1 %vm683_vm0, %v1410_v11 }
  0x94   :  { %867 = vmatmul.mubr.bf16.gmra.mrb[20].mxu0 %v1406_v12 }
  0x95   :  { %874 = vmatprep.mubr.bf16.mxu0 %v1407_v13 }
  0x96   :  { %1309 = vmatmul.mubr.msk.bf16.gmra.mrb[20].mxu1 %vm683_vm0, %v1411_v14 }
  0x9c   :  { %875 = vmatmul.mubr.bf16.gmra.mrb[24].mxu0 %v1409_v15 }
  0x9d   :  { %882 = vmatprep.mubr.bf16.mxu0 %v1412_v16 }
  0xa4   :  { %883 = vmatmul.mubr.bf16.gmra.mrb[28].mxu0 %v1414_v17 }
 0x13f   :  { %v1178_v18 = vpop.f32.mrb[0].mxu0 }
 0x140   :  { %v1179_v20 = vpop.f32.mrb[1].mxu0 }
 0x141   :  { %v1180_v21 = vadd.f32 %v1179_v20, %v1178_v18  ;;  %v1181_v22 = vpop.f32.mrb[2].mxu0  ;;  %v1218_v23 = vpop.f32.mrb[0].mxu1 }
 0x142   :  { %v1182_v24 = vpop.f32.mrb[3].mxu0  ;;  %v1219_v27 = vpop.f32.mrb[1].mxu1 }
 0x143   :  { %v731_v25 = vadd.f32 %v1180_v21, %v1040_v19  ;;  %v1183_v26 = vadd.f32 %v1182_v24, %v1181_v22  ;;  %v1220_v28 = vadd.f32 %v1219_v27, %v1218_v23  ;;  %v1221_v29 = vpop.f32.mrb[2].mxu1  ;;  %v1144_v22 = vld [vmem:[#allocation8] sm:$0xff]  }
 0x144   :  { %v1222_v31 = vpop.f32.mrb[3].mxu1 }
 0x145   :  { %v734_v30 = vadd.f32 %v1183_v26, %v1040_v19  ;;  %v796_v32 = vadd.f32 %v1220_v28, %v731_v25  ;;  %v1223_v33 = vadd.f32 %v1222_v31, %v1221_v29 }
 0x147   :  { %v1184_v34 = vpop.f32.mrb[4].mxu0  ;;  %v799_v35 = vadd.f32 %v1223_v33, %v734_v30  ;;  %v1145_v30 = vunpack.c.l.bf16 %v1144_v22 }
 0x148   :  { %v1185_v36 = vpop.f32.mrb[5].mxu0 }
 0x149   :  { %v1186_v37 = vadd.f32 %v1185_v36, %v1184_v34  ;;  %v1187_v38 = vpop.f32.mrb[6].mxu0  ;;  %v1224_v39 = vpop.f32.mrb[4].mxu1  ;;  %v1146_v36 = vunpack.c.h.bf16 %v1144_v22 }
 0x14a   :  { %v1188_v40 = vpop.f32.mrb[7].mxu0  ;;  %v1225_v43 = vpop.f32.mrb[5].mxu1 }
 0x14b   :  { %v739_v41 = vadd.f32 %v1186_v37, %v1040_v19  ;;  %v1189_v42 = vadd.f32 %v1188_v40, %v1187_v38  ;;  %v1226_v44 = vadd.f32 %v1225_v43, %v1224_v39  ;;  %v1227_v45 = vpop.f32.mrb[6].mxu1 }
 0x14c   :  { %v1228_v47 = vpop.f32.mrb[7].mxu1 }
 0x14d   :  { %v742_v46 = vadd.f32 %v1189_v42, %v1040_v19  ;;  %v1632_v48 = vadd.f32 %v1226_v44, %v739_v41  ;;  %v1229_v49 = vadd.f32 %v1228_v47, %v1227_v45  ;;  %v1159_v41 = vld [vmem:[#allocation8 + $0x8] sm:$0xff]  }
 0x14f   :  { %v1190_v50 = vpop.f32.mrb[8].mxu0  ;;  %v1634_v51 = vadd.f32 %v1229_v49, %v742_v46 }
 0x150   :  { %v1191_v52 = vpop.f32.mrb[9].mxu0 }
 0x151   :  { %v1192_v53 = vadd.f32 %v1191_v52, %v1190_v50  ;;  %v1193_v54 = vpop.f32.mrb[10].mxu0  ;;  %v1230_v55 = vpop.f32.mrb[8].mxu1 }
 0x152   :  { %v1194_v56 = vpop.f32.mrb[11].mxu0  ;;  %v1231_v59 = vpop.f32.mrb[9].mxu1 }
 0x153   :  { %v747_v57 = vadd.f32 %v1192_v53, %v1040_v19  ;;  %v1195_v58 = vadd.f32 %v1194_v56, %v1193_v54  ;;  %v1232_v60 = vadd.f32 %v1231_v59, %v1230_v55  ;;  %v1233_v61 = vpop.f32.mrb[10].mxu1  ;;  %v1150_v56 = vunpack.c.h.bf16 %v1159_v41 }
 0x154   :  { %v1234_v63 = vpop.f32.mrb[11].mxu1 }
 0x155   :  { %v750_v62 = vadd.f32 %v1195_v58, %v1040_v19  ;;  %v1636_v0 = vadd.f32 %v1232_v60, %v747_v57  ;;  %v1235_v1 = vadd.f32 %v1234_v63, %v1233_v61 }
 0x157   :  { %v1196_v2 = vpop.f32.mrb[12].mxu0  ;;  %v1638_v3 = vadd.f32 %v1235_v1, %v750_v62  ;;  %v1160_v62 = vld [vmem:[#allocation8 + $0x10] sm:$0xff]  }
 0x158   :  { %v1197_v4 = vpop.f32.mrb[13].mxu0 }
 0x159   :  { %v1198_v5 = vadd.f32 %v1197_v4, %v1196_v2  ;;  %v1199_v6 = vpop.f32.mrb[14].mxu0  ;;  %v1236_v7 = vpop.f32.mrb[12].mxu1 }
 0x15a   :  { %v1200_v8 = vpop.f32.mrb[15].mxu0  ;;  %v1237_v11 = vpop.f32.mrb[13].mxu1 }
 0x15b   :  { %v755_v9 = vadd.f32 %v1198_v5, %v1040_v19  ;;  %v1201_v10 = vadd.f32 %v1200_v8, %v1199_v6  ;;  %v1238_v12 = vadd.f32 %v1237_v11, %v1236_v7  ;;  %v1239_v13 = vpop.f32.mrb[14].mxu1  ;;  %v1153_v8 = vunpack.c.l.bf16 %v1160_v62 }
 0x15c   :  { %v1240_v15 = vpop.f32.mrb[15].mxu1 }
 0x15d   :  { %v758_v14 = vadd.f32 %v1201_v10, %v1040_v19  ;;  %v1640_v16 = vadd.f32 %v1238_v12, %v755_v9  ;;  %v1241_v17 = vadd.f32 %v1240_v15, %v1239_v13  ;;  %v1154_v10 = vunpack.c.h.bf16 %v1160_v62  ;;  %v1161_v15 = vld [vmem:[#allocation8 + $0x18] sm:$0xff]  }
 0x15f   :  { %v1642_v18 = vadd.f32 %v1241_v17, %v758_v14  ;;  %v1258_v20 = vpop.f32.mrb[16].mxu0 }
 0x160   :  { %v1259_v21 = vpop.f32.mrb[17].mxu0 }
 0x161   :  { %v1260_v23 = vadd.f32 %v1259_v21, %v1258_v20  ;;  %v1261_v24 = vpop.f32.mrb[18].mxu0  ;;  %v1306_v26 = vpop.f32.mrb[16].mxu1 }
 0x162   :  { %v1262_v25 = vpop.f32.mrb[19].mxu0  ;;  %v925_v29 = vpop.f32.mrb[17].mxu1 }
 0x163   :  { %v1263_v27 = vadd.f32 %v1262_v25, %v1261_v24  ;;  %v861_v28 = vadd.f32 %v1260_v23, %v796_v32  ;;  %v1307_v31 = vpop.f32.mrb[18].mxu1  ;;  %v1157_v25 = vunpack.c.l.bf16 %v1161_v15 }
 0x164   :  { %v928_v34 = vpop.f32.mrb[19].mxu1 }
 0x165   :  { %v926_v33 = vadd.f32 %v925_v29, %v861_v28  ;;  %v864_v19 = vadd.f32 %v1263_v27, %v799_v35  ;;  %v1149_v35 = vunpack.c.l.bf16 %v1159_v41  ;;  %v1158_v28 = vunpack.c.h.bf16 %v1161_v15 }
 0x167   :  { %v972_v37 = vadd.f32 %v1145_v30, %v926_v33  ;;  %v929_v38 = vadd.f32 %v928_v34, %v864_v19  ;;  %v1264_v39 = vpop.f32.mrb[20].mxu0 }
 0x168   :  { %v1265_v40 = vpop.f32.mrb[21].mxu0 }
 0x169   :  { %v1135_v42 = vpack.c.bf16 %v972_v37, %v972_v37  ;;  %v973_v43 = vadd.f32 %v1146_v36, %v929_v38  ;;  %v1266_v44 = vadd.f32 %v1265_v40, %v1264_v39  ;;  %v1267_v45 = vpop.f32.mrb[22].mxu0  ;;  %v1310_v47 = vpop.f32.mrb[20].mxu1 }
 0x16a   :  { %v1268_v46 = vpop.f32.mrb[23].mxu0  ;;  %v941_v52 = vpop.f32.mrb[21].mxu1 }
 0x16b   :  { %1013 = vst.msk [vmem:[#allocation10] sm:$0xf] %vm1012_vm1, %v1135_v42  ;;  %v1136_v32 = vpack.c.bf16 %v973_v43, %v973_v43  ;;  %v869_v49 = vadd.f32 %v1266_v44, %v1632_v48  ;;  %v1269_v50 = vadd.f32 %v1268_v46, %v1267_v45  ;;  %v1311_v53 = vpop.f32.mrb[22].mxu1 }
 0x16c   :  { %v944_v57 = vpop.f32.mrb[23].mxu1 }
 0x16d   :  { %1014 = vst.msk [vmem:[#allocation10 + $0x4] sm:$0xf] %vm1012_vm1, %v1136_v32  ;;  %v934_v54 = vadd.f32 %v1306_v26, %v869_v49  ;;  %v872_v55 = vadd.f32 %v1269_v50, %v1634_v51 }
 0x16f   :  { %v974_v58 = vadd.f32 %v1149_v35, %v934_v54  ;;  %v937_v59 = vadd.f32 %v1307_v31, %v872_v55  ;;  %v1270_v60 = vpop.f32.mrb[24].mxu0 }
 0x170   :  { %v1271_v61 = vpop.f32.mrb[25].mxu0 }
 0x171   :  { %v1137_v63 = vpack.c.bf16 %v974_v58, %v974_v58  ;;  %v975_v1 = vadd.f32 %v1150_v56, %v937_v59  ;;  %v1272_v2 = vadd.f32 %v1271_v61, %v1270_v60  ;;  %v1273_v48 = vpop.f32.mrb[26].mxu0 }
 0x172   :  { %v1274_v4 = vpop.f32.mrb[27].mxu0 }
 0x173   :  { %1015 = vst.msk [vmem:[#allocation10 + $0x8] sm:$0xf] %vm1012_vm1, %v1137_v63  ;;  %v1138_v5 = vpack.c.bf16 %v975_v1, %v975_v1  ;;  %v1275_v6 = vadd.f32 %v1274_v4, %v1273_v48  ;;  %v877_v7 = vadd.f32 %v1272_v2, %v1636_v0 }
 0x175   :  { %1016 = vst.msk [vmem:[#allocation10 + $0xc] sm:$0xf] %vm1012_vm1, %v1138_v5  ;;  %v942_v51 = vadd.f32 %v941_v52, %v877_v7  ;;  %v880_v9 = vadd.f32 %v1275_v6, %v1638_v3 }
 0x177   :  { %v976_v11 = vadd.f32 %v1153_v8, %v942_v51  ;;  %v945_v12 = vadd.f32 %v944_v57, %v880_v9  ;;  %v1276_v13 = vpop.f32.mrb[28].mxu0 }
 0x178   :  { %v1277_v14 = vpop.f32.mrb[29].mxu0 }
 0x179   :  { %v1139_v17 = vpack.c.bf16 %v976_v11, %v976_v11  ;;  %v977_v20 = vadd.f32 %v1154_v10, %v945_v12  ;;  %v1278_v21 = vadd.f32 %v1277_v14, %v1276_v13  ;;  %v1279_v22 = vpop.f32.mrb[30].mxu0 }
 0x17a   :  { %v1280_v23 = vpop.f32.mrb[31].mxu0 }
 0x17b   :  { %1017 = vst.msk [vmem:[#allocation10 + $0x10] sm:$0xf] %vm1012_vm1, %v1139_v17  ;;  %v1140_v0 = vpack.c.bf16 %v977_v20, %v977_v20  ;;  %v885_v24 = vadd.f32 %v1278_v21, %v1640_v16  ;;  %v1281_v26 = vadd.f32 %v1280_v23, %v1279_v22 }
 0x17d   :  { %1018 = vst.msk [vmem:[#allocation10 + $0x14] sm:$0xf] %vm1012_vm1, %v1140_v0  ;;  %v950_v3 = vadd.f32 %v1310_v47, %v885_v24  ;;  %v888_v27 = vadd.f32 %v1281_v26, %v1642_v18 }
 0x17f   :  { %v978_v29 = vadd.f32 %v1157_v25, %v950_v3  ;;  %v953_v30 = vadd.f32 %v1311_v53, %v888_v27 }
 0x181   :  { %v1141_v31 = vpack.c.bf16 %v978_v29, %v978_v29  ;;  %v979_v33 = vadd.f32 %v1158_v28, %v953_v30 }
 0x183   :  { %1019 = vst.msk [vmem:[#allocation10 + $0x18] sm:$0xf] %vm1012_vm1, %v1141_v31  ;;  %v1142_v19 = vpack.c.bf16 %v979_v33, %v979_v33 }
 0x185   :  { %1020 = vst.msk [vmem:[#allocation10 + $0x1c] sm:$0xf] %vm1012_vm1, %v1142_v19 }
 0x186   :  { %1514 = shalt.err (!%p1511_p8)
}
 0x187   :  { %s1515_s18 = scalar_lea.hbm %s1677_s4, 512 }
 0x188   :  { %p1516_p9 = scmp.ne.s32.totalorder %s1677_s4, %s1515_s18  ;;  %p1519_p10 = scmp.lt.u32.totalorder %s1515_s18, %s1677_s4 }
 0x18a   :  { %p1521_p11 = pnand %p1519_p10, %p1516_p9 }
 0x18c   :  { %1524 = shalt.err (!%p1521_p11)
}
 0x18d   :  { %1032 = dma.vmem_to_hbm [thread:$0]  %s1027_s14, 512, %s1677_s4, [#allocation4], %s1534_s25, %s1534_s25, %s1535_s26  }
 0x18e   :  { %1531 = dma.done.wait [#allocation4], 512  }
 0x18f   :  { %1532 = vsyncadd [#allocation4], 4294966784 }
 0x190   :  { %1036 = vsyncpa [#allocation3], 1 }
 0x191   :  { %1037 = vsyncpa [#allocation6], 1 }
 0x192   :  { %1038 = vsyncpa [#allocation9], 1 }
 0x193   :  { %1039 = vsyncpa [#allocation4], 1 }

// kernel: offset_decoder_forward.16
= control target key start
LH: loop header
LB: loop body
LE: loop exit
PB: predicated region body
PF: predicated region fallthrough
CT: control target
= control target key end

     0   :  { %8 = vsyncpa [#allocation3], 0  ;;  %s1541_s0 = inlined_call_operand.hbm [shape: bf16[64,864], index: 0, kind: input, shape index: {}]   ;;  %s1542_s1 = inlined_call_operand.hbm [shape: bf16[864,32], index: 1, kind: input, shape index: {}]   ;;  %s1543_s2 = inlined_call_operand.hbm [shape: f32[1,32], index: 2, kind: input, shape index: {}]   ;;  %s1544_s3 = inlined_call_operand.hbm [shape: bf16[64,32], index: 3, kind: output, shape index: {}]  }
   0x1   :  { %9 = vsyncpa [#allocation6], 0 }
   0x2   :  { %10 = vsyncpa [#allocation4], 0  ;;  %s1447_s12 = smov [#allocation5]   ;;  %s1353_s16 = scalar_lea.hbm %s1542_s1, 6912 }
   0x3   :  { %s28_s13 = sshll.u32 %s1447_s12, 4  ;;  %p1354_p0 = scmp.ne.s32.totalorder %s1542_s1, %s1353_s16  ;;  %s29_s13 = int_to_ptr.vmem [resolvable:$true] %s28_s13 }
   0x4   :  { %p1357_p1 = scmp.lt.u32.totalorder %s1353_s16, %s1542_s1 }
   0x6   :  { %p1359_p2 = pnand %p1357_p1, %p1354_p0 }
   0x8   :  { %1362 = shalt.err (!%p1359_p2)
}
   0x9   :  { %s1363_s21 = scalar_lea.vmem %s29_s13, 6912  ;;  %p1368_p4 = scmp.lt.s32.totalorder %s29_s13, %s29_s13 }
   0xa   :  { %p1364_p3 = scmp.ne.s32.totalorder %s29_s13, %s1363_s21  ;;  %p1369_p5 = scmp.lt.s32.totalorder %s1363_s21, %s1363_s21 }
   0xc   :  { %p1370_p6 = por %p1369_p5, %p1368_p4 }
   0xe   :  { %p1371_p7 = pnand %p1370_p6, %p1364_p3 }
  0x10   :  { %1374 = shalt.err (!%p1371_p7)
}
  0x11   :  { %s1448_s22 = smov 64   ;;  %s1449_s23 = smov 4  }
  0x12   :  { %34 = dma.hbm_to_vmem [thread:$0]  %s1542_s1, 6912, %s29_s13, [#allocation6], %s1448_s22, %s1448_s22, %s1449_s23  }
  0x13   :  { %s1450_s26 = smov [#allocation2]   ;;  %s1375_s30 = scalar_lea.hbm %s1541_s0, 3584 }
  0x14   :  { %s16_s27 = sshll.u32 %s1450_s26, 4  ;;  %p1376_p8 = scmp.ne.s32.totalorder %s1541_s0, %s1375_s30  ;;  %s17_s27 = int_to_ptr.vmem [resolvable:$true] %s16_s27 }
  0x15   :  { %p1379_p9 = scmp.lt.u32.totalorder %s1375_s30, %s1541_s0 }
  0x17   :  { %p1381_p10 = pnand %p1379_p9, %p1376_p8 }
  0x19   :  { %1384 = shalt.err (!%p1381_p10)
}
  0x1a   :  { %s1385_s8 = scalar_lea.vmem %s17_s27, 3584  ;;  %p1390_p12 = scmp.lt.s32.totalorder %s17_s27, %s17_s27 }
  0x1b   :  { %p1386_p11 = scmp.ne.s32.totalorder %s17_s27, %s1385_s8  ;;  %p1391_p13 = scmp.lt.s32.totalorder %s1385_s8, %s1385_s8 }
  0x1d   :  { %p1392_p0 = por %p1391_p13, %p1390_p12 }
  0x1f   :  { %p1393_p1 = pnand %p1392_p0, %p1386_p11 }
  0x21   :  { %1396 = shalt.err (!%p1393_p1)
}
  0x22   :  { %s1451_s1 = smov 448   ;;  %s1452_s9 = smov 28  }
  0x23   :  { %22 = dma.hbm_to_vmem [thread:$0]  %s1541_s0, 3584, %s17_s27, [#allocation3], %s1451_s1, %s1451_s1, %s1452_s9  }
  0x24   :  { %s1453_s12 = smov [#allocation7]   ;;  %s1397_s16 = scalar_lea.hbm %s1543_s2, 16 }
  0x25   :  { %s41_s13 = sshll.u32 %s1453_s12, 4  ;;  %p1398_p2 = scmp.ne.s32.totalorder %s1543_s2, %s1397_s16  ;;  %s42_s13 = int_to_ptr.vmem [resolvable:$true] %s41_s13 }
  0x26   :  { %p1401_p3 = scmp.lt.u32.totalorder %s1397_s16, %s1543_s2 }
  0x28   :  { %p1403_p4 = pnand %p1401_p3, %p1398_p2 }
  0x2a   :  { %1406 = shalt.err (!%p1403_p4)
}
  0x2b   :  { %s1407_s21 = scalar_lea.vmem %s42_s13, 16  ;;  %s1411_s0 = scalar_lea.vmem %s42_s13, 32 }
  0x2c   :  { %p1408_p5 = scmp.ne.s32.totalorder %s42_s13, %s1407_s21  ;;  %p1412_p6 = scmp.lt.s32.totalorder %s42_s13, %s42_s13 }
  0x2d   :  { %p1413_p7 = scmp.lt.s32.totalorder %s1411_s0, %s1407_s21 }
  0x2f   :  { %p1414_p8 = por %p1413_p7, %p1412_p6 }
  0x31   :  { %p1415_p9 = pnand %p1414_p8, %p1408_p5 }
  0x33   :  { %1418 = shalt.err (!%p1415_p9)
}
  0x34   :  { %44 = dma.hbm_to_vmem [thread:$0]  %s1543_s2, 16, %s42_s13, [#allocation6]  }
  0x35   :  { %1441 = dma.done.wait [#allocation3], 3584  }
  0x36   :  { %1442 = vsyncadd [#allocation3], 4294963712 }
  0x37   :  { %1443 = dma.done.wait [#allocation6], 6928  }
  0x38   :  { %1444 = vsyncadd [#allocation6], 4294960368  ;;  %v1259_v0 = vld [vmem:[#allocation5 + $0x40] sm:$0xff]   ;;  %v1263_v4 = vld [vmem:[#allocation5 + $0x48] sm:$0xff]   ;;  %vm666_vm0 = vcmask 785408   ;;  %vm971_vm1 = vcmask 257024  }
  0x39   :  { %v1260_v1 = vld [vmem:[#allocation5] sm:$0xff]   ;;  %1101 = vmatprep.subr.bf16.mxu0 %v1259_v0  ;;  %v1264_v5 = vld [vmem:[#allocation5 + $0x8] sm:$0xff]   ;;  %v1267_v8 = vld [vmem:[#allocation5 + $0x50] sm:$0xff]   ;;  %s1454_s2 = smov [#allocation8]  }
  0x3a   :  { %v1261_v2 = vld [vmem:[#allocation5 + $0xc0] sm:$0xff]   ;;  %1102 = vmatpush3.bf16.msra.mxu0 %v1260_v1  ;;  %v1265_v6 = vld [vmem:[#allocation5 + $0xc8] sm:$0xff]   ;;  %v1268_v9 = vld [vmem:[#allocation5 + $0x10] sm:$0xff]   ;;  %s985_s26 = sshll.u32 %s1454_s2, 4  ;;  %s986_s26 = int_to_ptr.vmem [resolvable:$true] %s985_s26 }
  0x3b   :  { %v1262_v3 = vld [vmem:[#allocation5 + $0x80] sm:$0xff]   ;;  %1141 = vmatprep.subr.bf16.mxu1 %v1261_v2  ;;  %1103 = vmatprep.subr.bf16.mxu0 %v1263_v4  ;;  %v1266_v7 = vld [vmem:[#allocation5 + $0x88] sm:$0xff]   ;;  %v1269_v10 = vld [vmem:[#allocation5 + $0xd0] sm:$0xff]   ;;  %s1419_s27 = scalar_lea.vmem %s986_s26, 512  ;;  %p1424_p11 = scmp.lt.s32.totalorder %s986_s26, %s986_s26 }
  0x3c   :  { %1142 = vmatpush3.bf16.msra.mxu1 %v1262_v3  ;;  %v1270_v11 = vld [vmem:[#allocation5 + $0x90] sm:$0xff]   ;;  %v1271_v12 = vld [vmem:[#allocation5 + $0x58] sm:$0xff]   ;;  %v1275_v16 = vld [vmem:[#allocation5 + $0x60] sm:$0xff]   ;;  %p1420_p10 = scmp.ne.s32.totalorder %s986_s26, %s1419_s27  ;;  %p1425_p12 = scmp.lt.s32.totalorder %s1419_s27, %s1419_s27 }
  0x3d   :  { %1143 = vmatprep.subr.bf16.mxu1 %v1265_v6  ;;  %v1272_v13 = vld [vmem:[#allocation5 + $0x18] sm:$0xff]   ;;  %v1276_v17 = vld [vmem:[#allocation5 + $0x20] sm:$0xff]   ;;  %v1279_v20 = vld [vmem:[#allocation5 + $0x68] sm:$0xff]  }
  0x3e   :  { %1104 = vmatpush3.bf16.msra.mxu0 %v1264_v5  ;;  %v1273_v14 = vld [vmem:[#allocation5 + $0xd8] sm:$0xff]   ;;  %v1277_v18 = vld [vmem:[#allocation5 + $0xe0] sm:$0xff]   ;;  %v1280_v21 = vld [vmem:[#allocation5 + $0x28] sm:$0xff]   ;;  %p1426_p13 = por %p1425_p12, %p1424_p11 }
  0x3f   :  { %1105 = vmatprep.subr.bf16.mxu0 %v1267_v8  ;;  %v1274_v15 = vld [vmem:[#allocation5 + $0x98] sm:$0xff]   ;;  %v1278_v19 = vld [vmem:[#allocation5 + $0xa0] sm:$0xff]   ;;  %v1281_v22 = vld [vmem:[#allocation5 + $0xe8] sm:$0xff]  }
  0x40   :  { %1144 = vmatpush3.bf16.msra.mxu1 %v1266_v7  ;;  %v1282_v23 = vld [vmem:[#allocation5 + $0xa8] sm:$0xff]   ;;  %v1283_v24 = vld [vmem:[#allocation5 + $0x70] sm:$0xff]   ;;  %v1287_v28 = vld [vmem:[#allocation5 + $0x78] sm:$0xff]   ;;  %p1427_p0 = pnand %p1426_p13, %p1420_p10 }
  0x41   :  { %1145 = vmatprep.subr.bf16.mxu1 %v1269_v10  ;;  %v1284_v25 = vld [vmem:[#allocation5 + $0x30] sm:$0xff]   ;;  %v1288_v29 = vld [vmem:[#allocation5 + $0x38] sm:$0xff]   ;;  %v1292_v32 = vld [vmem:[#allocation2 + $0x4] ss:$28 sps:$4 sm:$0xff]  }
  0x42   :  { %1106 = vmatpush3.bf16.msra.mxu0 %v1268_v9  ;;  %v1285_v26 = vld [vmem:[#allocation5 + $0xf0] sm:$0xff]   ;;  %v1289_v30 = vld [vmem:[#allocation5 + $0xf8] sm:$0xff]   ;;  %711 = vmatprep.mubr.bf16.mxu0 %v1292_v32  ;;  %v1294_v34 = vld [vmem:[#allocation5 + $0x140] sm:$0xff]  }
  0x43   :  { %1107 = vmatprep.subr.bf16.mxu0 %v1271_v12  ;;  %v1286_v27 = vld [vmem:[#allocation5 + $0xb0] sm:$0xff]   ;;  %v1290_v31 = vld [vmem:[#allocation2] ss:$28 sps:$4 sm:$0xff]   ;;  %v1295_v35 = vld [vmem:[#allocation2 + $0x8] ss:$28 sps:$4 sm:$0xff]  }
  0x44   :  { %1146 = vmatpush3.bf16.msra.mxu1 %v1270_v11  ;;  %v1293_v33 = vld [vmem:[#allocation5 + $0xb8] sm:$0xff]   ;;  %v1297_v36 = vld [vmem:[#allocation2 + $0xc] ss:$28 sps:$4 sm:$0xff]   ;;  %v1298_v37 = vld [vmem:[#allocation5 + $0x100] sm:$0xff]  }
  0x45   :  { %1147 = vmatprep.subr.bf16.mxu1 %v1273_v14  ;;  %776 = vmatprep.mubr.bf16.mxu1 %v1297_v36  ;;  %v1299_v38 = vld [vmem:[#allocation5 + $0x148] sm:$0xff]   ;;  %v1301_v40 = vld [vmem:[#allocation2 + $0x3c] ss:$28 sps:$4 sm:$0xff]   ;;  %v1304_v42 = vld [vmem:[#allocation5 + $0x150] sm:$0xff]  }
  0x46   :  { %1108 = vmatpush3.bf16.msra.mxu0 %v1272_v13  ;;  %v1300_v39 = vld [vmem:[#allocation5 + $0x108] sm:$0xff]   ;;  %v1303_v41 = vld [vmem:[#allocation2 + $0x38] ss:$28 sps:$4 sm:$0xff]   ;;  %v1305_v43 = vld [vmem:[#allocation2 + $0x44] ss:$28 sps:$4 sm:$0xff]  }
  0x47   :  { %1109 = vmatprep.subr.bf16.mxu0 %v1275_v16  ;;  %v1307_v44 = vld [vmem:[#allocation5 + $0x110] sm:$0xff]   ;;  %v1308_v45 = vld [vmem:[#allocation2 + $0x40] ss:$28 sps:$4 sm:$0xff]   ;;  %v1316_v52 = vld [vmem:[#allocation5 + $0x188] sm:$0xff]  }
  0x48   :  { %1148 = vmatpush3.bf16.msra.mxu1 %v1274_v15  ;;  %v1309_v46 = vld [vmem:[#allocation5 + $0x158] sm:$0xff]   ;;  %v1310_v47 = vld [vmem:[#allocation5 + $0x180] sm:$0xff]   ;;  %v1312_v49 = vld [vmem:[#allocation2 + $0x74] ss:$28 sps:$4 sm:$0xff]  }
  0x49   :  { %1149 = vmatprep.subr.bf16.mxu1 %v1277_v18  ;;  %v1311_v48 = vld [vmem:[#allocation5 + $0x118] sm:$0xff]   ;;  %v1314_v50 = vld [vmem:[#allocation2 + $0x70] ss:$28 sps:$4 sm:$0xff]   ;;  %v1315_v51 = vld [vmem:[#allocation5 + $0x160] sm:$0xff]  }
  0x4a   :  { %1110 = vmatpush3.bf16.msra.mxu0 %v1276_v17  ;;  %v1317_v53 = vld [vmem:[#allocation2 + $0x7c] ss:$28 sps:$4 sm:$0xff]   ;;  %v1319_v54 = vld [vmem:[#allocation5 + $0x120] sm:$0xff]   ;;  %v1321_v56 = vld [vmem:[#allocation5 + $0x168] sm:$0xff]  }
  0x4b   :  { %1111 = vmatprep.subr.bf16.mxu0 %v1279_v20  ;;  %v1320_v55 = vld [vmem:[#allocation2 + $0x78] ss:$28 sps:$4 sm:$0xff]   ;;  %v1323_v58 = vld [vmem:[#allocation5 + $0x128] sm:$0xff]   ;;  %v1334_v3 = vld [vmem:[#allocation5 + $0x1a0] sm:$0xff]  }
  0x4c   :  { %1150 = vmatpush3.bf16.msra.mxu1 %v1278_v19  ;;  %v1322_v57 = vld [vmem:[#allocation5 + $0x190] sm:$0xff]   ;;  %v1324_v59 = vld [vmem:[#allocation2 + $0xac] ss:$28 sps:$4 sm:$0xff]   ;;  %v1328_v62 = vld [vmem:[#allocation5 + $0x198] sm:$0xff]  }
  0x4d   :  { %1151 = vmatprep.subr.bf16.mxu1 %v1281_v22  ;;  %v1326_v60 = vld [vmem:[#allocation2 + $0xa8] ss:$28 sps:$4 sm:$0xff]   ;;  %v1327_v61 = vld [vmem:[#allocation5 + $0x170] sm:$0xff]   ;;  %v1333_v2 = vld [vmem:[#allocation5 + $0x178] sm:$0xff]  }
  0x4e   :  { %1112 = vmatpush3.bf16.msra.mxu0 %v1280_v21  ;;  %v1329_v63 = vld [vmem:[#allocation2 + $0xb4] ss:$28 sps:$4 sm:$0xff]   ;;  %v1335_v4 = vld [vmem:[#allocation5 + $0x138] sm:$0xff]   ;;  %v1339_v7 = vld [vmem:[#allocation5 + $0x1a8] sm:$0xff]  }
  0x4f   :  { %1113 = vmatprep.subr.bf16.mxu0 %v1283_v24  ;;  %v1331_v0 = vld [vmem:[#allocation5 + $0x130] sm:$0xff]   ;;  %v1342_v10 = vld [vmem:[#allocation2 + $0x4c] ss:$28 sps:$4 sm:$0xff]   ;;  %v1345_v13 = vld [vmem:[#allocation2 + $0x84] ss:$28 sps:$4 sm:$0xff]  }
  0x50   :  { %1152 = vmatpush3.bf16.msra.mxu1 %v1282_v23  ;;  %v1332_v1 = vld [vmem:[#allocation2 + $0xb0] ss:$28 sps:$4 sm:$0xff]   ;;  %v1340_v8 = vld [vmem:[#allocation2 + $0x18] ss:$28 sps:$4 sm:$0xff]   ;;  %v1348_v11 = vld [vmem:[#allocation2 + $0x88] ss:$28 sps:$4 sm:$0xff]  }
  0x51   :  { %1153 = vmatprep.subr.bf16.mxu1 %v1285_v26  ;;  %v1336_v5 = vld [vmem:[#allocation2 + $0x10] ss:$28 sps:$4 sm:$0xff]   ;;  %v1344_v12 = vld [vmem:[#allocation2 + $0x48] ss:$28 sps:$4 sm:$0xff]   ;;  %v1349_v14 = vld [vmem:[#allocation2 + $0xc0] ss:$28 sps:$4 sm:$0xff]  }
  0x52   :  { %1114 = vmatpush3.bf16.msra.mxu0 %v1284_v25  ;;  %v1338_v6 = vld [vmem:[#allocation2 + $0x14] ss:$28 sps:$4 sm:$0xff]   ;;  %v1347_v15 = vld [vmem:[#allocation2 + $0x80] ss:$28 sps:$4 sm:$0xff]  }
  0x53   :  { %1115 = vmatprep.subr.bf16.mxu0 %v1287_v28  ;;  %v1341_v9 = vld [vmem:[#allocation2 + $0x50] ss:$28 sps:$4 sm:$0xff]   ;;  %v1350_v16 = vld [vmem:[#allocation2 + $0xbc] ss:$28 sps:$4 sm:$0xff]  }
  0x54   :  { %1154 = vmatpush3.bf16.msra.mxu1 %v1286_v27  ;;  %v1352_v17 = vld [vmem:[#allocation2 + $0xb8] ss:$28 sps:$4 sm:$0xff]   ;;  %v998_v19 = vld [vmem:[#allocation7] ss:$0 sm:$0xff] }
  0x55   :  { %1155 = vmatprep.subr.bf16.mxu1 %v1289_v30 }
  0x56   :  { %1116 = vmatpush3.bf16.msra.mxu0 %v1288_v29 }
  0x57   :  { %1181 = vmatprep.subr.bf16.mxu0 %v1294_v34 }
  0x58   :  { %1156 = vmatpush3.bf16.msra.mxu1 %v1293_v33 }
  0x59   :  { %712 = vmatmul.mubr.bf16.vlgmr.msra.gmra.mrb[0].mxu0 %v1290_v31  ;;  %1231 = vmatprep.subr.bf16.mxu1 %v1310_v47 }
  0x5a   :  { %1182 = vmatpush3.bf16.msra.mxu0 %v1298_v37  ;;  %719 = vmatprep.mubr.bf16.mxu0 %v1301_v40 }
  0x5b   :  { %777 = vmatmul.mubr.bf16.vlgmr.msra.gmra.mrb[0].mxu1 %v1295_v35  ;;  %1183 = vmatprep.subr.bf16.mxu0 %v1299_v38 }
  0x5c   :  { %784 = vmatprep.mubr.bf16.mxu1 %v1305_v43  ;;  %1232 = vmatpush3.bf16.msra.mxu1 %v1310_v47 }
  0x5d   :  { %1233 = vmatprep.subr.bf16.mxu1 %v1316_v52 }
  0x5e   :  { %1184 = vmatpush3.bf16.msra.mxu0 %v1300_v39 }
  0x5f   :  { %1185 = vmatprep.subr.bf16.mxu0 %v1304_v42 }
  0x60   :  { %1234 = vmatpush3.bf16.msra.mxu1 %v1316_v52 }
  0x61   :  { %720 = vmatmul.mubr.bf16.gmra.mrb[4].mxu0 %v1303_v41  ;;  %1235 = vmatprep.subr.bf16.mxu1 %v1322_v57 }
  0x62   :  { %1186 = vmatpush3.bf16.msra.mxu0 %v1307_v44  ;;  %727 = vmatprep.mubr.bf16.mxu0 %v1312_v49 }
  0x63   :  { %785 = vmatmul.mubr.bf16.gmra.mrb[4].mxu1 %v1308_v45  ;;  %1187 = vmatprep.subr.bf16.mxu0 %v1309_v46 }
  0x64   :  { %792 = vmatprep.mubr.bf16.mxu1 %v1317_v53  ;;  %1236 = vmatpush3.bf16.msra.mxu1 %v1322_v57 }
  0x65   :  { %1237 = vmatprep.subr.bf16.mxu1 %v1328_v62 }
  0x66   :  { %1188 = vmatpush3.bf16.msra.mxu0 %v1311_v48 }
  0x67   :  { %1189 = vmatprep.subr.bf16.mxu0 %v1315_v51 }
  0x68   :  { %1238 = vmatpush3.bf16.msra.mxu1 %v1328_v62 }
  0x69   :  { %728 = vmatmul.mubr.bf16.gmra.mrb[8].mxu0 %v1314_v50  ;;  %1239 = vmatprep.subr.bf16.mxu1 %v1334_v3 }
  0x6a   :  { %1190 = vmatpush3.bf16.msra.mxu0 %v1319_v54  ;;  %735 = vmatprep.mubr.bf16.mxu0 %v1324_v59 }
  0x6b   :  { %793 = vmatmul.mubr.bf16.gmra.mrb[8].mxu1 %v1320_v55  ;;  %1191 = vmatprep.subr.bf16.mxu0 %v1321_v56 }
  0x6c   :  { %800 = vmatprep.mubr.bf16.mxu1 %v1329_v63  ;;  %1240 = vmatpush3.bf16.msra.mxu1 %v1334_v3 }
  0x6d   :  { %1241 = vmatprep.subr.bf16.mxu1 %v1339_v7 }
  0x6e   :  { %1192 = vmatpush3.bf16.msra.mxu0 %v1323_v58 }
  0x6f   :  { %1193 = vmatprep.subr.bf16.mxu0 %v1327_v61 }
  0x70   :  { %1242 = vmatpush3.bf16.msra.mxu1 %v1339_v7 }
  0x71   :  { %736 = vmatmul.mubr.bf16.gmra.mrb[12].mxu0 %v1326_v60 }
  0x72   :  { %1194 = vmatpush3.bf16.msra.mxu0 %v1331_v0  ;;  %841 = vmatprep.mubr.bf16.mxu0 %v1338_v6 }
  0x73   :  { %801 = vmatmul.mubr.bf16.gmra.mrb[12].mxu1 %v1332_v1  ;;  %1195 = vmatprep.subr.bf16.mxu0 %v1333_v2 }
  0x74   :  { %1243 = vmatprep.mubr.msk.bf16.mxu1 %vm666_vm0, %v1340_v8 }
  0x76   :  { %1196 = vmatpush3.bf16.msra.mxu0 %v1335_v4 }
  0x79   :  { %842 = vmatmul.mubr.bf16.vlgmr.msra.gmra.mrb[16].mxu0 %v1336_v5 }
  0x7a   :  { %849 = vmatprep.mubr.bf16.mxu0 %v1342_v10 }
  0x7b   :  { %1244 = vmatmul.mubr.msk.bf16.vlgmr.msra.gmra.mrb[16].mxu1 %vm666_vm0, %v1341_v9 }
  0x7c   :  { %1247 = vmatprep.mubr.msk.bf16.mxu1 %vm666_vm0, %v1348_v11 }
  0x81   :  { %850 = vmatmul.mubr.bf16.gmra.mrb[20].mxu0 %v1344_v12 }
  0x82   :  { %857 = vmatprep.mubr.bf16.mxu0 %v1345_v13 }
  0x83   :  { %1248 = vmatmul.mubr.msk.bf16.gmra.mrb[20].mxu1 %vm666_vm0, %v1349_v14 }
  0x89   :  { %858 = vmatmul.mubr.bf16.gmra.mrb[24].mxu0 %v1347_v15 }
  0x8a   :  { %865 = vmatprep.mubr.bf16.mxu0 %v1350_v16 }
  0x91   :  { %866 = vmatmul.mubr.bf16.gmra.mrb[28].mxu0 %v1352_v17 }
 0x12c   :  { %v1117_v18 = vpop.f32.mrb[0].mxu0 }
 0x12d   :  { %v1118_v20 = vpop.f32.mrb[1].mxu0 }
 0x12e   :  { %v1119_v21 = vadd.f32 %v1118_v20, %v1117_v18  ;;  %v1120_v22 = vpop.f32.mrb[2].mxu0  ;;  %v1157_v23 = vpop.f32.mrb[0].mxu1 }
 0x12f   :  { %v1121_v24 = vpop.f32.mrb[3].mxu0  ;;  %v1158_v27 = vpop.f32.mrb[1].mxu1 }
 0x130   :  { %v714_v25 = vadd.f32 %v1119_v21, %v998_v19  ;;  %v1122_v26 = vadd.f32 %v1121_v24, %v1120_v22  ;;  %v1159_v28 = vadd.f32 %v1158_v27, %v1157_v23  ;;  %v1160_v29 = vpop.f32.mrb[2].mxu1 }
 0x131   :  { %v1161_v31 = vpop.f32.mrb[3].mxu1 }
 0x132   :  { %v717_v30 = vadd.f32 %v1122_v26, %v998_v19  ;;  %v779_v32 = vadd.f32 %v1159_v28, %v714_v25  ;;  %v1162_v33 = vadd.f32 %v1161_v31, %v1160_v29 }
 0x134   :  { %v1123_v34 = vpop.f32.mrb[4].mxu0  ;;  %v782_v35 = vadd.f32 %v1162_v33, %v717_v30 }
 0x135   :  { %v1124_v36 = vpop.f32.mrb[5].mxu0 }
 0x136   :  { %v1125_v37 = vadd.f32 %v1124_v36, %v1123_v34  ;;  %v1126_v38 = vpop.f32.mrb[6].mxu0  ;;  %v1163_v39 = vpop.f32.mrb[4].mxu1 }
 0x137   :  { %v1127_v40 = vpop.f32.mrb[7].mxu0  ;;  %v1164_v43 = vpop.f32.mrb[5].mxu1 }
 0x138   :  { %v722_v41 = vadd.f32 %v1125_v37, %v998_v19  ;;  %v1128_v42 = vadd.f32 %v1127_v40, %v1126_v38  ;;  %v1165_v44 = vadd.f32 %v1164_v43, %v1163_v39  ;;  %v1166_v45 = vpop.f32.mrb[6].mxu1 }
 0x139   :  { %v1167_v47 = vpop.f32.mrb[7].mxu1 }
 0x13a   :  { %v725_v46 = vadd.f32 %v1128_v42, %v998_v19  ;;  %v787_v48 = vadd.f32 %v1165_v44, %v722_v41  ;;  %v1168_v49 = vadd.f32 %v1167_v47, %v1166_v45 }
 0x13c   :  { %v1129_v50 = vpop.f32.mrb[8].mxu0  ;;  %v790_v51 = vadd.f32 %v1168_v49, %v725_v46 }
 0x13d   :  { %v1130_v52 = vpop.f32.mrb[9].mxu0 }
 0x13e   :  { %v1131_v53 = vadd.f32 %v1130_v52, %v1129_v50  ;;  %v1132_v54 = vpop.f32.mrb[10].mxu0  ;;  %v1169_v55 = vpop.f32.mrb[8].mxu1 }
 0x13f   :  { %v1133_v56 = vpop.f32.mrb[11].mxu0  ;;  %v1170_v59 = vpop.f32.mrb[9].mxu1 }
 0x140   :  { %v730_v57 = vadd.f32 %v1131_v53, %v998_v19  ;;  %v1134_v58 = vadd.f32 %v1133_v56, %v1132_v54  ;;  %v1171_v60 = vadd.f32 %v1170_v59, %v1169_v55  ;;  %v1172_v61 = vpop.f32.mrb[10].mxu1 }
 0x141   :  { %v1173_v63 = vpop.f32.mrb[11].mxu1 }
 0x142   :  { %v733_v62 = vadd.f32 %v1134_v58, %v998_v19  ;;  %v795_v0 = vadd.f32 %v1171_v60, %v730_v57  ;;  %v1174_v1 = vadd.f32 %v1173_v63, %v1172_v61 }
 0x144   :  { %v1135_v2 = vpop.f32.mrb[12].mxu0  ;;  %v798_v3 = vadd.f32 %v1174_v1, %v733_v62 }
 0x145   :  { %v1136_v4 = vpop.f32.mrb[13].mxu0 }
 0x146   :  { %v1137_v5 = vadd.f32 %v1136_v4, %v1135_v2  ;;  %v1138_v6 = vpop.f32.mrb[14].mxu0  ;;  %v1175_v7 = vpop.f32.mrb[12].mxu1 }
 0x147   :  { %v1139_v8 = vpop.f32.mrb[15].mxu0  ;;  %v1176_v11 = vpop.f32.mrb[13].mxu1 }
 0x148   :  { %v738_v9 = vadd.f32 %v1137_v5, %v998_v19  ;;  %v1140_v10 = vadd.f32 %v1139_v8, %v1138_v6  ;;  %v1177_v12 = vadd.f32 %v1176_v11, %v1175_v7  ;;  %v1178_v13 = vpop.f32.mrb[14].mxu1 }
 0x149   :  { %v1179_v15 = vpop.f32.mrb[15].mxu1 }
 0x14a   :  { %v741_v14 = vadd.f32 %v1140_v10, %v998_v19  ;;  %v803_v16 = vadd.f32 %v1177_v12, %v738_v9  ;;  %v1180_v17 = vadd.f32 %v1179_v15, %v1178_v13 }
 0x14c   :  { %v806_v18 = vadd.f32 %v1180_v17, %v741_v14  ;;  %v1197_v20 = vpop.f32.mrb[16].mxu0 }
 0x14d   :  { %v1198_v21 = vpop.f32.mrb[17].mxu0 }
 0x14e   :  { %v1199_v22 = vadd.f32 %v1198_v21, %v1197_v20  ;;  %v1200_v23 = vpop.f32.mrb[18].mxu0  ;;  %v1245_v25 = vpop.f32.mrb[16].mxu1 }
 0x14f   :  { %v1201_v24 = vpop.f32.mrb[19].mxu0  ;;  %v908_v28 = vpop.f32.mrb[17].mxu1 }
 0x150   :  { %v1202_v26 = vadd.f32 %v1201_v24, %v1200_v23  ;;  %v844_v27 = vadd.f32 %v1199_v22, %v779_v32  ;;  %v1246_v29 = vpop.f32.mrb[18].mxu1 }
 0x151   :  { %v911_v33 = vpop.f32.mrb[19].mxu1 }
 0x152   :  { %v909_v30 = vadd.f32 %v908_v28, %v844_v27  ;;  %v847_v31 = vadd.f32 %v1202_v26, %v782_v35 }
 0x154   :  { %v1093_v34 = vpack.c.bf16 %v909_v30, %v909_v30  ;;  %v912_v19 = vadd.f32 %v911_v33, %v847_v31  ;;  %v1203_v36 = vpop.f32.mrb[20].mxu0 }
 0x155   :  { %v1204_v37 = vpop.f32.mrb[21].mxu0 }
 0x156   :  { %972 = vst.msk [vmem:[#allocation8] sm:$0xf] %vm971_vm1, %v1093_v34  ;;  %v1094_v38 = vpack.c.bf16 %v912_v19, %v912_v19  ;;  %v1205_v39 = vadd.f32 %v1204_v37, %v1203_v36  ;;  %v1206_v40 = vpop.f32.mrb[22].mxu0  ;;  %v1249_v42 = vpop.f32.mrb[20].mxu1 }
 0x157   :  { %v1207_v41 = vpop.f32.mrb[23].mxu0  ;;  %v924_v44 = vpop.f32.mrb[21].mxu1 }
 0x158   :  { %973 = vst.msk [vmem:[#allocation8 + $0x4] sm:$0xf] %vm971_vm1, %v1094_v38  ;;  %v852_v32 = vadd.f32 %v1205_v39, %v787_v48  ;;  %v1208_v43 = vadd.f32 %v1207_v41, %v1206_v40  ;;  %v1250_v45 = vpop.f32.mrb[22].mxu1 }
 0x159   :  { %v927_v47 = vpop.f32.mrb[23].mxu1 }
 0x15a   :  { %v917_v35 = vadd.f32 %v1245_v25, %v852_v32  ;;  %v855_v46 = vadd.f32 %v1208_v43, %v790_v51 }
 0x15c   :  { %v1095_v49 = vpack.c.bf16 %v917_v35, %v917_v35  ;;  %v920_v50 = vadd.f32 %v1246_v29, %v855_v46  ;;  %v1209_v52 = vpop.f32.mrb[24].mxu0 }
 0x15d   :  { %v1210_v53 = vpop.f32.mrb[25].mxu0 }
 0x15e   :  { %974 = vst.msk [vmem:[#allocation8 + $0x8] sm:$0xf] %vm971_vm1, %v1095_v49  ;;  %v1096_v54 = vpack.c.bf16 %v920_v50, %v920_v50  ;;  %v1211_v55 = vadd.f32 %v1210_v53, %v1209_v52  ;;  %v1212_v56 = vpop.f32.mrb[26].mxu0 }
 0x15f   :  { %v1213_v57 = vpop.f32.mrb[27].mxu0 }
 0x160   :  { %975 = vst.msk [vmem:[#allocation8 + $0xc] sm:$0xf] %vm971_vm1, %v1096_v54  ;;  %v1214_v58 = vadd.f32 %v1213_v57, %v1212_v56  ;;  %v860_v48 = vadd.f32 %v1211_v55, %v795_v0 }
 0x162   :  { %v925_v59 = vadd.f32 %v924_v44, %v860_v48  ;;  %v863_v60 = vadd.f32 %v1214_v58, %v798_v3 }
 0x164   :  { %v1097_v61 = vpack.c.bf16 %v925_v59, %v925_v59  ;;  %v928_v62 = vadd.f32 %v927_v47, %v863_v60  ;;  %v1215_v51 = vpop.f32.mrb[28].mxu0 }
 0x165   :  { %v1216_v63 = vpop.f32.mrb[29].mxu0 }
 0x166   :  { %976 = vst.msk [vmem:[#allocation8 + $0x10] sm:$0xf] %vm971_vm1, %v1097_v61  ;;  %v1098_v1 = vpack.c.bf16 %v928_v62, %v928_v62  ;;  %v1217_v2 = vadd.f32 %v1216_v63, %v1215_v51  ;;  %v1218_v4 = vpop.f32.mrb[30].mxu0 }
 0x167   :  { %v1219_v5 = vpop.f32.mrb[31].mxu0 }
 0x168   :  { %977 = vst.msk [vmem:[#allocation8 + $0x14] sm:$0xf] %vm971_vm1, %v1098_v1  ;;  %v868_v6 = vadd.f32 %v1217_v2, %v803_v16  ;;  %v1220_v7 = vadd.f32 %v1219_v5, %v1218_v4 }
 0x16a   :  { %v933_v8 = vadd.f32 %v1249_v42, %v868_v6  ;;  %v871_v9 = vadd.f32 %v1220_v7, %v806_v18 }
 0x16c   :  { %v1099_v0 = vpack.c.bf16 %v933_v8, %v933_v8  ;;  %v936_v3 = vadd.f32 %v1250_v45, %v871_v9 }
 0x16e   :  { %978 = vst.msk [vmem:[#allocation8 + $0x18] sm:$0xf] %vm971_vm1, %v1099_v0  ;;  %v1100_v10 = vpack.c.bf16 %v936_v3, %v936_v3 }
 0x170   :  { %979 = vst.msk [vmem:[#allocation8 + $0x1c] sm:$0xf] %vm971_vm1, %v1100_v10 }
 0x171   :  { %1430 = shalt.err (!%p1427_p0)
}
 0x172   :  { %s1431_s30 = scalar_lea.hbm %s1544_s3, 512 }
 0x173   :  { %p1432_p1 = scmp.ne.s32.totalorder %s1544_s3, %s1431_s30  ;;  %p1435_p2 = scmp.lt.u32.totalorder %s1431_s30, %s1544_s3 }
 0x175   :  { %p1437_p3 = pnand %p1435_p2, %p1432_p1 }
 0x177   :  { %1440 = shalt.err (!%p1437_p3)
}
 0x178   :  { %991 = dma.vmem_to_hbm [thread:$0]  %s986_s26, 512, %s1544_s3, [#allocation4], %s1448_s22, %s1448_s22, %s1449_s23  }
 0x179   :  { %1445 = dma.done.wait [#allocation4], 512  }
 0x17a   :  { %1446 = vsyncadd [#allocation4], 4294966784 }
 0x17b   :  { %995 = vsyncpa [#allocation3], 1 }
 0x17c   :  { %996 = vsyncpa [#allocation6], 1 }
 0x17d   :  { %997 = vsyncpa [#allocation4], 1 }

// kernel: offset_decoder_forward.17
= control target key start
LH: loop header
LB: loop body
LE: loop exit
PB: predicated region body
PF: predicated region fallthrough
CT: control target
= control target key end

     0   :  { %12 = vsyncpa [#allocation3], 0  ;;  %s975_s0 = inlined_call_operand.hbm [shape: bf16[64,32], index: 0, kind: input, shape index: {}]   ;;  %s976_s1 = inlined_call_operand.hbm [shape: bf16[32,32], index: 1, kind: input, shape index: {}]   ;;  %s977_s2 = inlined_call_operand.hbm [shape: f32[1,32], index: 2, kind: input, shape index: {}]   ;;  %s978_s3 = inlined_call_operand.hbm [shape: bf16[32,32], index: 3, kind: input, shape index: {}]   ;;  %s979_s4 = inlined_call_operand.hbm [shape: f32[1,32], index: 4, kind: input, shape index: {}]   ;;  %s980_s5 = inlined_call_operand.hbm [shape: bf16[32,128], index: 5, kind: input, shape index: {}]   ;;  %s981_s6 = inlined_call_operand.hbm [shape: f32[1,128], index: 6, kind: input, shape index: {}]   ;;  %s982_s7 = inlined_call_operand.hbm [shape: f32[64,128], index: 7, kind: output, shape index: {}]  }
   0x1   :  { %13 = vsyncpa [#allocation6], 0 }
   0x2   :  { %14 = vsyncpa [#allocation9], 0 }
   0x3   :  { %15 = vsyncpa [#allocation12], 0 }
   0x4   :  { %16 = vsyncpa [#allocation4], 0  ;;  %s789_s24 = smov [#allocation5]   ;;  %s790_s26 = smov [#allocation8]  }
   0x5   :  { %s34_s25 = sshll.u32 %s789_s24, 4  ;;  %s56_s27 = sshll.u32 %s790_s26, 4  ;;  %s35_s25 = int_to_ptr.vmem [resolvable:$true] %s34_s25  ;;  %s841_s27 = int_to_ptr.vmem [resolvable:$true] %s56_s27 }
   0x6   :  { %s603_s30 = scalar_lea.hbm %s976_s1, 256 }
   0x7   :  { %p604_p0 = scmp.ne.s32.totalorder %s976_s1, %s603_s30  ;;  %p607_p1 = scmp.lt.u32.totalorder %s603_s30, %s976_s1 }
   0x9   :  { %p609_p2 = pnand %p607_p1, %p604_p0 }
   0xb   :  { %612 = shalt.err (!%p609_p2)
}
   0xc   :  { %s613_s12 = scalar_lea.vmem %s35_s25, 256  ;;  %p618_p4 = scmp.lt.s32.totalorder %s35_s25, %s35_s25 }
   0xd   :  { %p614_p3 = scmp.ne.s32.totalorder %s35_s25, %s613_s12  ;;  %p619_p5 = scmp.lt.s32.totalorder %s613_s12, %s613_s12 }
   0xf   :  { %p620_p6 = por %p619_p5, %p618_p4 }
  0x11   :  { %p621_p7 = pnand %p620_p6, %p614_p3 }
  0x13   :  { %624 = shalt.err (!%p621_p7)
}
  0x14   :  { %s791_s13 = smov 64   ;;  %s792_s14 = smov 4  }
  0x15   :  { %40 = dma.hbm_to_vmem [thread:$0]  %s976_s1, 256, %s35_s25, [#allocation6], %s791_s13, %s791_s13, %s792_s14  }
  0x16   :  { %s625_s19 = scalar_lea.hbm %s978_s3, 256 }
  0x17   :  { %p626_p8 = scmp.ne.s32.totalorder %s978_s3, %s625_s19  ;;  %p629_p9 = scmp.lt.u32.totalorder %s625_s19, %s978_s3 }
  0x19   :  { %p631_p10 = pnand %p629_p9, %p626_p8 }
  0x1b   :  { %634 = shalt.err (!%p631_p10)
}
  0x1c   :  { %s635_s24 = scalar_lea.vmem %s841_s27, 256  ;;  %p640_p12 = scmp.lt.s32.totalorder %s841_s27, %s841_s27 }
  0x1d   :  { %p636_p11 = scmp.ne.s32.totalorder %s841_s27, %s635_s24  ;;  %p641_p13 = scmp.lt.s32.totalorder %s635_s24, %s635_s24 }
  0x1f   :  { %p642_p0 = por %p641_p13, %p640_p12 }
  0x21   :  { %p643_p1 = pnand %p642_p0, %p636_p11 }
  0x23   :  { %646 = shalt.err (!%p643_p1)
}
  0x24   :  { %62 = dma.hbm_to_vmem [thread:$0]  %s978_s3, 256, %s841_s27, [#allocation9], %s791_s13, %s791_s13, %s792_s14  }
  0x25   :  { %s793_s26 = smov [#allocation11]   ;;  %s794_s29 = smov [#allocation2]  }
  0x26   :  { %s78_s28 = sshll.u32 %s793_s26, 4  ;;  %s22_s30 = sshll.u32 %s794_s29, 4  ;;  %s79_s28 = int_to_ptr.vmem [resolvable:$true] %s78_s28  ;;  %s878_s30 = int_to_ptr.vmem [resolvable:$true] %s22_s30 }
  0x27   :  { %s647_s10 = scalar_lea.hbm %s980_s5, 256 }
  0x28   :  { %p648_p2 = scmp.ne.s32.totalorder %s980_s5, %s647_s10  ;;  %p651_p3 = scmp.lt.u32.totalorder %s647_s10, %s980_s5 }
  0x2a   :  { %p653_p4 = pnand %p651_p3, %p648_p2 }
  0x2c   :  { %656 = shalt.err (!%p653_p4)
}
  0x2d   :  { %s657_s3 = scalar_lea.vmem %s79_s28, 256  ;;  %p662_p6 = scmp.lt.s32.totalorder %s79_s28, %s79_s28 }
  0x2e   :  { %p658_p5 = scmp.ne.s32.totalorder %s79_s28, %s657_s3  ;;  %p663_p7 = scmp.lt.s32.totalorder %s657_s3, %s657_s3 }
  0x30   :  { %p664_p8 = por %p663_p7, %p662_p6 }
  0x32   :  { %p665_p9 = pnand %p664_p8, %p658_p5 }
  0x34   :  { %668 = shalt.err (!%p665_p9)
}
  0x35   :  { %84 = dma.hbm_to_vmem [thread:$0]  %s980_s5, 256, %s79_s28, [#allocation12], %s791_s13, %s791_s13, %s792_s14  }
  0x36   :  { %s669_s20 = scalar_lea.hbm %s975_s0, 512 }
  0x37   :  { %p670_p10 = scmp.ne.s32.totalorder %s975_s0, %s669_s20  ;;  %p673_p11 = scmp.lt.u32.totalorder %s669_s20, %s975_s0 }
  0x39   :  { %p675_p12 = pnand %p673_p11, %p670_p10 }
  0x3b   :  { %678 = shalt.err (!%p675_p12)
}
  0x3c   :  { %s679_s1 = scalar_lea.vmem %s878_s30, 512  ;;  %p684_p0 = scmp.lt.s32.totalorder %s878_s30, %s878_s30 }
  0x3d   :  { %p680_p13 = scmp.ne.s32.totalorder %s878_s30, %s679_s1  ;;  %p685_p1 = scmp.lt.s32.totalorder %s679_s1, %s679_s1 }
  0x3f   :  { %p686_p2 = por %p685_p1, %p684_p0 }
  0x41   :  { %p687_p3 = pnand %p686_p2, %p680_p13 }
  0x43   :  { %690 = shalt.err (!%p687_p3)
}
  0x44   :  { %28 = dma.hbm_to_vmem [thread:$0]  %s975_s0, 512, %s878_s30, [#allocation3], %s791_s13, %s791_s13, %s792_s14  }
  0x45   :  { %s795_s26 = smov [#allocation7]   ;;  %s796_s29 = smov [#allocation10]  }
  0x46   :  { %s47_s28 = sshll.u32 %s795_s26, 4  ;;  %s69_s8 = sshll.u32 %s796_s29, 4  ;;  %s48_s28 = int_to_ptr.vmem [resolvable:$true] %s47_s28  ;;  %s70_s8 = int_to_ptr.vmem [resolvable:$true] %s69_s8 }
  0x47   :  { %s691_s11 = scalar_lea.hbm %s977_s2, 16 }
  0x48   :  { %p692_p4 = scmp.ne.s32.totalorder %s977_s2, %s691_s11  ;;  %p695_p5 = scmp.lt.u32.totalorder %s691_s11, %s977_s2 }
  0x4a   :  { %p697_p6 = pnand %p695_p5, %p692_p4 }
  0x4c   :  { %700 = shalt.err (!%p697_p6)
}
  0x4d   :  { %s701_s0 = scalar_lea.vmem %s48_s28, 16  ;;  %s705_s13 = scalar_lea.vmem %s48_s28, 32 }
  0x4e   :  { %p702_p7 = scmp.ne.s32.totalorder %s48_s28, %s701_s0  ;;  %p706_p8 = scmp.lt.s32.totalorder %s48_s28, %s48_s28 }
  0x4f   :  { %p707_p9 = scmp.lt.s32.totalorder %s705_s13, %s701_s0 }
  0x51   :  { %p708_p10 = por %p707_p9, %p706_p8 }
  0x53   :  { %p709_p11 = pnand %p708_p10, %p702_p7 }
  0x55   :  { %712 = shalt.err (!%p709_p11)
}
  0x56   :  { %50 = dma.hbm_to_vmem [thread:$0]  %s977_s2, 16, %s48_s28, [#allocation6]  }
  0x57   :  { %s713_s18 = scalar_lea.hbm %s979_s4, 16 }
  0x58   :  { %p714_p12 = scmp.ne.s32.totalorder %s979_s4, %s713_s18  ;;  %p717_p13 = scmp.lt.u32.totalorder %s713_s18, %s979_s4 }
  0x5a   :  { %p719_p0 = pnand %p717_p13, %p714_p12 }
  0x5c   :  { %722 = shalt.err (!%p719_p0)
}
  0x5d   :  { %s723_s23 = scalar_lea.vmem %s70_s8, 16  ;;  %s727_s24 = scalar_lea.vmem %s70_s8, 32 }
  0x5e   :  { %p724_p1 = scmp.ne.s32.totalorder %s70_s8, %s723_s23  ;;  %p728_p2 = scmp.lt.s32.totalorder %s70_s8, %s70_s8 }
  0x5f   :  { %p729_p3 = scmp.lt.s32.totalorder %s727_s24, %s723_s23 }
  0x61   :  { %p730_p4 = por %p729_p3, %p728_p2 }
  0x63   :  { %p731_p5 = pnand %p730_p4, %p724_p1 }
  0x65   :  { %734 = shalt.err (!%p731_p5)
}
  0x66   :  { %72 = dma.hbm_to_vmem [thread:$0]  %s979_s4, 16, %s70_s8, [#allocation9]  }
  0x67   :  { %s797_s5 = smov [#allocation13]   ;;  %s735_s29 = scalar_lea.hbm %s981_s6, 16 }
  0x68   :  { %s91_s25 = sshll.u32 %s797_s5, 4  ;;  %p736_p6 = scmp.ne.s32.totalorder %s981_s6, %s735_s29  ;;  %s92_s25 = int_to_ptr.vmem [resolvable:$true] %s91_s25 }
  0x69   :  { %p739_p7 = scmp.lt.u32.totalorder %s735_s29, %s981_s6 }
  0x6b   :  { %p741_p8 = pnand %p739_p7, %p736_p6 }
  0x6d   :  { %744 = shalt.err (!%p741_p8)
}
  0x6e   :  { %s745_s15 = scalar_lea.vmem %s92_s25, 16  ;;  %s749_s4 = scalar_lea.vmem %s92_s25, 32 }
  0x6f   :  { %p746_p9 = scmp.ne.s32.totalorder %s92_s25, %s745_s15  ;;  %p750_p10 = scmp.lt.s32.totalorder %s92_s25, %s92_s25 }
  0x70   :  { %p751_p11 = scmp.lt.s32.totalorder %s749_s4, %s745_s15 }
  0x72   :  { %p752_p12 = por %p751_p11, %p750_p10 }
  0x74   :  { %p753_p13 = pnand %p752_p12, %p746_p9 }
  0x76   :  { %756 = shalt.err (!%p753_p13)
}
  0x77   :  { %94 = dma.hbm_to_vmem [thread:$0]  %s981_s6, 16, %s92_s25, [#allocation12]  }
  0x78   :  { %779 = dma.done.wait [#allocation3], 512  }
  0x79   :  { %780 = vsyncadd [#allocation3], 4294966784 }
  0x7a   :  { %781 = dma.done.wait [#allocation6], 272  }
  0x7b   :  { %782 = vsyncadd [#allocation6], 4294967024 }
  0x7c   :  { %783 = dma.done.wait [#allocation9], 272  }
  0x7d   :  { %784 = vsyncadd [#allocation9], 4294967024 }
  0x7e   :  { %785 = dma.done.wait [#allocation12], 272  }
  0x7f   :  { %786 = vsyncadd [#allocation12], 4294967024  ;;  %v593_v0 = vld [vmem:[#allocation5] sm:$0xff]   ;;  %v594_v1 = vld [vmem:[#allocation5 + $0x8] sm:$0xff]   ;;  %vm168_vm0 = vcmask 261120   ;;  %s798_s6 = smov [#allocation14]  }
  0x80   :  { %541 = vmatprep.subr.bf16.mxu0 %v593_v0  ;;  %577 = vmatprep.subr.bf16.mxu1 %v593_v0  ;;  %v595_v2 = vld [vmem:[#allocation2] sm:$0xff]   ;;  %v596_v3 = vld [vmem:[#allocation2 + $0x8] sm:$0xff]   ;;  %v597_v4 = vld [vmem:[#allocation2 + $0x10] sm:$0xff]   ;;  %s483_s3 = sshll.u32 %s798_s6, 4  ;;  %s484_s3 = int_to_ptr.vmem [resolvable:$true] %s483_s3 }
  0x81   :  { %542 = vmatpush3.bf16.msra.mxu0 %v593_v0  ;;  %579 = vmatpush3.bf16.msra.mxu1 %v593_v0  ;;  %v598_v5 = vld [vmem:[#allocation2 + $0x18] sm:$0xff]   ;;  %v498_v8 = vld [vmem:[#allocation7] ss:$0 sm:$0xff]  ;;  %v601_v37 = vld [vmem:[#allocation11] sm:$0xff]   ;;  %s757_s0 = scalar_lea.vmem %s484_s3, 1024  ;;  %p762_p1 = scmp.lt.s32.totalorder %s484_s3, %s484_s3 }
  0x82   :  { %543 = vmatprep.subr.bf16.mxu0 %v594_v1  ;;  %545 = vmatprep.mubr.msk.bf16.mxu0 %vm168_vm0, %v595_v2  ;;  %v599_v6 = vld [vmem:[#allocation8] sm:$0xff]   ;;  %v600_v7 = vld [vmem:[#allocation8 + $0x8] sm:$0xff]   ;;  %v509_v39 = vld [vmem:[#allocation10] ss:$0 sm:$0xff]  ;;  %p758_p0 = scmp.ne.s32.totalorder %s484_s3, %s757_s0  ;;  %p763_p2 = scmp.lt.s32.totalorder %s757_s0, %s757_s0 }
  0x83   :  { %578 = vmatprep.subr.bf16.mxu1 %v594_v1  ;;  %549 = vmatprep.mubr.msk.bf16.mxu1 %vm168_vm0, %v597_v4  ;;  %v602_v38 = vld [vmem:[#allocation11 + $0x8] sm:$0xff]   ;;  %v516_v4 = vld [vmem:[#allocation13] ss:$0 sm:$0xff] }
  0x84   :  { %p764_p3 = por %p763_p2, %p762_p1 }
  0x85   :  { %544 = vmatpush3.bf16.msra.mxu0 %v594_v1  ;;  %580 = vmatpush3.bf16.msra.mxu1 %v594_v1 }
  0x86   :  { %553 = vmatprep.subr.bf16.mxu1 %v599_v6  ;;  %565 = vmatprep.subr.bf16.mxu0 %v601_v37  ;;  %p765_p4 = pnand %p764_p3, %p758_p0 }
  0x88   :  { %546 = vmatmul.mubr.msk.bf16.vlgmr.msra.gmra.mrb[0].mxu0 %vm168_vm0, %v596_v3  ;;  %550 = vmatmul.mubr.msk.bf16.vlgmr.msra.gmra.mrb[0].mxu1 %vm168_vm0, %v598_v5 }
  0x89   :  { %554 = vmatpush3.bf16.msra.mxu1 %v599_v6  ;;  %566 = vmatpush3.bf16.msra.mxu0 %v601_v37 }
  0x8a   :  { %555 = vmatprep.subr.bf16.mxu1 %v600_v7  ;;  %567 = vmatprep.subr.bf16.mxu0 %v602_v38 }
  0x8d   :  { %556 = vmatpush3.bf16.msra.mxu1 %v600_v7  ;;  %568 = vmatpush3.bf16.msra.mxu0 %v602_v38 }
 0x15b   :  { %v547_v9 = vpop.f32.mrb[0].mxu0  ;;  %v551_v10 = vpop.f32.mrb[0].mxu1 }
 0x15c   :  { %v224_v11 = vadd.f32 %v547_v9, %v498_v8  ;;  %v215_v12 = vpop.f32.mrb[1].mxu0  ;;  %v240_v13 = vadd.f32 %v551_v10, %v498_v8  ;;  %v231_v14 = vpop.f32.mrb[1].mxu1 }
 0x15d   :  { %v216_v15 = vadd.f32 %v498_v8, %v215_v12  ;;  %v548_v16 = vpop.f32.mrb[2].mxu0  ;;  %v232_v17 = vadd.f32 %v498_v8, %v231_v14  ;;  %v552_v18 = vpop.f32.mrb[2].mxu1 }
 0x15e   :  { %v227_v19 = vadd.f32 %v548_v16, %v498_v8  ;;  %v218_v20 = vpop.f32.mrb[3].mxu0  ;;  %v252_v21 = vmax.f32 %v240_v13, 0.0  ;;  %v243_v22 = vadd.f32 %v552_v18, %v498_v8  ;;  %v234_v23 = vpop.f32.mrb[3].mxu1  ;;  %v248_v27 = vmax.f32 %v224_v11, 0.0 }
 0x15f   :  { %v219_v24 = vadd.f32 %v498_v8, %v218_v20  ;;  %v250_v25 = vmax.f32 %v232_v17, 0.0  ;;  %v235_v26 = vadd.f32 %v498_v8, %v234_v23  ;;  %v246_v30 = vmax.f32 %v216_v15, 0.0 }
 0x160   :  { %v249_v28 = vmax.f32 %v227_v19, 0.0  ;;  %v253_v29 = vmax.f32 %v243_v22, 0.0 }
 0x161   :  { %v247_v31 = vmax.f32 %v219_v24, 0.0  ;;  %v251_v32 = vmax.f32 %v235_v26, 0.0 }
 0x162   :  { %v255_v33 = vpack.c.bf16 %v249_v28, %v248_v27  ;;  %v257_v34 = vpack.c.bf16 %v253_v29, %v252_v21 }
 0x163   :  { %v254_v35 = vpack.c.bf16 %v247_v31, %v246_v30  ;;  %v256_v36 = vpack.c.bf16 %v251_v32, %v250_v25 }
 0x165   :  { %557 = vmatprep.mubr.msk.bf16.mxu1 %vm168_vm0, %v254_v35 }
 0x166   :  { %558 = vmatmul.mubr.msk.bf16.vlgmr.msra.gmra.mrb[4].mxu1 %vm168_vm0, %v255_v33 }
 0x167   :  { %561 = vmatprep.mubr.msk.bf16.mxu1 %vm168_vm0, %v256_v36 }
 0x16e   :  { %562 = vmatmul.mubr.msk.bf16.gmra.mrb[8].mxu1 %vm168_vm0, %v257_v34 }
 0x239   :  { %v559_v40 = vpop.f32.mrb[4].mxu1 }
 0x23a   :  { %v336_v41 = vadd.f32 %v559_v40, %v509_v39  ;;  %v327_v42 = vpop.f32.mrb[5].mxu1 }
 0x23b   :  { %v328_v43 = vadd.f32 %v509_v39, %v327_v42  ;;  %v560_v44 = vpop.f32.mrb[6].mxu1 }
 0x23c   :  { %v339_v45 = vadd.f32 %v560_v44, %v509_v39  ;;  %v330_v46 = vpop.f32.mrb[7].mxu1  ;;  %v360_v48 = vmax.f32 %v336_v41, 0.0 }
 0x23d   :  { %v331_v47 = vadd.f32 %v509_v39, %v330_v46  ;;  %v358_v50 = vmax.f32 %v328_v43, 0.0 }
 0x23e   :  { %v361_v49 = vmax.f32 %v339_v45, 0.0 }
 0x23f   :  { %v359_v51 = vmax.f32 %v331_v47, 0.0 }
 0x240   :  { %v367_v52 = vpack.c.bf16 %v361_v49, %v360_v48 }
 0x241   :  { %v366_v53 = vpack.c.bf16 %v359_v51, %v358_v50  ;;  %v563_v54 = vpop.f32.mrb[8].mxu1 }
 0x242   :  { %v352_v55 = vadd.f32 %v563_v54, %v509_v39  ;;  %v343_v56 = vpop.f32.mrb[9].mxu1 }
 0x243   :  { %v344_v57 = vadd.f32 %v509_v39, %v343_v56  ;;  %v564_v58 = vpop.f32.mrb[10].mxu1  ;;  %569 = vmatprep.mubr.msk.bf16.mxu0 %vm168_vm0, %v366_v53 }
 0x244   :  { %v355_v59 = vadd.f32 %v564_v58, %v509_v39  ;;  %v346_v60 = vpop.f32.mrb[11].mxu1  ;;  %570 = vmatmul.mubr.msk.bf16.vlgmr.msra.gmra.mrb[4].mxu0 %vm168_vm0, %v367_v52  ;;  %v364_v62 = vmax.f32 %v352_v55, 0.0 }
 0x245   :  { %v347_v61 = vadd.f32 %v509_v39, %v346_v60  ;;  %v362_v0 = vmax.f32 %v344_v57, 0.0 }
 0x246   :  { %v365_v63 = vmax.f32 %v355_v59, 0.0 }
 0x247   :  { %v363_v1 = vmax.f32 %v347_v61, 0.0 }
 0x248   :  { %v369_v2 = vpack.c.bf16 %v365_v63, %v364_v62 }
 0x249   :  { %v368_v3 = vpack.c.bf16 %v363_v1, %v362_v0 }
 0x24b   :  { %573 = vmatprep.mubr.msk.bf16.mxu0 %vm168_vm0, %v368_v3 }
 0x24c   :  { %574 = vmatmul.mubr.msk.bf16.gmra.mrb[8].mxu0 %vm168_vm0, %v369_v2 }
 0x317   :  { %v571_v5 = vpop.f32.mrb[4].mxu0 }
 0x318   :  { %v448_v6 = vadd.f32 %v571_v5, %v516_v4  ;;  %v439_v7 = vpop.f32.mrb[5].mxu0 }
 0x319   :  { %v440_v8 = vadd.f32 %v516_v4, %v439_v7  ;;  %v572_v9 = vpop.f32.mrb[6].mxu0 }
 0x31a   :  { %472 = vst [vmem:[#allocation14 + $0x10] sm:$0xff] %v448_v6  ;;  %v451_v10 = vadd.f32 %v572_v9, %v516_v4  ;;  %v442_v11 = vpop.f32.mrb[7].mxu0 }
 0x31b   :  { %470 = vst [vmem:[#allocation14] sm:$0xff] %v440_v8  ;;  %v443_v12 = vadd.f32 %v516_v4, %v442_v11 }
 0x31c   :  { %473 = vst [vmem:[#allocation14 + $0x18] sm:$0xff] %v451_v10 }
 0x31d   :  { %471 = vst [vmem:[#allocation14 + $0x8] sm:$0xff] %v443_v12 }
 0x31f   :  { %v575_v13 = vpop.f32.mrb[8].mxu0 }
 0x320   :  { %v464_v14 = vadd.f32 %v575_v13, %v516_v4  ;;  %v455_v15 = vpop.f32.mrb[9].mxu0 }
 0x321   :  { %v456_v16 = vadd.f32 %v516_v4, %v455_v15  ;;  %v576_v17 = vpop.f32.mrb[10].mxu0 }
 0x322   :  { %476 = vst [vmem:[#allocation14 + $0x30] sm:$0xff] %v464_v14  ;;  %v467_v18 = vadd.f32 %v576_v17, %v516_v4  ;;  %v458_v19 = vpop.f32.mrb[11].mxu0 }
 0x323   :  { %474 = vst [vmem:[#allocation14 + $0x20] sm:$0xff] %v456_v16  ;;  %v459_v20 = vadd.f32 %v516_v4, %v458_v19 }
 0x324   :  { %477 = vst [vmem:[#allocation14 + $0x38] sm:$0xff] %v467_v18 }
 0x325   :  { %475 = vst [vmem:[#allocation14 + $0x28] sm:$0xff] %v459_v20 }
 0x326   :  { %768 = shalt.err (!%p765_p4)
}
 0x327   :  { %s769_s30 = scalar_lea.hbm %s982_s7, 1024 }
 0x328   :  { %p770_p5 = scmp.ne.s32.totalorder %s982_s7, %s769_s30  ;;  %p773_p6 = scmp.lt.u32.totalorder %s769_s30, %s982_s7 }
 0x32a   :  { %p775_p7 = pnand %p773_p6, %p770_p5 }
 0x32c   :  { %778 = shalt.err (!%p775_p7)
}
 0x32d   :  { %s799_s20 = smov 128   ;;  %s800_s21 = smov 8  }
 0x32e   :  { %489 = dma.vmem_to_hbm [thread:$0]  %s484_s3, 1024, %s982_s7, [#allocation4], %s799_s20, %s799_s20, %s800_s21  }
 0x32f   :  { %787 = dma.done.wait [#allocation4], 1024  }
 0x330   :  { %788 = vsyncadd [#allocation4], 4294966272 }
 0x331   :  { %493 = vsyncpa [#allocation3], 1 }
 0x332   :  { %494 = vsyncpa [#allocation6], 1 }
 0x333   :  { %495 = vsyncpa [#allocation9], 1 }
 0x334   :  { %496 = vsyncpa [#allocation12], 1 }
 0x335   :  { %497 = vsyncpa [#allocation4], 1 }

</bundles_post_ra>
